<compile_context>
chip_gen: v6e
topology: v6e:2x2x1
jax: 0.10.0
libtpu: 0.0.40
codegen_flags: <defaults>
</compile_context>

<pallas_src>
import functools

import jax
import jax.numpy as jnp
from jax.experimental import pallas as pl
from jax.experimental.pallas import tpu as pltpu


CONV_OUT_SIZE = 1600  # architectureType='small' with 28x28 input: 64 * 5 * 5

_VMEM = pl.BlockSpec(memory_space=pltpu.MemorySpace.VMEM)
_VMEM_LIMIT = 32 * 1024 * 1024  # v7x-safe (64 MiB physical / 32 MiB scoped default)


# ----------------------------------------------------------------------------
# Pallas kernels
# ----------------------------------------------------------------------------
def _conv_matmul_kernel(x_ref, w_ref, aux_ref, o_ref):
    """o = relu(x @ w + b) * scale + shift  (conv-as-matmul with folded eval-mode BatchNorm).

    aux_ref packs [bias; scale; shift] rows into one (3, N) operand (single DMA)."""
    aux = aux_ref[...]
    z = jnp.dot(x_ref[...], w_ref[...], preferred_element_type=jnp.float32)
    z = jnp.maximum(z + aux[0:1, :], 0.0)
    o_ref[...] = (z * aux[1:2, :] + aux[2:3, :]).astype(o_ref.dtype)


def _fused_head_kernel(x_ref, wh_ref, bh_ref, wo_ref, o_ref):
    """One grid step j of the fused dueling head.

    hid_j = relu(feat @ w_hid[:, j-tile] + b_hid[j-tile])          (M, tn)  -> bf16
    o_ref = hid_j @ w_out[j-tile, :]                                (M, 256) f32 partial sum
    """
    hid = jnp.dot(x_ref[...], wh_ref[...], preferred_element_type=jnp.float32)
    hid = jnp.maximum(hid + bh_ref[...], 0.0).astype(jnp.bfloat16)
    o_ref[...] = jnp.dot(hid, wo_ref[...], preferred_element_type=jnp.float32)


# ----------------------------------------------------------------------------
# Pallas wrappers
# ----------------------------------------------------------------------------
def conv_matmul(patches, wmat, aux, out_dtype):
    """Small conv-as-matmul (whole-array VMEM blocks): relu(x@w+b)*scale+shift."""
    M, K = patches.shape
    _, N = wmat.shape
    return pl.pallas_call(
        _conv_matmul_kernel,
        out_shape=jax.ShapeDtypeStruct((M, N), out_dtype),
        in_specs=[_VMEM, _VMEM, _VMEM],
        out_specs=_VMEM,
    )(patches.astype(jnp.float32), wmat, aux)


def _pick_tile_n(N, max_tn=2048):
    """Largest multiple of 128 dividing N (<= max_tn); whole N if not 128-divisible."""
    if N % 128 != 0:
        return N
    best = 128
    t = 128
    while t <= min(N, max_tn):
        if N % t == 0:
            best = t
        t += 128
    return best


def fused_dueling_head(feat_bf16, w_hid, b_hid, w_out):
    """Both dueling-head layers in ONE pallas_call.

    Streams lane-dense (K, tn) slices of the fused [adv_hidden|value_hidden] weight together with
    the matching (tn, 256) slices of the block-diagonal output weight.  Each grid step writes its
    own partial (M, 256) slab (summed in XLA afterwards), so the grid axis stays "parallel" and
    the two v7x TensorCores each stream exactly half of the ~12 MB weight traffic.
    """
    M, K = feat_bf16.shape
    _, N_hid = w_hid.shape
    _, N_out = w_out.shape
    tn = _pick_tile_n(N_hid)            # 3200 -> 1600: two 5.1 MB bf16 slabs, one per TC
    n_steps = N_hid // tn
    partial = pl.pallas_call(
        _fused_head_kernel,
        out_shape=jax.ShapeDtypeStruct((n_steps, M, N_out), jnp.float32),
        grid=(n_steps,),
        in_specs=[
            pl.BlockSpec((M, K), lambda j: (0, 0)),       # activations stay VMEM-resident
            pl.BlockSpec((K, tn), lambda j: (0, j)),      # bf16 w_hid stream (double-buffered)
            pl.BlockSpec((1, tn), lambda j: (0, j)),
            pl.BlockSpec((tn, N_out), lambda j: (j, 0)),  # matching bf16 w_out stream
        ],
        out_specs=pl.BlockSpec((None, M, N_out), lambda j: (j, 0, 0)),
        compiler_params=pltpu.CompilerParams(
            dimension_semantics=("parallel",),
            vmem_limit_bytes=_VMEM_LIMIT,
        ),
    )(feat_bf16, w_hid, b_hid, w_out)
    return jnp.sum(partial, axis=0)     # (M, N_out) = [advantage | value | pad]; tiny XLA add


# ----------------------------------------------------------------------------
# Conv glue (NHWC im2col; patch gather stays in XLA)
# ----------------------------------------------------------------------------
def im2col_nhwc(x_nhwc, kh, kw, stride):
    # TODO(synk): the im2col patch gather still lives in XLA (~50 tiny strided slices); moving it
    # inside the conv kernels (whole input fits VMEM) would cut the remaining conv-side glue.
    B, H, W, C = x_nhwc.shape
    Ho = (H - kh) // stride + 1
    Wo = (W - kw) // stride + 1
    cols = [x_nhwc[:, i:i + stride * Ho:stride, j:j + stride * Wo:stride, :]
            for i in range(kh) for j in range(kw)]
    p = jnp.concatenate(cols, axis=-1)            # (B, Ho, Wo, kh*kw*C), feature order (kh, kw, C)
    return p.reshape(B * Ho * Wo, kh * kw * C), Ho, Wo


# ----------------------------------------------------------------------------
# Parameters
# ----------------------------------------------------------------------------
def init_params(key, history_len, out_dim, atom_size):
    ks = jax.random.split(key, 20)

    def n(k, shape, s=0.05):
        return (s * jax.random.normal(k, shape)).astype(jnp.float32)

    def nb(k, shape, s=0.02):  # head weights: stored at bf16 precision (they are streamed as bf16)
        return n(k, shape, s).astype(jnp.bfloat16).astype(jnp.float32)

    def u(k, shape):
        return jax.random.uniform(k, shape, jnp.float32, 0.5, 1.5)

    p = {}
    # Conv2d(historyLen, 32, 6, stride=2) + BatchNorm2d(32)
    p["c1_w"], p["c1_b"] = n(ks[0], (32, history_len, 6, 6)), n(ks[1], (32,))
    p["bn1_g"], p["bn1_b"] = u(ks[2], (32,)), n(ks[3], (32,))
    p["bn1_m"], p["bn1_v"] = n(ks[4], (32,)), u(ks[5], (32,))
    # Conv2d(32, 64, 4, stride=2) + BatchNorm2d(64)
    p["c2_w"], p["c2_b"] = n(ks[6], (64, 32, 4, 4)), n(ks[7], (64,))
    p["bn2_g"], p["bn2_b"] = u(ks[8], (64,)), n(ks[9], (64,))
    p["bn2_m"], p["bn2_v"] = n(ks[10], (64,)), u(ks[11], (64,))
    # Dueling head linears (stored as (in, out), PyTorch NCHW-flatten input ordering)
    p["ah_w"], p["ah_b"] = nb(ks[12], (CONV_OUT_SIZE, CONV_OUT_SIZE)), n(ks[13], (CONV_OUT_SIZE,))
    p["vh_w"], p["vh_b"] = nb(ks[14], (CONV_OUT_SIZE, CONV_OUT_SIZE)), n(ks[15], (CONV_OUT_SIZE,))
    p["a_w"], p["a_b"] = nb(ks[16], (CONV_OUT_SIZE, out_dim * atom_size)), n(ks[17], (out_dim * atom_size,))
    p["v_w"], p["v_b"] = nb(ks[18], (CONV_OUT_SIZE, atom_size)), n(ks[19], (atom_size,))
    return p


def fuse_params(p, out_dim, atom_size, eps=1e-5):
    """One-time parameter fusion (NOT per forward call)."""
    K = CONV_OUT_SIZE
    oa = out_dim * atom_size
    n_out = oa + atom_size
    n_pad = ((n_out + 127) // 128) * 128            # 204 + 51 = 255 -> 256 (lane-dense output)

    def conv_pack(w, b, g, beta, m, v):
        cout, cin, kh, kw = w.shape
        wmat = jnp.transpose(w, (2, 3, 1, 0)).reshape(kh * kw * cin, cout)   # (kh,kw,Cin) patch order
        scale = g / jnp.sqrt(v + eps)                                        # eval-mode BN fold
        shift = beta - m * scale
        aux = jnp.stack([b, scale, shift], axis=0).astype(jnp.float32)       # (3, Cout), one DMA
        return wmat.astype(jnp.float32), aux

    c1_wmat, c1_aux = conv_pack(p["c1_w"], p["c1_b"], p["bn1_g"], p["bn1_b"], p["bn1_m"], p["bn1_v"])
    c2_wmat, c2_aux = conv_pack(p["c2_w"], p["c2_b"], p["bn2_g"], p["bn2_b"], p["bn2_m"], p["bn2_v"])

    # Permute the hidden-layer input rows from PyTorch's NCHW flatten (c,h,w) to the conv kernel's
    # NHWC flatten (h,w,c): removes the transpose/reshape glue between conv2 and the head.
    hw = jnp.arange(25)
    c = jnp.arange(64)
    perm = (c[None, :] * 25 + hw[:, None]).reshape(-1)          # perm[hw*64 + c] = c*25 + hw
    w_hid = jnp.concatenate([p["ah_w"][perm, :], p["vh_w"][perm, :]], axis=1).astype(jnp.bfloat16)
    b_hid = jnp.concatenate([p["ah_b"], p["vh_b"]]).reshape(1, 2 * K).astype(jnp.float32)

    # Output layer: block-diagonal so [adv_hid | val_hid] @ w_out = [advantage | value | 0pad].
    w_out = jnp.zeros((2 * K, n_pad), jnp.float32)
    w_out = w_out.at[:K, :oa].set(p["a_w"])
    w_out = w_out.at[K:, oa:n_out].set(p["v_w"])
    b_out = jnp.zeros((1, n_pad), jnp.float32)
    b_out = b_out.at[0, :oa].set(p["a_b"])
    b_out = b_out.at[0, oa:n_out].set(p["v_b"])

    return {"c1_wmat": c1_wmat, "c1_aux": c1_aux, "c2_wmat": c2_wmat, "c2_aux": c2_aux,
            "w_hid": w_hid, "b_hid": b_hid,
            "w_out": w_out.astype(jnp.bfloat16), "b_out": b_out}


# ----------------------------------------------------------------------------
# Forward
# ----------------------------------------------------------------------------
def network_forward(fused, x, support, out_dim, atom_size):
    B = x.shape[0]
    # feature_layer (NHWC internally; x arrives in PyTorch NCHW layout)
    # TODO(synk): PyTorch's fresh BatchNorm2d defaults to training-mode (batch stats); eval-mode
    # running-stats BN is what is folded into the conv kernels here.
    x_nhwc = jnp.transpose(x, (0, 2, 3, 1)).astype(jnp.float32)
    p1, ho1, wo1 = im2col_nhwc(x_nhwc, 6, 6, 2)
    f1 = conv_matmul(p1, fused["c1_wmat"], fused["c1_aux"], jnp.float32).reshape(B, ho1, wo1, -1)
    p2, ho2, wo2 = im2col_nhwc(f1, 4, 4, 2)
    # conv2 emits bf16 directly; its NHWC flatten feeds the (row-permuted) head with no
    # transpose / astype / pad on the critical path.
    feat = conv_matmul(p2, fused["c2_wmat"], fused["c2_aux"], jnp.bfloat16).reshape(B, CONV_OUT_SIZE)

    # Fused dueling head: hidden + output projections in one pallas_call.
    z = fused_dueling_head(feat, fused["w_hid"], fused["b_hid"], fused["w_out"]) + fused["b_out"]

    # Tiny dueling/softmax epilogue (~2 KB) stays in XLA: a dedicated pallas_call is pure overhead.
    oa = out_dim * atom_size
    advantage = z[:, :oa].reshape(B, out_dim, atom_size)
    value = z[:, oa:oa + atom_size].reshape(B, 1, atom_size)
    q_atoms = value + advantage - jnp.mean(advantage, axis=1, keepdims=True)
    dist = jnp.maximum(jax.nn.softmax(q_atoms, axis=-1), 0.001)    # .clamp(min=0.001)
    return jnp.sum(dist * support.reshape(1, 1, -1), axis=2)       # (B, out_dim)


# ----------------------------------------------------------------------------
# Pure-JAX reference (mirrors the kernel's bf16 head precision on unfused params)
# ----------------------------------------------------------------------------
def reference_forward(params, x, support, out_dim, atom_size, eps=1e-5):
    p = params

    def conv(x, w, b, stride):
        y = jax.lax.conv_general_dilated(x, w, (stride, stride), "VALID",
                                         dimension_numbers=("NCHW", "OIHW", "NCHW"))
        return y + b.reshape(1, -1, 1, 1)

    def bn(x, g, be, m, v):
        return g.reshape(1, -1, 1, 1) * (x - m.reshape(1, -1, 1, 1)) / jnp.sqrt(v.reshape(1, -1, 1, 1) + eps) \
            + be.reshape(1, -1, 1, 1)

    def q16(a):
        return a.astype(jnp.bfloat16).astype(jnp.float32)

    f = bn(jax.nn.relu(conv(x, p["c1_w"], p["c1_b"], 2)), p["bn1_g"], p["bn1_b"], p["bn1_m"], p["bn1_v"])
    f = bn(jax.nn.relu(conv(f, p["c2_w"], p["c2_b"], 2)), p["bn2_g"], p["bn2_b"], p["bn2_m"], p["bn2_v"])
    feature = q16(f.reshape(x.shape[0], CONV_OUT_SIZE))            # PyTorch NCHW flatten
    adv_hid = q16(jax.nn.relu(feature @ p["ah_w"] + p["ah_b"]))
    val_hid = q16(jax.nn.relu(feature @ p["vh_w"] + p["vh_b"]))
    advantage = (adv_hid @ p["a_w"] + p["a_b"]).reshape(-1, out_dim, atom_size)
    value = (val_hid @ p["v_w"] + p["v_b"]).reshape(-1, 1, atom_size)
    q_atoms = value + advantage - advantage.mean(axis=1, keepdims=True)
    dist = jnp.maximum(jax.nn.softmax(q_atoms, axis=-1), 0.001)
    return jnp.sum(dist * support.reshape(1, 1, -1), axis=2)


# ----------------------------------------------------------------------------
if __name__ == "__main__":
    # TODO(synk): NoisyLinear ('noisy' randomization) noise resampling has no deterministic
    # forward-only equivalent; the 'eps' (plain nn.Linear) head is implemented.
    B, HIST, H, W = 2, 4, 28, 28           # 28x28 -> convOutputSize 1600 ('small' arch)
    OUT_DIM, ATOM_SIZE = 4, 51

    key = jax.random.PRNGKey(0)
    k_x, k_p = jax.random.split(key)
    x = jax.random.normal(k_x, (B, HIST, H, W), jnp.float32)
    support = jnp.linspace(-10.0, 10.0, ATOM_SIZE, dtype=jnp.float32)
    params = init_params(k_p, HIST, OUT_DIM, ATOM_SIZE)
    fused = fuse_params(params, OUT_DIM, ATOM_SIZE)   # fused/permuted/bf16 weights, built once

    fwd = jax.jit(functools.partial(network_forward, out_dim=OUT_DIM, atom_size=ATOM_SIZE))
    q = jax.block_until_ready(fwd(fused, x, support))

    q_ref = jax.block_until_ready(reference_forward(params, x, support, OUT_DIM, ATOM_SIZE))
    assert q.shape == (B, OUT_DIM), q.shape
    # bf16 weight/activation streaming in the head -> looser tolerance than a pure-f32 check
    assert jnp.allclose(q, q_ref, rtol=2e-2, atol=2e-2), (q, q_ref)

    print("KERNEL_OK")
</pallas_src>

<mosaic_0001>
module attributes {stable_mosaic.version = 11 : i64} {
  func.func @_conv_matmul_kernel(%arg0: memref<288x144xf32, #tpu.memory_space<vmem>>, %arg1: memref<144x32xf32, #tpu.memory_space<vmem>>, %arg2: memref<3x32xf32, #tpu.memory_space<vmem>>, %arg3: memref<288x32xf32, #tpu.memory_space<vmem>>) attributes {dimension_semantics = [], scalar_prefetch = 0 : i64, scratch_operands = 0 : i64, tpu.core_type = #tpu.core_type<tc>} {
    %c0 = arith.constant 0 : index
    %c0_0 = arith.constant 0 : index
    %0 = vector.load %arg2[%c0, %c0_0] : memref<3x32xf32, #tpu.memory_space<vmem>>, vector<3x32xf32>
    %c0_1 = arith.constant 0 : index
    %c0_2 = arith.constant 0 : index
    %1 = vector.load %arg0[%c0_1, %c0_2] : memref<288x144xf32, #tpu.memory_space<vmem>>, vector<288x144xf32>
    %c0_3 = arith.constant 0 : index
    %c0_4 = arith.constant 0 : index
    %2 = vector.load %arg1[%c0_3, %c0_4] : memref<144x32xf32, #tpu.memory_space<vmem>>, vector<144x32xf32>
    %cst = arith.constant dense<0.000000e+00> : vector<288x32xf32>
    %3 = tpu.matmul %1, %2, %cst {dimension_numbers = #tpu.dot_dimension_numbers<[1], [0], [0], [1], [0, 0, 1, 1], [], []>} : vector<288x144xf32>, vector<144x32xf32>, vector<288x32xf32> -> vector<288x32xf32>
    %4 = vector.extract_strided_slice %0 {offsets = [0, 0], sizes = [1, 32], strides = [1, 1]} : vector<3x32xf32> to vector<1x32xf32>
    %5 = vector.broadcast %4 : vector<1x32xf32> to vector<288x32xf32>
    %6 = arith.addf %3, %5 : vector<288x32xf32>
    %cst_5 = arith.constant 0.000000e+00 : f32
    %7 = vector.broadcast %cst_5 : f32 to vector<288x32xf32>
    %8 = arith.maximumf %6, %7 : vector<288x32xf32>
    %9 = vector.extract_strided_slice %0 {offsets = [1, 0], sizes = [1, 32], strides = [1, 1]} : vector<3x32xf32> to vector<1x32xf32>
    %10 = vector.broadcast %9 : vector<1x32xf32> to vector<288x32xf32>
    %11 = arith.mulf %8, %10 : vector<288x32xf32>
    %12 = vector.extract_strided_slice %0 {offsets = [2, 0], sizes = [1, 32], strides = [1, 1]} : vector<3x32xf32> to vector<1x32xf32>
    %13 = vector.broadcast %12 : vector<1x32xf32> to vector<288x32xf32>
    %14 = arith.addf %11, %13 : vector<288x32xf32>
    %c0_6 = arith.constant 0 : index
    %c0_7 = arith.constant 0 : index
    %15 = vector.load %arg3[%c0_6, %c0_7] : memref<288x32xf32, #tpu.memory_space<vmem>>, vector<288x32xf32>
    tpu.vector_store %arg3[%c0_6, %c0_7], %14 {strides = array<i32>} : memref<288x32xf32, #tpu.memory_space<vmem>>, vector<288x32xf32>,
    return
  }
}

module attributes {stable_mosaic.version = 11 : i64} {
  func.func @_fused_head_kernel(%arg0: i32, %arg1: memref<2x1600xbf16, #tpu.memory_space<vmem>>, %arg2: memref<1600x640xbf16, #tpu.memory_space<vmem>>, %arg3: memref<1x640xf32, #tpu.memory_space<vmem>>, %arg4: memref<640x256xbf16, #tpu.memory_space<vmem>>, %arg5: memref<1x2x256xf32, #tpu.memory_space<vmem>>) attributes {dimension_semantics = [#tpu.dimension_semantics<parallel>], iteration_bounds = array<i64: 5>, scalar_prefetch = 0 : i64, scratch_operands = 0 : i64, tpu.core_type = #tpu.core_type<tc>, window_params = [{pipeline_mode = #tpu.pipeline_mode<synchronous>, transform_indices = @transform_0, window_bounds = array<i64: 2, 1600>}, {transform_indices = @transform_1, window_bounds = array<i64: 1600, 640>}, {transform_indices = @transform_2, window_bounds = array<i64: 1, 640>}, {transform_indices = @transform_3, window_bounds = array<i64: 640, 256>}, {transform_indices = @transform_4, window_bounds = array<i64: 1, 2, 256>}]} {
    %c0 = arith.constant 0 : index
    %c0_0 = arith.constant 0 : index
    %0 = vector.load %arg1[%c0, %c0_0] : memref<2x1600xbf16, #tpu.memory_space<vmem>>, vector<2x1600xbf16>
    %c0_1 = arith.constant 0 : index
    %c0_2 = arith.constant 0 : index
    %1 = vector.load %arg2[%c0_1, %c0_2] : memref<1600x640xbf16, #tpu.memory_space<vmem>>, vector<1600x640xbf16>
    %cst = arith.constant dense<0.000000e+00> : vector<2x640xf32>
    %2 = tpu.matmul %0, %1, %cst {dimension_numbers = #tpu.dot_dimension_numbers<[1], [0], [0], [1], [0, 0, 1, 1], [], []>} : vector<2x1600xbf16>, vector<1600x640xbf16>, vector<2x640xf32> -> vector<2x640xf32>
    %c0_3 = arith.constant 0 : index
    %c0_4 = arith.constant 0 : index
    %3 = vector.load %arg3[%c0_3, %c0_4] : memref<1x640xf32, #tpu.memory_space<vmem>>, vector<1x640xf32>
    %4 = vector.broadcast %3 : vector<1x640xf32> to vector<2x640xf32>
    %5 = arith.addf %2, %4 : vector<2x640xf32>
    %cst_5 = arith.constant 0.000000e+00 : f32
    %6 = vector.broadcast %cst_5 : f32 to vector<2x640xf32>
    %7 = arith.maximumf %5, %6 : vector<2x640xf32>
    %8 = arith.truncf %7 : vector<2x640xf32> to vector<2x640xbf16>
    %c0_6 = arith.constant 0 : index
    %c0_7 = arith.constant 0 : index
    %9 = vector.load %arg4[%c0_6, %c0_7] : memref<640x256xbf16, #tpu.memory_space<vmem>>, vector<640x256xbf16>
    %cst_8 = arith.constant dense<0.000000e+00> : vector<2x256xf32>
    %10 = tpu.matmul %8, %9, %cst_8 {dimension_numbers = #tpu.dot_dimension_numbers<[1], [0], [0], [1], [0, 0, 1, 1], [], []>} : vector<2x640xbf16>, vector<640x256xbf16>, vector<2x256xf32> -> vector<2x256xf32>
    %c0_9 = arith.constant 0 : index
    %c0_10 = arith.constant 0 : index
    %c0_11 = arith.constant 0 : index
    %11 = vector.load %arg5[%c0_9, %c0_10, %c0_11] : memref<1x2x256xf32, #tpu.memory_space<vmem>>, vector<1x2x256xf32>
    %12 = vector.shape_cast %11 : vector<1x2x256xf32> to vector<2x256xf32>
    %13 = vector.shape_cast %10 : vector<2x256xf32> to vector<1x2x256xf32>
    tpu.vector_store %arg5[%c0_9, %c0_10, %c0_11], %13 {strides = array<i32>} : memref<1x2x256xf32, #tpu.memory_space<vmem>>, vector<1x2x256xf32>,
    return
  }
  func.func @transform_0(%arg0: i32) -> (i32, i32) {
    %c0_i32 = arith.constant 0 : i32
    %c0_i32_0 = arith.constant 0 : i32
    %c0_i32_1 = arith.constant 0 : i32
    return %c0_i32, %c0_i32_0 : i32, i32
  }
  func.func @transform_1(%arg0: i32) -> (i32, i32) {
    %c0_i32 = arith.constant 0 : i32
    %c0_i32_0 = arith.constant 0 : i32
    return %c0_i32, %arg0 : i32, i32
  }
  func.func @transform_2(%arg0: i32) -> (i32, i32) {
    %c0_i32 = arith.constant 0 : i32
    %c0_i32_0 = arith.constant 0 : i32
    return %c0_i32, %arg0 : i32, i32
  }
  func.func @transform_3(%arg0: i32) -> (i32, i32) {
    %c0_i32 = arith.constant 0 : i32
    %c0_i32_0 = arith.constant 0 : i32
    return %arg0, %c0_i32 : i32, i32
  }
  func.func @transform_4(%arg0: i32) -> (i32, i32, i32) {
    %c0_i32 = arith.constant 0 : i32
    %c0_i32_0 = arith.constant 0 : i32
    %c0_i32_1 = arith.constant 0 : i32
    return %arg0, %c0_i32, %c0_i32_0 : i32, i32, i32
  }
}

module attributes {stable_mosaic.version = 11 : i64} {
  func.func @_conv_matmul_kernel(%arg0: memref<50x512xf32, #tpu.memory_space<vmem>>, %arg1: memref<512x64xf32, #tpu.memory_space<vmem>>, %arg2: memref<3x64xf32, #tpu.memory_space<vmem>>, %arg3: memref<50x64xbf16, #tpu.memory_space<vmem>>) attributes {dimension_semantics = [], scalar_prefetch = 0 : i64, scratch_operands = 0 : i64, tpu.core_type = #tpu.core_type<tc>} {
    %c0 = arith.constant 0 : index
    %c0_0 = arith.constant 0 : index
    %0 = vector.load %arg2[%c0, %c0_0] : memref<3x64xf32, #tpu.memory_space<vmem>>, vector<3x64xf32>
    %c0_1 = arith.constant 0 : index
    %c0_2 = arith.constant 0 : index
    %1 = vector.load %arg0[%c0_1, %c0_2] : memref<50x512xf32, #tpu.memory_space<vmem>>, vector<50x512xf32>
    %c0_3 = arith.constant 0 : index
    %c0_4 = arith.constant 0 : index
    %2 = vector.load %arg1[%c0_3, %c0_4] : memref<512x64xf32, #tpu.memory_space<vmem>>, vector<512x64xf32>
    %cst = arith.constant dense<0.000000e+00> : vector<50x64xf32>
    %3 = tpu.matmul %1, %2, %cst {dimension_numbers = #tpu.dot_dimension_numbers<[1], [0], [0], [1], [0, 0, 1, 1], [], []>} : vector<50x512xf32>, vector<512x64xf32>, vector<50x64xf32> -> vector<50x64xf32>
    %4 = vector.extract_strided_slice %0 {offsets = [0, 0], sizes = [1, 64], strides = [1, 1]} : vector<3x64xf32> to vector<1x64xf32>
    %5 = vector.broadcast %4 : vector<1x64xf32> to vector<50x64xf32>
    %6 = arith.addf %3, %5 : vector<50x64xf32>
    %cst_5 = arith.constant 0.000000e+00 : f32
    %7 = vector.broadcast %cst_5 : f32 to vector<50x64xf32>
    %8 = arith.maximumf %6, %7 : vector<50x64xf32>
    %9 = vector.extract_strided_slice %0 {offsets = [1, 0], sizes = [1, 64], strides = [1, 1]} : vector<3x64xf32> to vector<1x64xf32>
    %10 = vector.broadcast %9 : vector<1x64xf32> to vector<50x64xf32>
    %11 = arith.mulf %8, %10 : vector<50x64xf32>
    %12 = vector.extract_strided_slice %0 {offsets = [2, 0], sizes = [1, 64], strides = [1, 1]} : vector<3x64xf32> to vector<1x64xf32>
    %13 = vector.broadcast %12 : vector<1x64xf32> to vector<50x64xf32>
    %14 = arith.addf %11, %13 : vector<50x64xf32>
    %15 = arith.truncf %14 : vector<50x64xf32> to vector<50x64xbf16>
    %c0_6 = arith.constant 0 : index
    %c0_7 = arith.constant 0 : index
    %16 = vector.load %arg3[%c0_6, %c0_7] : memref<50x64xbf16, #tpu.memory_space<vmem>>, vector<50x64xbf16>
    tpu.vector_store %arg3[%c0_6, %c0_7], %15 {strides = array<i32>} : memref<50x64xbf16, #tpu.memory_space<vmem>>, vector<50x64xbf16>,
    return
  }
}

</mosaic_0001>

<bundles_post_ra>
// kernel: network_forward.3
= control target key start
LH: loop header
LB: loop body
LE: loop exit
PB: predicated region body
PF: predicated region fallthrough
CT: control target
= control target key end

     0   :  { %v693_v0 = vmov 0.0   ;;  %vm109_vm0 = vcmask 130048   ;;  %vm579_vm1 = vcmask 261120   ;;  %s1317_s1 = inlined_call_operand.vmem [shape: f32[144,32], index: 1, kind: input, shape index: {}]   ;;  %s1318_s0 = inlined_call_operand.vmem [shape: f32[288,144], index: 0, kind: input, shape index: {}]   ;;  %s1319_s2 = inlined_call_operand.vmem [shape: f32[3,32], index: 2, kind: input, shape index: {}]   ;;  %s1320_s3 = inlined_call_operand.vmem [shape: f32[288,32], index: 3, kind: output, shape index: {}]  }
   0x1   :  { %218 = vmatprep.subr.mxu0 %v693_v0  ;;  %656 = vmatprep.subr.mxu1 %v693_v0  ;;  %v102_v1 = vld [vmem:[%s1317_s1 + $0x78] sm:$0xff]  ;;  %v101_v2 = vld [vmem:[%s1317_s1 + $0x70] sm:$0xff]  ;;  %v100_v3 = vld [vmem:[%s1317_s1 + $0x68] sm:$0xff] }
   0x2   :  { %219 = vmatpush1.msra.mxu0 %v102_v1  ;;  %674 = vmatpush1.msra.mxu1 %v102_v1  ;;  %v99_v4 = vld [vmem:[%s1317_s1 + $0x60] sm:$0xff]  ;;  %v98_v5 = vld [vmem:[%s1317_s1 + $0x58] sm:$0xff]  ;;  %v97_v6 = vld [vmem:[%s1317_s1 + $0x50] sm:$0xff] }
   0x3   :  { %220 = vmatprep.subr.mxu0 %v693_v0  ;;  %657 = vmatprep.subr.mxu1 %v693_v0  ;;  %v96_v7 = vld [vmem:[%s1317_s1 + $0x48] sm:$0xff]  ;;  %v95_v8 = vld [vmem:[%s1317_s1 + $0x40] sm:$0xff]  ;;  %v94_v9 = vld [vmem:[%s1317_s1 + $0x38] sm:$0xff] }
   0x4   :  { %221 = vmatpush1.msra.mxu0 %v101_v2  ;;  %675 = vmatpush1.msra.mxu1 %v101_v2  ;;  %v93_v10 = vld [vmem:[%s1317_s1 + $0x30] sm:$0xff]  ;;  %v92_v11 = vld [vmem:[%s1317_s1 + $0x28] sm:$0xff]  ;;  %v91_v12 = vld [vmem:[%s1317_s1 + $0x20] sm:$0xff] }
   0x5   :  { %222 = vmatprep.subr.mxu0 %v693_v0  ;;  %658 = vmatprep.subr.mxu1 %v693_v0  ;;  %v90_v13 = vld [vmem:[%s1317_s1 + $0x18] sm:$0xff]  ;;  %v89_v14 = vld [vmem:[%s1317_s1 + $0x10] sm:$0xff]  ;;  %v88_v15 = vld [vmem:[%s1317_s1 + $0x8] sm:$0xff] }
   0x6   :  { %223 = vmatpush1.msra.mxu0 %v100_v3  ;;  %676 = vmatpush1.msra.mxu1 %v100_v3  ;;  %v87_v16 = vld [vmem:[%s1317_s1] sm:$0xff]  ;;  %v104_v17 = vld [vmem:[%s1317_s1 + $0x88] sm:$0xff]  ;;  %v18_v23 = vld [vmem:[%s1318_s0 + $0x18] sm:$0xff] }
   0x7   :  { %224 = vmatprep.subr.mxu0 %v693_v0  ;;  %659 = vmatprep.subr.mxu1 %v693_v0  ;;  %v103_v18 = vld [vmem:[%s1317_s1 + $0x80] sm:$0xff]  ;;  %v16_v19 = vld [vmem:[%s1318_s0 + $0x8] sm:$0xff]  ;;  %v54_v24 = vld [vmem:[%s1318_s0 + $0x138] sm:$0xff] }
   0x8   :  { %225 = vmatpush1.msra.mxu0 %v99_v4  ;;  %677 = vmatpush1.msra.mxu1 %v99_v4  ;;  %v52_v20 = vld [vmem:[%s1318_s0 + $0x128] sm:$0xff]  ;;  %v15_v21 = vld [vmem:[%s1318_s0] sm:$0xff]  ;;  %v17_v25 = vld [vmem:[%s1318_s0 + $0x10] sm:$0xff] }
   0x9   :  { %226 = vmatprep.subr.mxu0 %v693_v0  ;;  %660 = vmatprep.subr.mxu1 %v693_v0  ;;  %v51_v22 = vld [vmem:[%s1318_s0 + $0x120] sm:$0xff]  ;;  %v53_v26 = vld [vmem:[%s1318_s0 + $0x130] sm:$0xff]  ;;  %v20_v27 = vld [vmem:[%s1318_s0 + $0x28] sm:$0xff] }
   0xa   :  { %227 = vmatpush1.msra.mxu0 %v98_v5  ;;  %678 = vmatpush1.msra.mxu1 %v98_v5  ;;  %v56_v28 = vld [vmem:[%s1318_s0 + $0x148] sm:$0xff]  ;;  %v19_v29 = vld [vmem:[%s1318_s0 + $0x20] sm:$0xff]  ;;  %v22_v31 = vld [vmem:[%s1318_s0 + $0x38] sm:$0xff] }
   0xb   :  { %228 = vmatprep.subr.mxu0 %v693_v0  ;;  %661 = vmatprep.subr.mxu1 %v693_v0  ;;  %v55_v30 = vld [vmem:[%s1318_s0 + $0x140] sm:$0xff]  ;;  %v58_v32 = vld [vmem:[%s1318_s0 + $0x158] sm:$0xff]  ;;  %v21_v33 = vld [vmem:[%s1318_s0 + $0x30] sm:$0xff] }
   0xc   :  { %229 = vmatpush1.msra.mxu0 %v97_v6  ;;  %679 = vmatpush1.msra.mxu1 %v97_v6  ;;  %v57_v34 = vld [vmem:[%s1318_s0 + $0x150] sm:$0xff]  ;;  %v24_v35 = vld [vmem:[%s1318_s0 + $0x48] sm:$0xff]  ;;  %v23_v37 = vld [vmem:[%s1318_s0 + $0x40] sm:$0xff] }
   0xd   :  { %230 = vmatprep.subr.mxu0 %v693_v0  ;;  %662 = vmatprep.subr.mxu1 %v693_v0  ;;  %v60_v36 = vld [vmem:[%s1318_s0 + $0x168] sm:$0xff]  ;;  %v59_v38 = vld [vmem:[%s1318_s0 + $0x160] sm:$0xff]  ;;  %v26_v39 = vld [vmem:[%s1318_s0 + $0x58] sm:$0xff] }
   0xe   :  { %231 = vmatpush1.msra.mxu0 %v96_v7  ;;  %680 = vmatpush1.msra.mxu1 %v96_v7  ;;  %v62_v40 = vld [vmem:[%s1318_s0 + $0x178] sm:$0xff]  ;;  %v25_v41 = vld [vmem:[%s1318_s0 + $0x50] sm:$0xff]  ;;  %v28_v43 = vld [vmem:[%s1318_s0 + $0x68] sm:$0xff] }
   0xf   :  { %232 = vmatprep.subr.mxu0 %v693_v0  ;;  %663 = vmatprep.subr.mxu1 %v693_v0  ;;  %v61_v42 = vld [vmem:[%s1318_s0 + $0x170] sm:$0xff]  ;;  %v64_v44 = vld [vmem:[%s1318_s0 + $0x188] sm:$0xff]  ;;  %v27_v45 = vld [vmem:[%s1318_s0 + $0x60] sm:$0xff] }
  0x10   :  { %233 = vmatpush1.msra.mxu0 %v95_v8  ;;  %681 = vmatpush1.msra.mxu1 %v95_v8  ;;  %v63_v46 = vld [vmem:[%s1318_s0 + $0x180] sm:$0xff]  ;;  %v30_v47 = vld [vmem:[%s1318_s0 + $0x78] sm:$0xff]  ;;  %v29_v49 = vld [vmem:[%s1318_s0 + $0x70] sm:$0xff] }
  0x11   :  { %234 = vmatprep.subr.mxu0 %v693_v0  ;;  %664 = vmatprep.subr.mxu1 %v693_v0  ;;  %v66_v48 = vld [vmem:[%s1318_s0 + $0x198] sm:$0xff]  ;;  %v65_v50 = vld [vmem:[%s1318_s0 + $0x190] sm:$0xff]  ;;  %v32_v51 = vld [vmem:[%s1318_s0 + $0x88] sm:$0xff] }
  0x12   :  { %235 = vmatpush1.msra.mxu0 %v94_v9  ;;  %682 = vmatpush1.msra.mxu1 %v94_v9  ;;  %v68_v52 = vld [vmem:[%s1318_s0 + $0x1a8] sm:$0xff]  ;;  %v31_v53 = vld [vmem:[%s1318_s0 + $0x80] sm:$0xff]  ;;  %v34_v55 = vld [vmem:[%s1318_s0 + $0x98] sm:$0xff] }
  0x13   :  { %236 = vmatprep.subr.mxu0 %v693_v0  ;;  %665 = vmatprep.subr.mxu1 %v693_v0  ;;  %v67_v54 = vld [vmem:[%s1318_s0 + $0x1a0] sm:$0xff]  ;;  %v70_v56 = vld [vmem:[%s1318_s0 + $0x1b8] sm:$0xff]  ;;  %v33_v57 = vld [vmem:[%s1318_s0 + $0x90] sm:$0xff] }
  0x14   :  { %237 = vmatpush1.msra.mxu0 %v93_v10  ;;  %683 = vmatpush1.msra.mxu1 %v93_v10  ;;  %v69_v58 = vld [vmem:[%s1318_s0 + $0x1b0] sm:$0xff]  ;;  %v36_v59 = vld [vmem:[%s1318_s0 + $0xa8] sm:$0xff]  ;;  %v35_v61 = vld [vmem:[%s1318_s0 + $0xa0] sm:$0xff] }
  0x15   :  { %238 = vmatprep.subr.mxu0 %v693_v0  ;;  %666 = vmatprep.subr.mxu1 %v693_v0  ;;  %v72_v60 = vld [vmem:[%s1318_s0 + $0x1c8] sm:$0xff]  ;;  %v71_v62 = vld [vmem:[%s1318_s0 + $0x1c0] sm:$0xff]  ;;  %v38_v63 = vld [vmem:[%s1318_s0 + $0xb8] sm:$0xff] }
  0x16   :  { %239 = vmatpush1.msra.mxu0 %v92_v11  ;;  %684 = vmatpush1.msra.mxu1 %v92_v11  ;;  %v37_v1 = vld [vmem:[%s1318_s0 + $0xb0] sm:$0xff]  ;;  %v40_v3 = vld [vmem:[%s1318_s0 + $0xc8] sm:$0xff]  ;;  %v39_v5 = vld [vmem:[%s1318_s0 + $0xc0] sm:$0xff] }
  0x17   :  { %240 = vmatprep.subr.mxu0 %v693_v0  ;;  %667 = vmatprep.subr.mxu1 %v693_v0  ;;  %v73_v2 = vld [vmem:[%s1318_s0 + $0x1d0] sm:$0xff]  ;;  %v76_v4 = vld [vmem:[%s1318_s0 + $0x1e8] sm:$0xff]  ;;  %v75_v6 = vld [vmem:[%s1318_s0 + $0x1e0] sm:$0xff] }
  0x18   :  { %241 = vmatpush1.msra.mxu0 %v91_v12  ;;  %685 = vmatpush1.msra.mxu1 %v91_v12  ;;  %v42_v7 = vld [vmem:[%s1318_s0 + $0xd8] sm:$0xff]  ;;  %v41_v9 = vld [vmem:[%s1318_s0 + $0xd0] sm:$0xff]  ;;  %v44_v11 = vld [vmem:[%s1318_s0 + $0xe8] sm:$0xff] }
  0x19   :  { %242 = vmatprep.subr.mxu0 %v693_v0  ;;  %668 = vmatprep.subr.mxu1 %v693_v0  ;;  %v78_v8 = vld [vmem:[%s1318_s0 + $0x1f8] sm:$0xff]  ;;  %v77_v10 = vld [vmem:[%s1318_s0 + $0x1f0] sm:$0xff]  ;;  %v80_v12 = vld [vmem:[%s1318_s0 + $0x208] sm:$0xff] }
  0x1a   :  { %243 = vmatpush1.msra.mxu0 %v90_v13  ;;  %686 = vmatpush1.msra.mxu1 %v90_v13  ;;  %v43_v13 = vld [vmem:[%s1318_s0 + $0xe0] sm:$0xff] }
  0x1b   :  { %244 = vmatprep.subr.mxu0 %v693_v0  ;;  %669 = vmatprep.subr.mxu1 %v693_v0 }
  0x1c   :  { %245 = vmatpush1.msra.mxu0 %v89_v14  ;;  %687 = vmatpush1.msra.mxu1 %v89_v14  ;;  %v79_v14 = vld [vmem:[%s1318_s0 + $0x200] sm:$0xff] }
  0x1d   :  { %246 = vmatprep.subr.mxu0 %v693_v0  ;;  %670 = vmatprep.subr.mxu1 %v693_v0 }
  0x1e   :  { %247 = vmatpush1.msra.mxu0 %v88_v15  ;;  %688 = vmatpush1.msra.mxu1 %v88_v15  ;;  %v46_v15 = vld [vmem:[%s1318_s0 + $0xf8] sm:$0xff] }
  0x1f   :  { %248 = vmatprep.subr.mxu0 %v693_v0  ;;  %671 = vmatprep.subr.mxu1 %v693_v0 }
  0x20   :  { %249 = vmatpush1.msra.mxu0 %v87_v16  ;;  %689 = vmatpush1.msra.mxu1 %v87_v16  ;;  %v82_v16 = vld [vmem:[%s1318_s0 + $0x218] sm:$0xff] }
  0x21   :  { %278 = vmatprep.subr.mxu0 %v693_v0  ;;  %672 = vmatprep.subr.mxu1 %v693_v0 }
  0x22   :  { %279 = vmatpush2.msra.mxu0 %v104_v17  ;;  %690 = vmatpush2.msra.mxu1 %v104_v17  ;;  %v45_v17 = vld [vmem:[%s1318_s0 + $0xf0] sm:$0xff] }
  0x23   :  { %280 = vmatprep.subr.mxu0 %v693_v0  ;;  %673 = vmatprep.subr.mxu1 %v693_v0  ;;  %v74_v0 = vld [vmem:[%s1318_s0 + $0x1d8] sm:$0xff] }
  0x24   :  { %281 = vmatpush2.msra.mxu0 %v103_v18  ;;  %691 = vmatpush2.msra.mxu1 %v103_v18  ;;  %v81_v18 = vld [vmem:[%s1318_s0 + $0x210] sm:$0xff] }
  0x25   :  { %620 = vmatprep.mubr.msk.f32.mxu0 %vm109_vm0, %v16_v19  ;;  %638 = vmatprep.mubr.msk.f32.mxu1 %vm109_vm0, %v52_v20  ;;  %v48_v19 = vld [vmem:[%s1318_s0 + $0x108] sm:$0xff] }
  0x26   :  { %283 = vmatmul.mubr.f32.vlgmr.msra.gmra.mxu0 %v15_v21  ;;  %373 = vmatmul.mubr.f32.vlgmr.msra.gmra.mxu1 %v51_v22  ;;  %v84_v20 = vld [vmem:[%s1318_s0 + $0x228] sm:$0xff]  ;;  %v47_v21 = vld [vmem:[%s1318_s0 + $0x100] sm:$0xff] }
  0x27   :  { %621 = vmatprep.mubr.msk.f32.mxu0 %vm109_vm0, %v18_v23  ;;  %639 = vmatprep.mubr.msk.f32.mxu1 %vm109_vm0, %v54_v24  ;;  %v83_v22 = vld [vmem:[%s1318_s0 + $0x220] sm:$0xff]  ;;  %v50_v23 = vld [vmem:[%s1318_s0 + $0x118] sm:$0xff] }
  0x28   :  { %v86_v24 = vld [vmem:[%s1318_s0 + $0x238] sm:$0xff] }
  0x2a   :  { %288 = vmatmul.mubr.f32.gmra.mxu0 %v17_v25  ;;  %378 = vmatmul.mubr.f32.gmra.mxu1 %v53_v26  ;;  %v49_v25 = vld [vmem:[%s1318_s0 + $0x110] sm:$0xff] }
  0x2b   :  { %622 = vmatprep.mubr.msk.f32.mxu0 %vm109_vm0, %v20_v27  ;;  %640 = vmatprep.mubr.msk.f32.mxu1 %vm109_vm0, %v56_v28  ;;  %v85_v26 = vld [vmem:[%s1318_s0 + $0x230] sm:$0xff]  ;;  %v105_v27 = vlaneseq }
  0x2d   :  { %v106_v28 = vshrl.u32 %v105_v27, 7 }
  0x2e   :  { %293 = vmatmul.mubr.f32.gmra.mxu0 %v19_v29  ;;  %383 = vmatmul.mubr.f32.gmra.mxu1 %v55_v30  ;;  %v14_v30 = vld [vmem:[%s1319_s2] sm:$0x7] }
  0x2f   :  { %623 = vmatprep.mubr.msk.f32.mxu0 %vm109_vm0, %v22_v31  ;;  %641 = vmatprep.mubr.msk.f32.mxu1 %vm109_vm0, %v58_v32  ;;  %v107_v29 = vsub.s32 0, %v106_v28  ;;  %v501_v32 = vsub.s32 1, %v106_v28 }
  0x31   :  { %v1059_v31 = vrot.slane %v14_v30, %v107_v29 }
  0x32   :  { %298 = vmatmul.mubr.f32.gmra.mxu0 %v21_v33  ;;  %388 = vmatmul.mubr.f32.gmra.mxu1 %v57_v34  ;;  %v541_v33 = vsub.s32 2, %v106_v28 }
  0x33   :  { %624 = vmatprep.mubr.msk.f32.mxu0 %vm109_vm0, %v24_v35  ;;  %642 = vmatprep.mubr.msk.f32.mxu1 %vm109_vm0, %v60_v36 }
  0x36   :  { %303 = vmatmul.mubr.f32.gmra.mxu0 %v23_v37  ;;  %393 = vmatmul.mubr.f32.gmra.mxu1 %v59_v38  ;;  %v1062_v37 = vrot.slane %v14_v30, %v501_v32 }
  0x37   :  { %625 = vmatprep.mubr.msk.f32.mxu0 %vm109_vm0, %v26_v39  ;;  %643 = vmatprep.mubr.msk.f32.mxu1 %vm109_vm0, %v62_v40 }
  0x3a   :  { %308 = vmatmul.mubr.f32.gmra.mxu0 %v25_v41  ;;  %398 = vmatmul.mubr.f32.gmra.mxu1 %v61_v42  ;;  %v1065_v42 = vrot.slane %v14_v30, %v541_v33 }
  0x3b   :  { %626 = vmatprep.mubr.msk.f32.mxu0 %vm109_vm0, %v28_v43  ;;  %644 = vmatprep.mubr.msk.f32.mxu1 %vm109_vm0, %v64_v44 }
  0x3e   :  { %313 = vmatmul.mubr.f32.gmra.mxu0 %v27_v45  ;;  %403 = vmatmul.mubr.f32.gmra.mxu1 %v63_v46 }
  0x3f   :  { %627 = vmatprep.mubr.msk.f32.mxu0 %vm109_vm0, %v30_v47  ;;  %645 = vmatprep.mubr.msk.f32.mxu1 %vm109_vm0, %v66_v48 }
  0x42   :  { %318 = vmatmul.mubr.f32.gmra.mxu0 %v29_v49  ;;  %408 = vmatmul.mubr.f32.gmra.mxu1 %v65_v50 }
  0x43   :  { %628 = vmatprep.mubr.msk.f32.mxu0 %vm109_vm0, %v32_v51  ;;  %646 = vmatprep.mubr.msk.f32.mxu1 %vm109_vm0, %v68_v52 }
  0x46   :  { %323 = vmatmul.mubr.f32.gmra.mxu0 %v31_v53  ;;  %413 = vmatmul.mubr.f32.gmra.mxu1 %v67_v54 }
  0x47   :  { %629 = vmatprep.mubr.msk.f32.mxu0 %vm109_vm0, %v34_v55  ;;  %647 = vmatprep.mubr.msk.f32.mxu1 %vm109_vm0, %v70_v56 }
  0x4a   :  { %328 = vmatmul.mubr.f32.gmra.mxu0 %v33_v57  ;;  %418 = vmatmul.mubr.f32.gmra.mxu1 %v69_v58 }
  0x4b   :  { %630 = vmatprep.mubr.msk.f32.mxu0 %vm109_vm0, %v36_v59  ;;  %648 = vmatprep.mubr.msk.f32.mxu1 %vm109_vm0, %v72_v60 }
  0x4e   :  { %333 = vmatmul.mubr.f32.gmra.mxu0 %v35_v61  ;;  %423 = vmatmul.mubr.f32.gmra.mxu1 %v71_v62 }
  0x4f   :  { %631 = vmatprep.mubr.msk.f32.mxu0 %vm109_vm0, %v38_v63  ;;  %649 = vmatprep.mubr.msk.f32.mxu1 %vm109_vm0, %v74_v0 }
  0x52   :  { %338 = vmatmul.mubr.f32.gmra.mxu0 %v37_v1  ;;  %428 = vmatmul.mubr.f32.gmra.mxu1 %v73_v2 }
  0x53   :  { %632 = vmatprep.mubr.msk.f32.mxu0 %vm109_vm0, %v40_v3  ;;  %650 = vmatprep.mubr.msk.f32.mxu1 %vm109_vm0, %v76_v4 }
  0x56   :  { %343 = vmatmul.mubr.f32.gmra.mxu0 %v39_v5  ;;  %433 = vmatmul.mubr.f32.gmra.mxu1 %v75_v6 }
  0x57   :  { %633 = vmatprep.mubr.msk.f32.mxu0 %vm109_vm0, %v42_v7  ;;  %651 = vmatprep.mubr.msk.f32.mxu1 %vm109_vm0, %v78_v8 }
  0x5a   :  { %348 = vmatmul.mubr.f32.gmra.mxu0 %v41_v9  ;;  %438 = vmatmul.mubr.f32.gmra.mxu1 %v77_v10 }
  0x5b   :  { %634 = vmatprep.mubr.msk.f32.mxu0 %vm109_vm0, %v44_v11  ;;  %652 = vmatprep.mubr.msk.f32.mxu1 %vm109_vm0, %v80_v12 }
  0x5e   :  { %353 = vmatmul.mubr.f32.gmra.mxu0 %v43_v13  ;;  %443 = vmatmul.mubr.f32.gmra.mxu1 %v79_v14 }
  0x5f   :  { %635 = vmatprep.mubr.msk.f32.mxu0 %vm109_vm0, %v46_v15  ;;  %653 = vmatprep.mubr.msk.f32.mxu1 %vm109_vm0, %v82_v16 }
  0x62   :  { %358 = vmatmul.mubr.f32.gmra.mxu0 %v45_v17  ;;  %448 = vmatmul.mubr.f32.gmra.mxu1 %v81_v18 }
  0x63   :  { %636 = vmatprep.mubr.msk.f32.mxu0 %vm109_vm0, %v48_v19  ;;  %654 = vmatprep.mubr.msk.f32.mxu1 %vm109_vm0, %v84_v20 }
  0x66   :  { %363 = vmatmul.mubr.f32.gmra.mxu0 %v47_v21  ;;  %453 = vmatmul.mubr.f32.gmra.mxu1 %v83_v22 }
  0x67   :  { %637 = vmatprep.mubr.msk.f32.mxu0 %vm109_vm0, %v50_v23  ;;  %655 = vmatprep.mubr.msk.f32.mxu1 %vm109_vm0, %v86_v24 }
  0x6a   :  { %368 = vmatmul.mubr.f32.gmra.mxu0 %v49_v25  ;;  %458 = vmatmul.mubr.f32.gmra.mxu1 %v85_v26 }
  0xe6   :  { %v284_v34 = vpop.f32.mrf.mxu0  ;;  %v374_v35 = vpop.f32.mrf.mxu1 }
  0xe7   :  { %v285_v36 = vadd.f32 %v284_v34, %v1059_v31  ;;  %v375_v38 = vadd.f32 %v374_v35, %v1059_v31 }
  0xe8   :  { %v286_v39 = vpop.f32.mrf.mxu0  ;;  %v376_v40 = vpop.f32.mrf.mxu1 }
  0xe9   :  { %v463_v41 = vmax.f32 %v285_v36, 0.0  ;;  %v481_v43 = vmax.f32 %v375_v38, 0.0 }
  0xea   :  { %v289_v44 = vpop.f32.mrf.mxu0  ;;  %v379_v45 = vpop.f32.mrf.mxu1 }
  0xeb   :  { %v503_v46 = vmul.f32 %v1062_v37, %v463_v41  ;;  %v521_v47 = vmul.f32 %v1062_v37, %v481_v43  ;;  %v290_v48 = vadd.f32 %v289_v44, %v1059_v31  ;;  %v380_v49 = vadd.f32 %v379_v45, %v1059_v31 }
  0xec   :  { %v291_v50 = vpop.f32.mrf.mxu0  ;;  %v381_v51 = vpop.f32.mrf.mxu1 }
  0xed   :  { %v543_v52 = vadd.f32 %v1065_v42, %v503_v46  ;;  %v561_v53 = vadd.f32 %v1065_v42, %v521_v47  ;;  %v464_v54 = vmax.f32 %v290_v48, 0.0  ;;  %v482_v55 = vmax.f32 %v380_v49, 0.0 }
  0xee   :  { %v294_v56 = vpop.f32.mrf.mxu0  ;;  %v384_v57 = vpop.f32.mrf.mxu1 }
  0xef   :  { %580 = vst.msk [vmem:[%s1320_s3] sm:$0xff] %vm579_vm1, %v543_v52  ;;  %598 = vst.msk [vmem:[%s1320_s3 + $0x90] sm:$0xff] %vm579_vm1, %v561_v53  ;;  %v504_v58 = vmul.f32 %v1062_v37, %v464_v54  ;;  %v522_v59 = vmul.f32 %v1062_v37, %v482_v55  ;;  %v295_v60 = vadd.f32 %v294_v56, %v1059_v31 }
  0xf0   :  { %v385_v61 = vadd.f32 %v384_v57, %v1059_v31  ;;  %v296_v62 = vpop.f32.mrf.mxu0  ;;  %v386_v63 = vpop.f32.mrf.mxu1 }
  0xf1   :  { %v544_v0 = vadd.f32 %v1065_v42, %v504_v58  ;;  %v562_v1 = vadd.f32 %v1065_v42, %v522_v59  ;;  %v465_v2 = vmax.f32 %v295_v60, 0.0 }
  0xf2   :  { %v483_v3 = vmax.f32 %v385_v61, 0.0  ;;  %v299_v4 = vpop.f32.mrf.mxu0  ;;  %v389_v5 = vpop.f32.mrf.mxu1 }
  0xf3   :  { %581 = vst.msk [vmem:[%s1320_s3 + $0x8] sm:$0xff] %vm579_vm1, %v544_v0  ;;  %599 = vst.msk [vmem:[%s1320_s3 + $0x98] sm:$0xff] %vm579_vm1, %v562_v1  ;;  %v505_v6 = vmul.f32 %v1062_v37, %v465_v2  ;;  %v300_v8 = vadd.f32 %v299_v4, %v1059_v31  ;;  %v390_v9 = vadd.f32 %v389_v5, %v1059_v31 }
  0xf4   :  { %v523_v7 = vmul.f32 %v1062_v37, %v483_v3  ;;  %v301_v10 = vpop.f32.mrf.mxu0  ;;  %v391_v11 = vpop.f32.mrf.mxu1 }
  0xf5   :  { %v545_v12 = vadd.f32 %v1065_v42, %v505_v6  ;;  %v466_v14 = vmax.f32 %v300_v8, 0.0  ;;  %v484_v15 = vmax.f32 %v390_v9, 0.0 }
  0xf6   :  { %v563_v13 = vadd.f32 %v1065_v42, %v523_v7  ;;  %v304_v16 = vpop.f32.mrf.mxu0  ;;  %v394_v17 = vpop.f32.mrf.mxu1 }
  0xf7   :  { %582 = vst.msk [vmem:[%s1320_s3 + $0x10] sm:$0xff] %vm579_vm1, %v545_v12  ;;  %v506_v18 = vmul.f32 %v1062_v37, %v466_v14  ;;  %v524_v19 = vmul.f32 %v1062_v37, %v484_v15  ;;  %v305_v20 = vadd.f32 %v304_v16, %v1059_v31  ;;  %v395_v21 = vadd.f32 %v394_v17, %v1059_v31 }
  0xf8   :  { %600 = vst.msk [vmem:[%s1320_s3 + $0xa0] sm:$0xff] %vm579_vm1, %v563_v13  ;;  %v306_v22 = vpop.f32.mrf.mxu0  ;;  %v396_v23 = vpop.f32.mrf.mxu1 }
  0xf9   :  { %v546_v24 = vadd.f32 %v1065_v42, %v506_v18  ;;  %v564_v25 = vadd.f32 %v1065_v42, %v524_v19  ;;  %v467_v26 = vmax.f32 %v305_v20, 0.0  ;;  %v485_v27 = vmax.f32 %v395_v21, 0.0 }
  0xfa   :  { %v309_v28 = vpop.f32.mrf.mxu0  ;;  %v399_v29 = vpop.f32.mrf.mxu1 }
  0xfb   :  { %583 = vst.msk [vmem:[%s1320_s3 + $0x18] sm:$0xff] %vm579_vm1, %v546_v24  ;;  %601 = vst.msk [vmem:[%s1320_s3 + $0xa8] sm:$0xff] %vm579_vm1, %v564_v25  ;;  %v507_v30 = vmul.f32 %v1062_v37, %v467_v26  ;;  %v525_v32 = vmul.f32 %v1062_v37, %v485_v27  ;;  %v310_v33 = vadd.f32 %v309_v28, %v1059_v31 }
  0xfc   :  { %v400_v34 = vadd.f32 %v399_v29, %v1059_v31  ;;  %v311_v35 = vpop.f32.mrf.mxu0  ;;  %v401_v36 = vpop.f32.mrf.mxu1 }
  0xfd   :  { %v547_v38 = vadd.f32 %v1065_v42, %v507_v30  ;;  %v565_v39 = vadd.f32 %v1065_v42, %v525_v32  ;;  %v468_v40 = vmax.f32 %v310_v33, 0.0 }
  0xfe   :  { %v486_v41 = vmax.f32 %v400_v34, 0.0  ;;  %v314_v43 = vpop.f32.mrf.mxu0  ;;  %v404_v44 = vpop.f32.mrf.mxu1 }
  0xff   :  { %584 = vst.msk [vmem:[%s1320_s3 + $0x20] sm:$0xff] %vm579_vm1, %v547_v38  ;;  %602 = vst.msk [vmem:[%s1320_s3 + $0xb0] sm:$0xff] %vm579_vm1, %v565_v39  ;;  %v508_v45 = vmul.f32 %v1062_v37, %v468_v40  ;;  %v315_v47 = vadd.f32 %v314_v43, %v1059_v31  ;;  %v405_v48 = vadd.f32 %v404_v44, %v1059_v31 }
 0x100   :  { %v526_v46 = vmul.f32 %v1062_v37, %v486_v41  ;;  %v316_v49 = vpop.f32.mrf.mxu0  ;;  %v406_v50 = vpop.f32.mrf.mxu1 }
 0x101   :  { %v548_v51 = vadd.f32 %v1065_v42, %v508_v45  ;;  %v469_v53 = vmax.f32 %v315_v47, 0.0  ;;  %v487_v54 = vmax.f32 %v405_v48, 0.0 }
 0x102   :  { %v566_v52 = vadd.f32 %v1065_v42, %v526_v46  ;;  %v319_v55 = vpop.f32.mrf.mxu0  ;;  %v409_v56 = vpop.f32.mrf.mxu1 }
 0x103   :  { %585 = vst.msk [vmem:[%s1320_s3 + $0x28] sm:$0xff] %vm579_vm1, %v548_v51  ;;  %v509_v57 = vmul.f32 %v1062_v37, %v469_v53  ;;  %v527_v58 = vmul.f32 %v1062_v37, %v487_v54  ;;  %v320_v59 = vadd.f32 %v319_v55, %v1059_v31  ;;  %v410_v60 = vadd.f32 %v409_v56, %v1059_v31 }
 0x104   :  { %603 = vst.msk [vmem:[%s1320_s3 + $0xb8] sm:$0xff] %vm579_vm1, %v566_v52  ;;  %v321_v61 = vpop.f32.mrf.mxu0  ;;  %v411_v62 = vpop.f32.mrf.mxu1 }
 0x105   :  { %v549_v63 = vadd.f32 %v1065_v42, %v509_v57  ;;  %v567_v0 = vadd.f32 %v1065_v42, %v527_v58  ;;  %v470_v1 = vmax.f32 %v320_v59, 0.0  ;;  %v488_v2 = vmax.f32 %v410_v60, 0.0 }
 0x106   :  { %v324_v3 = vpop.f32.mrf.mxu0  ;;  %v414_v4 = vpop.f32.mrf.mxu1 }
 0x107   :  { %586 = vst.msk [vmem:[%s1320_s3 + $0x30] sm:$0xff] %vm579_vm1, %v549_v63  ;;  %604 = vst.msk [vmem:[%s1320_s3 + $0xc0] sm:$0xff] %vm579_vm1, %v567_v0  ;;  %v510_v5 = vmul.f32 %v1062_v37, %v470_v1  ;;  %v528_v6 = vmul.f32 %v1062_v37, %v488_v2  ;;  %v325_v7 = vadd.f32 %v324_v3, %v1059_v31 }
 0x108   :  { %v415_v8 = vadd.f32 %v414_v4, %v1059_v31  ;;  %v326_v9 = vpop.f32.mrf.mxu0  ;;  %v416_v10 = vpop.f32.mrf.mxu1 }
 0x109   :  { %v550_v11 = vadd.f32 %v1065_v42, %v510_v5  ;;  %v568_v12 = vadd.f32 %v1065_v42, %v528_v6  ;;  %v471_v13 = vmax.f32 %v325_v7, 0.0 }
 0x10a   :  { %v489_v14 = vmax.f32 %v415_v8, 0.0  ;;  %v329_v15 = vpop.f32.mrf.mxu0  ;;  %v419_v16 = vpop.f32.mrf.mxu1 }
 0x10b   :  { %587 = vst.msk [vmem:[%s1320_s3 + $0x38] sm:$0xff] %vm579_vm1, %v550_v11  ;;  %605 = vst.msk [vmem:[%s1320_s3 + $0xc8] sm:$0xff] %vm579_vm1, %v568_v12  ;;  %v511_v17 = vmul.f32 %v1062_v37, %v471_v13  ;;  %v330_v19 = vadd.f32 %v329_v15, %v1059_v31  ;;  %v420_v20 = vadd.f32 %v419_v16, %v1059_v31 }
 0x10c   :  { %v529_v18 = vmul.f32 %v1062_v37, %v489_v14  ;;  %v331_v21 = vpop.f32.mrf.mxu0  ;;  %v421_v22 = vpop.f32.mrf.mxu1 }
 0x10d   :  { %v551_v23 = vadd.f32 %v1065_v42, %v511_v17  ;;  %v472_v25 = vmax.f32 %v330_v19, 0.0  ;;  %v490_v26 = vmax.f32 %v420_v20, 0.0 }
 0x10e   :  { %v569_v24 = vadd.f32 %v1065_v42, %v529_v18  ;;  %v334_v27 = vpop.f32.mrf.mxu0  ;;  %v424_v28 = vpop.f32.mrf.mxu1 }
 0x10f   :  { %588 = vst.msk [vmem:[%s1320_s3 + $0x40] sm:$0xff] %vm579_vm1, %v551_v23  ;;  %v512_v29 = vmul.f32 %v1062_v37, %v472_v25  ;;  %v530_v30 = vmul.f32 %v1062_v37, %v490_v26  ;;  %v335_v32 = vadd.f32 %v334_v27, %v1059_v31  ;;  %v425_v33 = vadd.f32 %v424_v28, %v1059_v31 }
 0x110   :  { %606 = vst.msk [vmem:[%s1320_s3 + $0xd0] sm:$0xff] %vm579_vm1, %v569_v24  ;;  %v336_v34 = vpop.f32.mrf.mxu0  ;;  %v426_v35 = vpop.f32.mrf.mxu1 }
 0x111   :  { %v552_v36 = vadd.f32 %v1065_v42, %v512_v29  ;;  %v570_v38 = vadd.f32 %v1065_v42, %v530_v30  ;;  %v473_v39 = vmax.f32 %v335_v32, 0.0  ;;  %v491_v40 = vmax.f32 %v425_v33, 0.0 }
 0x112   :  { %v339_v41 = vpop.f32.mrf.mxu0  ;;  %v429_v43 = vpop.f32.mrf.mxu1 }
 0x113   :  { %589 = vst.msk [vmem:[%s1320_s3 + $0x48] sm:$0xff] %vm579_vm1, %v552_v36  ;;  %607 = vst.msk [vmem:[%s1320_s3 + $0xd8] sm:$0xff] %vm579_vm1, %v570_v38  ;;  %v513_v44 = vmul.f32 %v1062_v37, %v473_v39  ;;  %v531_v45 = vmul.f32 %v1062_v37, %v491_v40  ;;  %v340_v46 = vadd.f32 %v339_v41, %v1059_v31 }
 0x114   :  { %v430_v47 = vadd.f32 %v429_v43, %v1059_v31  ;;  %v341_v48 = vpop.f32.mrf.mxu0  ;;  %v431_v49 = vpop.f32.mrf.mxu1 }
 0x115   :  { %v553_v50 = vadd.f32 %v1065_v42, %v513_v44  ;;  %v571_v51 = vadd.f32 %v1065_v42, %v531_v45  ;;  %v474_v52 = vmax.f32 %v340_v46, 0.0 }
 0x116   :  { %v492_v53 = vmax.f32 %v430_v47, 0.0  ;;  %v344_v54 = vpop.f32.mrf.mxu0  ;;  %v434_v55 = vpop.f32.mrf.mxu1 }
 0x117   :  { %590 = vst.msk [vmem:[%s1320_s3 + $0x50] sm:$0xff] %vm579_vm1, %v553_v50  ;;  %608 = vst.msk [vmem:[%s1320_s3 + $0xe0] sm:$0xff] %vm579_vm1, %v571_v51  ;;  %v514_v56 = vmul.f32 %v1062_v37, %v474_v52  ;;  %v345_v58 = vadd.f32 %v344_v54, %v1059_v31  ;;  %v435_v59 = vadd.f32 %v434_v55, %v1059_v31 }
 0x118   :  { %v532_v57 = vmul.f32 %v1062_v37, %v492_v53  ;;  %v346_v60 = vpop.f32.mrf.mxu0  ;;  %v436_v61 = vpop.f32.mrf.mxu1 }
 0x119   :  { %v554_v62 = vadd.f32 %v1065_v42, %v514_v56  ;;  %v475_v0 = vmax.f32 %v345_v58, 0.0  ;;  %v493_v1 = vmax.f32 %v435_v59, 0.0 }
 0x11a   :  { %v572_v63 = vadd.f32 %v1065_v42, %v532_v57  ;;  %v349_v2 = vpop.f32.mrf.mxu0  ;;  %v439_v3 = vpop.f32.mrf.mxu1 }
 0x11b   :  { %591 = vst.msk [vmem:[%s1320_s3 + $0x58] sm:$0xff] %vm579_vm1, %v554_v62  ;;  %v515_v4 = vmul.f32 %v1062_v37, %v475_v0  ;;  %v533_v5 = vmul.f32 %v1062_v37, %v493_v1  ;;  %v350_v6 = vadd.f32 %v349_v2, %v1059_v31  ;;  %v440_v7 = vadd.f32 %v439_v3, %v1059_v31 }
 0x11c   :  { %609 = vst.msk [vmem:[%s1320_s3 + $0xe8] sm:$0xff] %vm579_vm1, %v572_v63  ;;  %v351_v8 = vpop.f32.mrf.mxu0  ;;  %v441_v9 = vpop.f32.mrf.mxu1 }
 0x11d   :  { %v555_v10 = vadd.f32 %v1065_v42, %v515_v4  ;;  %v573_v11 = vadd.f32 %v1065_v42, %v533_v5  ;;  %v476_v12 = vmax.f32 %v350_v6, 0.0  ;;  %v494_v13 = vmax.f32 %v440_v7, 0.0 }
 0x11e   :  { %v354_v14 = vpop.f32.mrf.mxu0  ;;  %v444_v15 = vpop.f32.mrf.mxu1 }
 0x11f   :  { %592 = vst.msk [vmem:[%s1320_s3 + $0x60] sm:$0xff] %vm579_vm1, %v555_v10  ;;  %610 = vst.msk [vmem:[%s1320_s3 + $0xf0] sm:$0xff] %vm579_vm1, %v573_v11  ;;  %v516_v16 = vmul.f32 %v1062_v37, %v476_v12  ;;  %v534_v17 = vmul.f32 %v1062_v37, %v494_v13  ;;  %v355_v18 = vadd.f32 %v354_v14, %v1059_v31 }
 0x120   :  { %v445_v19 = vadd.f32 %v444_v15, %v1059_v31  ;;  %v356_v20 = vpop.f32.mrf.mxu0  ;;  %v446_v21 = vpop.f32.mrf.mxu1 }
 0x121   :  { %v556_v22 = vadd.f32 %v1065_v42, %v516_v16  ;;  %v574_v23 = vadd.f32 %v1065_v42, %v534_v17  ;;  %v477_v24 = vmax.f32 %v355_v18, 0.0 }
 0x122   :  { %v495_v25 = vmax.f32 %v445_v19, 0.0  ;;  %v359_v26 = vpop.f32.mrf.mxu0  ;;  %v449_v27 = vpop.f32.mrf.mxu1 }
 0x123   :  { %593 = vst.msk [vmem:[%s1320_s3 + $0x68] sm:$0xff] %vm579_vm1, %v556_v22  ;;  %611 = vst.msk [vmem:[%s1320_s3 + $0xf8] sm:$0xff] %vm579_vm1, %v574_v23  ;;  %v517_v28 = vmul.f32 %v1062_v37, %v477_v24  ;;  %v360_v30 = vadd.f32 %v359_v26, %v1059_v31  ;;  %v450_v32 = vadd.f32 %v449_v27, %v1059_v31 }
 0x124   :  { %v535_v29 = vmul.f32 %v1062_v37, %v495_v25  ;;  %v361_v33 = vpop.f32.mrf.mxu0  ;;  %v451_v34 = vpop.f32.mrf.mxu1 }
 0x125   :  { %v557_v35 = vadd.f32 %v1065_v42, %v517_v28  ;;  %v478_v38 = vmax.f32 %v360_v30, 0.0  ;;  %v496_v39 = vmax.f32 %v450_v32, 0.0 }
 0x126   :  { %v575_v36 = vadd.f32 %v1065_v42, %v535_v29  ;;  %v364_v40 = vpop.f32.mrf.mxu0  ;;  %v454_v41 = vpop.f32.mrf.mxu1 }
 0x127   :  { %594 = vst.msk [vmem:[%s1320_s3 + $0x70] sm:$0xff] %vm579_vm1, %v557_v35  ;;  %v518_v43 = vmul.f32 %v1062_v37, %v478_v38  ;;  %v536_v44 = vmul.f32 %v1062_v37, %v496_v39  ;;  %v365_v45 = vadd.f32 %v364_v40, %v1059_v31  ;;  %v455_v46 = vadd.f32 %v454_v41, %v1059_v31 }
 0x128   :  { %612 = vst.msk [vmem:[%s1320_s3 + $0x100] sm:$0xff] %vm579_vm1, %v575_v36  ;;  %v366_v47 = vpop.f32.mrf.mxu0  ;;  %v456_v48 = vpop.f32.mrf.mxu1 }
 0x129   :  { %v558_v49 = vadd.f32 %v1065_v42, %v518_v43  ;;  %v576_v50 = vadd.f32 %v1065_v42, %v536_v44  ;;  %v479_v51 = vmax.f32 %v365_v45, 0.0  ;;  %v497_v52 = vmax.f32 %v455_v46, 0.0 }
 0x12a   :  { %v369_v53 = vpop.f32.mrf.mxu0  ;;  %v459_v54 = vpop.f32.mrf.mxu1 }
 0x12b   :  { %595 = vst.msk [vmem:[%s1320_s3 + $0x78] sm:$0xff] %vm579_vm1, %v558_v49  ;;  %613 = vst.msk [vmem:[%s1320_s3 + $0x108] sm:$0xff] %vm579_vm1, %v576_v50  ;;  %v519_v55 = vmul.f32 %v1062_v37, %v479_v51  ;;  %v537_v56 = vmul.f32 %v1062_v37, %v497_v52  ;;  %v370_v57 = vadd.f32 %v369_v53, %v1059_v31 }
 0x12c   :  { %v460_v58 = vadd.f32 %v459_v54, %v1059_v31  ;;  %v371_v59 = vpop.f32.mrf.mxu0  ;;  %v461_v60 = vpop.f32.mrf.mxu1 }
 0x12d   :  { %v559_v61 = vadd.f32 %v1065_v42, %v519_v55  ;;  %v577_v62 = vadd.f32 %v1065_v42, %v537_v56  ;;  %v480_v63 = vmax.f32 %v370_v57, 0.0 }
 0x12e   :  { %v498_v0 = vmax.f32 %v460_v58, 0.0 }
 0x12f   :  { %596 = vst.msk [vmem:[%s1320_s3 + $0x80] sm:$0xff] %vm579_vm1, %v559_v61  ;;  %614 = vst.msk [vmem:[%s1320_s3 + $0x110] sm:$0xff] %vm579_vm1, %v577_v62  ;;  %v520_v31 = vmul.f32 %v1062_v37, %v480_v63 }
 0x130   :  { %v538_v1 = vmul.f32 %v1062_v37, %v498_v0 }
 0x131   :  { %v560_v2 = vadd.f32 %v1065_v42, %v520_v31 }
 0x132   :  { %v578_v3 = vadd.f32 %v1065_v42, %v538_v1 }
 0x133   :  { %597 = vst.msk [vmem:[%s1320_s3 + $0x88] sm:$0xff] %vm579_vm1, %v560_v2 }
 0x134   :  { %615 = vst.msk [vmem:[%s1320_s3 + $0x118] sm:$0xff] %vm579_vm1, %v578_v3 }

// kernel: network_forward.4
= control target key start
LH: loop header
LB: loop body
LE: loop exit
PB: predicated region body
PF: predicated region fallthrough
CT: control target
= control target key end

     0   :  { %vm369_vm0 = vcmask 519168   ;;  %vm376_vm1 = vcmask 516096   ;;  %s855_s1 = inlined_call_operand.vmem [shape: f32[512,64], index: 1, kind: input, shape index: {}]   ;;  %s856_s0 = inlined_call_operand.vmem [shape: f32[50,512], index: 0, kind: input, shape index: {}]   ;;  %s857_s2 = inlined_call_operand.vmem [shape: f32[3,64], index: 2, kind: input, shape index: {}]   ;;  %s858_s3 = inlined_call_operand.vmem [shape: bf16[50,64], index: 3, kind: output, shape index: {}]  }
   0x1   :  { %v74_v0 = vld [vmem:[%s855_s1 + $0xf8] sm:$0xff]  ;;  %v73_v4 = vld [vmem:[%s855_s1 + $0xf0] sm:$0xff]  ;;  %v72_v8 = vld [vmem:[%s855_s1 + $0xe8] sm:$0xff] }
   0x2   :  { %v106_v1 = vld [vmem:[%s855_s1 + $0x1f8] sm:$0xff]  ;;  %396 = vmatprep.subr.mxu0 %v74_v0  ;;  %v105_v5 = vld [vmem:[%s855_s1 + $0x1f0] sm:$0xff]  ;;  %v104_v9 = vld [vmem:[%s855_s1 + $0x1e8] sm:$0xff] }
   0x3   :  { %v58_v2 = vld [vmem:[%s855_s1 + $0x78] sm:$0xff]  ;;  %449 = vmatprep.subr.mxu1 %v106_v1  ;;  %v57_v6 = vld [vmem:[%s855_s1 + $0x70] sm:$0xff]  ;;  %v56_v10 = vld [vmem:[%s855_s1 + $0x68] sm:$0xff] }
   0x4   :  { %v90_v3 = vld [vmem:[%s855_s1 + $0x178] sm:$0xff]  ;;  %397 = vmatpush3.msra.mxu0 %v58_v2  ;;  %v89_v7 = vld [vmem:[%s855_s1 + $0x170] sm:$0xff]  ;;  %v88_v11 = vld [vmem:[%s855_s1 + $0x168] sm:$0xff] }
   0x5   :  { %450 = vmatpush3.msra.mxu1 %v90_v3  ;;  %398 = vmatprep.subr.mxu0 %v73_v4  ;;  %v71_v12 = vld [vmem:[%s855_s1 + $0xe0] sm:$0xff]  ;;  %v70_v16 = vld [vmem:[%s855_s1 + $0xd8] sm:$0xff]  ;;  %v69_v20 = vld [vmem:[%s855_s1 + $0xd0] sm:$0xff] }
   0x6   :  { %451 = vmatprep.subr.mxu1 %v105_v5  ;;  %399 = vmatpush3.msra.mxu0 %v57_v6  ;;  %v103_v13 = vld [vmem:[%s855_s1 + $0x1e0] sm:$0xff]  ;;  %v102_v17 = vld [vmem:[%s855_s1 + $0x1d8] sm:$0xff]  ;;  %v101_v21 = vld [vmem:[%s855_s1 + $0x1d0] sm:$0xff] }
   0x7   :  { %452 = vmatpush3.msra.mxu1 %v89_v7  ;;  %400 = vmatprep.subr.mxu0 %v72_v8  ;;  %v55_v14 = vld [vmem:[%s855_s1 + $0x60] sm:$0xff]  ;;  %v54_v18 = vld [vmem:[%s855_s1 + $0x58] sm:$0xff]  ;;  %v53_v22 = vld [vmem:[%s855_s1 + $0x50] sm:$0xff] }
   0x8   :  { %453 = vmatprep.subr.mxu1 %v104_v9  ;;  %v87_v15 = vld [vmem:[%s855_s1 + $0x160] sm:$0xff]  ;;  %401 = vmatpush3.msra.mxu0 %v56_v10  ;;  %v86_v19 = vld [vmem:[%s855_s1 + $0x158] sm:$0xff]  ;;  %v85_v23 = vld [vmem:[%s855_s1 + $0x150] sm:$0xff] }
   0x9   :  { %454 = vmatpush3.msra.mxu1 %v88_v11  ;;  %402 = vmatprep.subr.mxu0 %v71_v12  ;;  %v68_v24 = vld [vmem:[%s855_s1 + $0xc8] sm:$0xff]  ;;  %v67_v28 = vld [vmem:[%s855_s1 + $0xc0] sm:$0xff]  ;;  %v66_v32 = vld [vmem:[%s855_s1 + $0xb8] sm:$0xff] }
   0xa   :  { %455 = vmatprep.subr.mxu1 %v103_v13  ;;  %403 = vmatpush3.msra.mxu0 %v55_v14  ;;  %v100_v25 = vld [vmem:[%s855_s1 + $0x1c8] sm:$0xff]  ;;  %v99_v29 = vld [vmem:[%s855_s1 + $0x1c0] sm:$0xff]  ;;  %v98_v33 = vld [vmem:[%s855_s1 + $0x1b8] sm:$0xff] }
   0xb   :  { %456 = vmatpush3.msra.mxu1 %v87_v15  ;;  %404 = vmatprep.subr.mxu0 %v70_v16  ;;  %v52_v26 = vld [vmem:[%s855_s1 + $0x48] sm:$0xff]  ;;  %v51_v30 = vld [vmem:[%s855_s1 + $0x40] sm:$0xff]  ;;  %v50_v34 = vld [vmem:[%s855_s1 + $0x38] sm:$0xff] }
   0xc   :  { %457 = vmatprep.subr.mxu1 %v102_v17  ;;  %405 = vmatpush3.msra.mxu0 %v54_v18  ;;  %v84_v27 = vld [vmem:[%s855_s1 + $0x148] sm:$0xff]  ;;  %v83_v31 = vld [vmem:[%s855_s1 + $0x140] sm:$0xff]  ;;  %v82_v35 = vld [vmem:[%s855_s1 + $0x138] sm:$0xff] }
   0xd   :  { %458 = vmatpush3.msra.mxu1 %v86_v19  ;;  %406 = vmatprep.subr.mxu0 %v69_v20  ;;  %v65_v36 = vld [vmem:[%s855_s1 + $0xb0] sm:$0xff]  ;;  %v64_v40 = vld [vmem:[%s855_s1 + $0xa8] sm:$0xff]  ;;  %v63_v44 = vld [vmem:[%s855_s1 + $0xa0] sm:$0xff] }
   0xe   :  { %459 = vmatprep.subr.mxu1 %v101_v21  ;;  %407 = vmatpush3.msra.mxu0 %v53_v22  ;;  %v97_v37 = vld [vmem:[%s855_s1 + $0x1b0] sm:$0xff]  ;;  %v96_v41 = vld [vmem:[%s855_s1 + $0x1a8] sm:$0xff]  ;;  %v95_v45 = vld [vmem:[%s855_s1 + $0x1a0] sm:$0xff] }
   0xf   :  { %460 = vmatpush3.msra.mxu1 %v85_v23  ;;  %408 = vmatprep.subr.mxu0 %v68_v24  ;;  %v49_v38 = vld [vmem:[%s855_s1 + $0x30] sm:$0xff]  ;;  %v48_v42 = vld [vmem:[%s855_s1 + $0x28] sm:$0xff]  ;;  %v47_v46 = vld [vmem:[%s855_s1 + $0x20] sm:$0xff] }
  0x10   :  { %461 = vmatprep.subr.mxu1 %v100_v25  ;;  %409 = vmatpush3.msra.mxu0 %v52_v26  ;;  %v81_v39 = vld [vmem:[%s855_s1 + $0x130] sm:$0xff]  ;;  %v80_v43 = vld [vmem:[%s855_s1 + $0x128] sm:$0xff]  ;;  %v79_v47 = vld [vmem:[%s855_s1 + $0x120] sm:$0xff] }
  0x11   :  { %462 = vmatpush3.msra.mxu1 %v84_v27  ;;  %410 = vmatprep.subr.mxu0 %v67_v28  ;;  %v62_v48 = vld [vmem:[%s855_s1 + $0x98] sm:$0xff]  ;;  %v61_v52 = vld [vmem:[%s855_s1 + $0x90] sm:$0xff]  ;;  %v60_v56 = vld [vmem:[%s855_s1 + $0x88] sm:$0xff]  ;;  %v107_v28 = vlaneseq }
  0x12   :  { %463 = vmatprep.subr.mxu1 %v99_v29  ;;  %411 = vmatpush3.msra.mxu0 %v51_v30  ;;  %v94_v49 = vld [vmem:[%s855_s1 + $0x198] sm:$0xff]  ;;  %v93_v53 = vld [vmem:[%s855_s1 + $0x190] sm:$0xff]  ;;  %v92_v57 = vld [vmem:[%s855_s1 + $0x188] sm:$0xff] }
  0x13   :  { %464 = vmatpush3.msra.mxu1 %v83_v31  ;;  %412 = vmatprep.subr.mxu0 %v66_v32  ;;  %v46_v50 = vld [vmem:[%s855_s1 + $0x18] sm:$0xff]  ;;  %v45_v54 = vld [vmem:[%s855_s1 + $0x10] sm:$0xff]  ;;  %v44_v58 = vld [vmem:[%s855_s1 + $0x8] sm:$0xff]  ;;  %v108_v29 = vshrl.u32 %v107_v28, 7 }
  0x14   :  { %465 = vmatprep.subr.mxu1 %v98_v33  ;;  %413 = vmatpush3.msra.mxu0 %v50_v34  ;;  %v78_v51 = vld [vmem:[%s855_s1 + $0x118] sm:$0xff]  ;;  %v77_v55 = vld [vmem:[%s855_s1 + $0x110] sm:$0xff]  ;;  %v76_v59 = vld [vmem:[%s855_s1 + $0x108] sm:$0xff] }
  0x15   :  { %466 = vmatpush3.msra.mxu1 %v82_v35  ;;  %414 = vmatprep.subr.mxu0 %v65_v36  ;;  %v59_v60 = vld [vmem:[%s855_s1 + $0x80] sm:$0xff]  ;;  %v16_v63 = vld [vmem:[%s856_s0 + $0x8] sm:$0xff]  ;;  %v18_v1 = vld [vmem:[%s856_s0 + $0x18] sm:$0xff]  ;;  %v109_v30 = vsub.s32 0, %v108_v29 }
  0x16   :  { %467 = vmatprep.subr.mxu1 %v97_v37  ;;  %415 = vmatpush3.msra.mxu0 %v49_v38  ;;  %v91_v61 = vld [vmem:[%s855_s1 + $0x180] sm:$0xff]  ;;  %v17_v3 = vld [vmem:[%s856_s0 + $0x10] sm:$0xff]  ;;  %v20_v4 = vld [vmem:[%s856_s0 + $0x28] sm:$0xff]  ;;  %v320_v38 = vsub.s32 1, %v108_v29 }
  0x17   :  { %468 = vmatpush3.msra.mxu1 %v81_v39  ;;  %416 = vmatprep.subr.mxu0 %v64_v40  ;;  %v43_v62 = vld [vmem:[%s855_s1] sm:$0xff]  ;;  %v22_v5 = vld [vmem:[%s856_s0 + $0x38] sm:$0xff]  ;;  %v21_v7 = vld [vmem:[%s856_s0 + $0x30] sm:$0xff] }
  0x18   :  { %469 = vmatprep.subr.mxu1 %v96_v41  ;;  %417 = vmatpush3.msra.mxu0 %v48_v42  ;;  %v75_v0 = vld [vmem:[%s855_s1 + $0x100] sm:$0xff]  ;;  %v24_v8 = vld [vmem:[%s856_s0 + $0x48] sm:$0xff]  ;;  %v26_v9 = vld [vmem:[%s856_s0 + $0x58] sm:$0xff] }
  0x19   :  { %470 = vmatpush3.msra.mxu1 %v80_v43  ;;  %418 = vmatprep.subr.mxu0 %v63_v44  ;;  %v15_v2 = vld [vmem:[%s856_s0] sm:$0xff]  ;;  %v25_v11 = vld [vmem:[%s856_s0 + $0x50] sm:$0xff]  ;;  %v28_v12 = vld [vmem:[%s856_s0 + $0x68] sm:$0xff]  ;;  %v331_v43 = vsub.s32 2, %v108_v29 }
  0x1a   :  { %471 = vmatprep.subr.mxu1 %v95_v45  ;;  %419 = vmatpush3.msra.mxu0 %v47_v46  ;;  %v19_v6 = vld [vmem:[%s856_s0 + $0x20] sm:$0xff]  ;;  %v30_v13 = vld [vmem:[%s856_s0 + $0x78] sm:$0xff]  ;;  %v29_v15 = vld [vmem:[%s856_s0 + $0x70] sm:$0xff] }
  0x1b   :  { %472 = vmatpush3.msra.mxu1 %v79_v47  ;;  %420 = vmatprep.subr.mxu0 %v62_v48  ;;  %v23_v10 = vld [vmem:[%s856_s0 + $0x40] sm:$0xff]  ;;  %v32_v16 = vld [vmem:[%s856_s0 + $0x88] sm:$0xff]  ;;  %v34_v17 = vld [vmem:[%s856_s0 + $0x98] sm:$0xff] }
  0x1c   :  { %473 = vmatprep.subr.mxu1 %v94_v49  ;;  %421 = vmatpush3.msra.mxu0 %v46_v50  ;;  %v27_v14 = vld [vmem:[%s856_s0 + $0x60] sm:$0xff]  ;;  %v33_v19 = vld [vmem:[%s856_s0 + $0x90] sm:$0xff]  ;;  %v36_v20 = vld [vmem:[%s856_s0 + $0xa8] sm:$0xff] }
  0x1d   :  { %474 = vmatpush3.msra.mxu1 %v78_v51  ;;  %422 = vmatprep.subr.mxu0 %v61_v52  ;;  %v31_v18 = vld [vmem:[%s856_s0 + $0x80] sm:$0xff]  ;;  %v38_v21 = vld [vmem:[%s856_s0 + $0xb8] sm:$0xff]  ;;  %v37_v23 = vld [vmem:[%s856_s0 + $0xb0] sm:$0xff] }
  0x1e   :  { %475 = vmatprep.subr.mxu1 %v93_v53  ;;  %423 = vmatpush3.msra.mxu0 %v45_v54  ;;  %v35_v22 = vld [vmem:[%s856_s0 + $0xa0] sm:$0xff]  ;;  %v40_v24 = vld [vmem:[%s856_s0 + $0xc8] sm:$0x3]  ;;  %v42_v25 = vld [vmem:[%s856_s0 + $0xd8] sm:$0x3] }
  0x1f   :  { %476 = vmatpush3.msra.mxu1 %v77_v55  ;;  %424 = vmatprep.subr.mxu0 %v60_v56  ;;  %v39_v26 = vld [vmem:[%s856_s0 + $0xc0] sm:$0x3]  ;;  %v41_v27 = vld [vmem:[%s856_s0 + $0xd0] sm:$0x3] }
  0x20   :  { %477 = vmatprep.subr.mxu1 %v92_v57  ;;  %425 = vmatpush3.msra.mxu0 %v44_v58  ;;  %v14_v31 = vld [vmem:[%s857_s2] sm:$0x7] }
  0x21   :  { %478 = vmatpush3.msra.mxu1 %v76_v59  ;;  %426 = vmatprep.subr.mxu0 %v59_v60  ;;  %v801_v34 = vrot.slane %v14_v31, %v109_v30  ;;  %v804_v47 = vrot.slane %v14_v31, %v320_v38  ;;  %v806_v52 = vrot.slane %v14_v31, %v331_v43 }
  0x22   :  { %479 = vmatprep.subr.mxu1 %v91_v61  ;;  %427 = vmatpush3.msra.mxu0 %v43_v62 }
  0x23   :  { %175 = vmatprep.mubr.f32.mxu0 %v16_v63  ;;  %480 = vmatpush3.msra.mxu1 %v75_v0 }
  0x24   :  { %275 = vmatprep.mubr.f32.mxu1 %v18_v1  ;;  %176 = vmatmul.mubr.f32.vlgmr.msra.gmra.mxu0 %v15_v2 }
  0x25   :  { %276 = vmatmul.mubr.f32.vlgmr.msra.gmra.mxu1 %v17_v3  ;;  %180 = vmatprep.mubr.f32.mxu0 %v20_v4 }
  0x26   :  { %280 = vmatprep.mubr.f32.mxu1 %v22_v5 }
  0x28   :  { %181 = vmatmul.mubr.f32.gmra.mxu0 %v19_v6 }
  0x29   :  { %281 = vmatmul.mubr.f32.gmra.mxu1 %v21_v7  ;;  %185 = vmatprep.mubr.f32.mxu0 %v24_v8 }
  0x2a   :  { %285 = vmatprep.mubr.f32.mxu1 %v26_v9 }
  0x2c   :  { %186 = vmatmul.mubr.f32.gmra.mxu0 %v23_v10 }
  0x2d   :  { %286 = vmatmul.mubr.f32.gmra.mxu1 %v25_v11  ;;  %190 = vmatprep.mubr.f32.mxu0 %v28_v12 }
  0x2e   :  { %290 = vmatprep.mubr.f32.mxu1 %v30_v13 }
  0x30   :  { %191 = vmatmul.mubr.f32.gmra.mxu0 %v27_v14 }
  0x31   :  { %291 = vmatmul.mubr.f32.gmra.mxu1 %v29_v15  ;;  %195 = vmatprep.mubr.f32.mxu0 %v32_v16 }
  0x32   :  { %295 = vmatprep.mubr.f32.mxu1 %v34_v17 }
  0x34   :  { %196 = vmatmul.mubr.f32.gmra.mxu0 %v31_v18 }
  0x35   :  { %296 = vmatmul.mubr.f32.gmra.mxu1 %v33_v19  ;;  %200 = vmatprep.mubr.f32.mxu0 %v36_v20 }
  0x36   :  { %300 = vmatprep.mubr.f32.mxu1 %v38_v21 }
  0x38   :  { %201 = vmatmul.mubr.f32.gmra.mxu0 %v35_v22 }
  0x39   :  { %301 = vmatmul.mubr.f32.gmra.mxu1 %v37_v23  ;;  %205 = vmatprep.mubr.f32.mxu0 %v40_v24 }
  0x3a   :  { %305 = vmatprep.mubr.f32.mxu1 %v42_v25 }
  0x3c   :  { %206 = vmatmul.mubr.f32.gmra.mxu0 %v39_v26 }
  0x3d   :  { %306 = vmatmul.mubr.f32.gmra.mxu1 %v41_v27 }
  0xe4   :  { %v428_v32 = vpop.f32.mrf.mxu0 }
  0xe5   :  { %v481_v33 = vpop.f32.mrf.mxu1 }
  0xe6   :  { %v429_v35 = vpop.f32.mrf.mxu0 }
  0xe7   :  { %v482_v36 = vpop.f32.mrf.mxu1  ;;  %v430_v37 = vadd.f32 %v429_v35, %v428_v32 }
  0xe8   :  { %v431_v39 = vpop.f32.mrf.mxu0  ;;  %v483_v42 = vadd.f32 %v482_v36, %v481_v33 }
  0xe9   :  { %v484_v40 = vpop.f32.mrf.mxu1  ;;  %v178_v41 = vadd.f32 %v430_v37, %v801_v34 }
  0xea   :  { %v432_v44 = vpop.f32.mrf.mxu0 }
  0xeb   :  { %v485_v45 = vpop.f32.mrf.mxu1  ;;  %v278_v46 = vadd.f32 %v483_v42, %v178_v41  ;;  %v433_v48 = vadd.f32 %v432_v44, %v431_v39 }
  0xec   :  { %v434_v49 = vpop.f32.mrf.mxu0  ;;  %v486_v54 = vadd.f32 %v485_v45, %v484_v40 }
  0xed   :  { %v487_v50 = vpop.f32.mrf.mxu1  ;;  %v311_v51 = vmax.f32 %v278_v46, 0.0  ;;  %v183_v53 = vadd.f32 %v433_v48, %v801_v34 }
  0xee   :  { %v435_v55 = vpop.f32.mrf.mxu0 }
  0xef   :  { %v488_v56 = vpop.f32.mrf.mxu1  ;;  %v322_v57 = vmul.f32 %v804_v47, %v311_v51  ;;  %v283_v58 = vadd.f32 %v486_v54, %v183_v53  ;;  %v436_v59 = vadd.f32 %v435_v55, %v434_v49 }
  0xf0   :  { %v437_v60 = vpop.f32.mrf.mxu0  ;;  %v489_v1 = vadd.f32 %v488_v56, %v487_v50 }
  0xf1   :  { %v490_v61 = vpop.f32.mrf.mxu1  ;;  %v333_v62 = vadd.f32 %v806_v52, %v322_v57  ;;  %v312_v63 = vmax.f32 %v283_v58, 0.0  ;;  %v188_v0 = vadd.f32 %v436_v59, %v801_v34 }
  0xf2   :  { %v438_v2 = vpop.f32.mrf.mxu0 }
  0xf3   :  { %v491_v3 = vpop.f32.mrf.mxu1  ;;  %v389_v4 = vpack.c.bf16 %v333_v62, %v333_v62  ;;  %v323_v5 = vmul.f32 %v804_v47, %v312_v63  ;;  %v288_v6 = vadd.f32 %v489_v1, %v188_v0  ;;  %v439_v7 = vadd.f32 %v438_v2, %v437_v60 }
  0xf4   :  { %v440_v8 = vpop.f32.mrf.mxu0  ;;  %v492_v13 = vadd.f32 %v491_v3, %v490_v61 }
  0xf5   :  { %v493_v9 = vpop.f32.mrf.mxu1  ;;  %370 = vst.msk [vmem:[%s858_s3] sm:$0xf] %vm369_vm0, %v389_v4  ;;  %v334_v10 = vadd.f32 %v806_v52, %v323_v5  ;;  %v313_v11 = vmax.f32 %v288_v6, 0.0  ;;  %v193_v12 = vadd.f32 %v439_v7, %v801_v34 }
  0xf6   :  { %v441_v14 = vpop.f32.mrf.mxu0 }
  0xf7   :  { %v494_v15 = vpop.f32.mrf.mxu1  ;;  %v390_v16 = vpack.c.bf16 %v334_v10, %v334_v10  ;;  %v324_v17 = vmul.f32 %v804_v47, %v313_v11  ;;  %v293_v18 = vadd.f32 %v492_v13, %v193_v12  ;;  %v442_v19 = vadd.f32 %v441_v14, %v440_v8 }
  0xf8   :  { %v443_v20 = vpop.f32.mrf.mxu0  ;;  %v495_v25 = vadd.f32 %v494_v15, %v493_v9 }
  0xf9   :  { %v496_v21 = vpop.f32.mrf.mxu1  ;;  %371 = vst.msk [vmem:[%s858_s3 + $0x4] sm:$0xf] %vm369_vm0, %v390_v16  ;;  %v335_v22 = vadd.f32 %v806_v52, %v324_v17  ;;  %v314_v23 = vmax.f32 %v293_v18, 0.0  ;;  %v198_v24 = vadd.f32 %v442_v19, %v801_v34 }
  0xfa   :  { %v444_v26 = vpop.f32.mrf.mxu0 }
  0xfb   :  { %v497_v27 = vpop.f32.mrf.mxu1  ;;  %v391_v28 = vpack.c.bf16 %v335_v22, %v335_v22  ;;  %v325_v29 = vmul.f32 %v804_v47, %v314_v23  ;;  %v298_v30 = vadd.f32 %v495_v25, %v198_v24  ;;  %v445_v31 = vadd.f32 %v444_v26, %v443_v20 }
  0xfc   :  { %v446_v32 = vpop.f32.mrf.mxu0  ;;  %v498_v38 = vadd.f32 %v497_v27, %v496_v21 }
  0xfd   :  { %v499_v33 = vpop.f32.mrf.mxu1  ;;  %372 = vst.msk [vmem:[%s858_s3 + $0x8] sm:$0xf] %vm369_vm0, %v391_v28  ;;  %v336_v35 = vadd.f32 %v806_v52, %v325_v29  ;;  %v315_v36 = vmax.f32 %v298_v30, 0.0  ;;  %v203_v37 = vadd.f32 %v445_v31, %v801_v34 }
  0xfe   :  { %v447_v39 = vpop.f32.mrf.mxu0 }
  0xff   :  { %v500_v40 = vpop.f32.mrf.mxu1  ;;  %v392_v41 = vpack.c.bf16 %v336_v35, %v336_v35  ;;  %v326_v42 = vmul.f32 %v804_v47, %v315_v36  ;;  %v303_v43 = vadd.f32 %v498_v38, %v203_v37  ;;  %v448_v44 = vadd.f32 %v447_v39, %v446_v32 }
 0x100   :  { %v501_v49 = vadd.f32 %v500_v40, %v499_v33 }
 0x101   :  { %373 = vst.msk [vmem:[%s858_s3 + $0xc] sm:$0xf] %vm369_vm0, %v392_v41  ;;  %v337_v45 = vadd.f32 %v806_v52, %v326_v42  ;;  %v316_v46 = vmax.f32 %v303_v43, 0.0  ;;  %v208_v48 = vadd.f32 %v448_v44, %v801_v34 }
 0x103   :  { %v393_v50 = vpack.c.bf16 %v337_v45, %v337_v45  ;;  %v327_v51 = vmul.f32 %v804_v47, %v316_v46  ;;  %v308_v53 = vadd.f32 %v501_v49, %v208_v48 }
 0x105   :  { %374 = vst.msk [vmem:[%s858_s3 + $0x10] sm:$0xf] %vm369_vm0, %v393_v50  ;;  %v338_v54 = vadd.f32 %v806_v52, %v327_v51  ;;  %v317_v55 = vmax.f32 %v308_v53, 0.0 }
 0x107   :  { %v394_v56 = vpack.c.bf16 %v338_v54, %v338_v54  ;;  %v328_v57 = vmul.f32 %v804_v47, %v317_v55 }
 0x109   :  { %375 = vst.msk [vmem:[%s858_s3 + $0x14] sm:$0xf] %vm369_vm0, %v394_v56  ;;  %v339_v34 = vadd.f32 %v806_v52, %v328_v57 }
 0x10b   :  { %v395_v58 = vpack.c.bf16 %v339_v34, %v339_v34 }
 0x10d   :  { %377 = vst.msk [vmem:[%s858_s3 + $0x18] sm:$0x1] %vm376_vm1, %v395_v58 }

// kernel: network_forward.5
= control target key start
LH: loop header
LB: loop body
LE: loop exit
PB: predicated region body
PF: predicated region fallthrough
CT: control target
= control target key end

     0   :  { %s8426_s15 = smov 0   ;;  %s8428_s16 = smov 0   ;;  %s10456_s0 = inlined_call_operand.vmem [shape: bf16[2,1600], index: 0, kind: input, shape index: {}]   ;;  %s10457_s1 = inlined_call_operand.vmem [shape: bf16[1600,3200], index: 1, kind: input, shape index: {}]   ;;  %s10458_s2 = inlined_call_operand.vmem [shape: f32[1,3200], index: 2, kind: input, shape index: {}]   ;;  %s10459_s3 = inlined_call_operand.vmem [shape: bf16[3200,256], index: 3, kind: input, shape index: {}]   ;;  %s10460_s4 = inlined_call_operand.vmem [shape: f32[5,2,256], index: 4, kind: output, shape index: {}]  }
   0x1   :  { %s8430_s17 = smov 0  }
   0x2 LB: > { %s8442_s18 = sadd.s32 4294967295, %s8395_s17   ;;  %s8445_s19 = sadd.s32 1, %s8395_s17   ;;  %s8395_s17 = sphi %s8430_s17, %s10463_s17   ;;  %s8391_s16 = sphi %s8428_s16, %s10462_s16   ;;  %s8387_s15 = sphi %s8426_s15, %s10461_s15  }
   0x3   : > { %s39_s20 = ssub.s32 %s8395_s17, %s8445_s19  ;;  %s42_s21 = sadd.s32 1, %s8391_s16 }
   0x4   : > { %p40_p0 = scmp.eq.s32.totalorder %s39_s20, 0  ;;  %p49_p1 = scmp.ne.s32.totalorder %s8391_s16, %s8387_s15 }
   0x5   : > { %p50_p2 = scmp.eq.s32.totalorder %s8395_s17, 0  ;;  %p6375_p4 = scmp.ge.s32.totalorder %s8395_s17, 5 }
   0x6   : > { %s8454_s22 = scalar_select %p40_p0, %s8391_s16, %s42_s21  }
   0x7   : > { %p51_p3 = por %p50_p2, %p49_p1  ;;  %156 = sbr.rel (%p6375_p4) target bundleno = 350 (0x15e), region = 20 }
   0xc   : > { %159 = sbr.rel (!%p51_p3) target bundleno = 350 (0x15e), region = 24  ;;  %s161_s23 = sand.u32 (%p51_p3), 1, %s8391_s16  }
   0xd   : > { %s7368_s24 = smul.u32 (%p51_p3), 20, %s8395_s17 }
   0xe   : > { %s7520_s25 = smul.u32 (%p51_p3), 4000, %s161_s23 }
   0xf   : > { %s8462_s28 = scalar_lea.vmem (%p51_p3), %s10457_s1, %s7368_s24 }
  0x10   : > { %v181_v0 = vld [vmem:[%s8462_s28] sm:$0xff] (%p51_p3)  ;;  %v183_v1 = vld [vmem:[%s8462_s28 + $0x8] sm:$0xff] (%p51_p3)  ;;  %s8467_s29 = scalar_lea.vmem (%p51_p3), [#allocation2], %s7520_s25  ;;  %v191_v5 = vld [vmem:[%s8462_s28 + $0xd0] sm:$0xff] (%p51_p3) }
  0x11   : > { %v185_v2 = vld [vmem:[%s8462_s28 + $0x64] sm:$0xff]  ;;  %182 = vst [vmem:[%s8467_s29] sm:$0xff] %v181_v0  ;;  %184 = vst [vmem:[%s8467_s29 + $0x8] sm:$0xff] %v183_v1  ;;  %v187_v3 = vld [vmem:[%s8462_s28 + $0x6c] sm:$0xff] }
  0x12   : > { %186 = vst [vmem:[%s8467_s29 + $0x14] sm:$0xff] %v185_v2  ;;  %v189_v4 = vld [vmem:[%s8462_s28 + $0xc8] sm:$0xff]  ;;  %188 = vst [vmem:[%s8467_s29 + $0x1c] sm:$0xff] %v187_v3  ;;  %v195_v7 = vld [vmem:[%s8462_s28 + $0x134] sm:$0xff] }
  0x13   : > { %190 = vst [vmem:[%s8467_s29 + $0x28] sm:$0xff] %v189_v4  ;;  %192 = vst [vmem:[%s8467_s29 + $0x30] sm:$0xff] %v191_v5  ;;  %v193_v6 = vld [vmem:[%s8462_s28 + $0x12c] sm:$0xff]  ;;  %v199_v9 = vld [vmem:[%s8462_s28 + $0x198] sm:$0xff] }
  0x14   : > { %v197_v8 = vld [vmem:[%s8462_s28 + $0x190] sm:$0xff]  ;;  %194 = vst [vmem:[%s8467_s29 + $0x3c] sm:$0xff] %v193_v6  ;;  %196 = vst [vmem:[%s8467_s29 + $0x44] sm:$0xff] %v195_v7  ;;  %v203_v11 = vld [vmem:[%s8462_s28 + $0x1fc] sm:$0xff] }
  0x15   : > { %198 = vst [vmem:[%s8467_s29 + $0x50] sm:$0xff] %v197_v8  ;;  %v201_v10 = vld [vmem:[%s8462_s28 + $0x1f4] sm:$0xff]  ;;  %200 = vst [vmem:[%s8467_s29 + $0x58] sm:$0xff] %v199_v9  ;;  %v207_v13 = vld [vmem:[%s8462_s28 + $0x260] sm:$0xff] }
  0x16   : > { %202 = vst [vmem:[%s8467_s29 + $0x64] sm:$0xff] %v201_v10  ;;  %204 = vst [vmem:[%s8467_s29 + $0x6c] sm:$0xff] %v203_v11  ;;  %v205_v12 = vld [vmem:[%s8462_s28 + $0x258] sm:$0xff]  ;;  %v211_v15 = vld [vmem:[%s8462_s28 + $0x2c4] sm:$0xff] }
  0x17   : > { %v209_v14 = vld [vmem:[%s8462_s28 + $0x2bc] sm:$0xff]  ;;  %206 = vst [vmem:[%s8467_s29 + $0x78] sm:$0xff] %v205_v12  ;;  %208 = vst [vmem:[%s8467_s29 + $0x80] sm:$0xff] %v207_v13  ;;  %v215_v17 = vld [vmem:[%s8462_s28 + $0x328] sm:$0xff] }
  0x18   : > { %210 = vst [vmem:[%s8467_s29 + $0x8c] sm:$0xff] %v209_v14  ;;  %v213_v16 = vld [vmem:[%s8462_s28 + $0x320] sm:$0xff]  ;;  %212 = vst [vmem:[%s8467_s29 + $0x94] sm:$0xff] %v211_v15  ;;  %v219_v19 = vld [vmem:[%s8462_s28 + $0x38c] sm:$0xff] }
  0x19   : > { %214 = vst [vmem:[%s8467_s29 + $0xa0] sm:$0xff] %v213_v16  ;;  %216 = vst [vmem:[%s8467_s29 + $0xa8] sm:$0xff] %v215_v17  ;;  %v217_v18 = vld [vmem:[%s8462_s28 + $0x384] sm:$0xff]  ;;  %v223_v21 = vld [vmem:[%s8462_s28 + $0x3f0] sm:$0xff] }
  0x1a   : > { %v221_v20 = vld [vmem:[%s8462_s28 + $0x3e8] sm:$0xff]  ;;  %218 = vst [vmem:[%s8467_s29 + $0xb4] sm:$0xff] %v217_v18  ;;  %220 = vst [vmem:[%s8467_s29 + $0xbc] sm:$0xff] %v219_v19  ;;  %v227_v23 = vld [vmem:[%s8462_s28 + $0x454] sm:$0xff] }
  0x1b   : > { %222 = vst [vmem:[%s8467_s29 + $0xc8] sm:$0xff] %v221_v20  ;;  %v225_v22 = vld [vmem:[%s8462_s28 + $0x44c] sm:$0xff]  ;;  %224 = vst [vmem:[%s8467_s29 + $0xd0] sm:$0xff] %v223_v21  ;;  %v231_v25 = vld [vmem:[%s8462_s28 + $0x4b8] sm:$0xff] }
  0x1c   : > { %226 = vst [vmem:[%s8467_s29 + $0xdc] sm:$0xff] %v225_v22  ;;  %228 = vst [vmem:[%s8467_s29 + $0xe4] sm:$0xff] %v227_v23  ;;  %v229_v24 = vld [vmem:[%s8462_s28 + $0x4b0] sm:$0xff]  ;;  %v235_v27 = vld [vmem:[%s8462_s28 + $0x51c] sm:$0xff] }
  0x1d   : > { %v233_v26 = vld [vmem:[%s8462_s28 + $0x514] sm:$0xff]  ;;  %230 = vst [vmem:[%s8467_s29 + $0xf0] sm:$0xff] %v229_v24  ;;  %232 = vst [vmem:[%s8467_s29 + $0xf8] sm:$0xff] %v231_v25  ;;  %v239_v29 = vld [vmem:[%s8462_s28 + $0x580] sm:$0xff] }
  0x1e   : > { %234 = vst [vmem:[%s8467_s29 + $0x104] sm:$0xff] %v233_v26  ;;  %v237_v28 = vld [vmem:[%s8462_s28 + $0x578] sm:$0xff]  ;;  %236 = vst [vmem:[%s8467_s29 + $0x10c] sm:$0xff] %v235_v27  ;;  %v243_v31 = vld [vmem:[%s8462_s28 + $0x5e4] sm:$0xff] }
  0x1f   : > { %238 = vst [vmem:[%s8467_s29 + $0x118] sm:$0xff] %v237_v28  ;;  %240 = vst [vmem:[%s8467_s29 + $0x120] sm:$0xff] %v239_v29  ;;  %v241_v30 = vld [vmem:[%s8462_s28 + $0x5dc] sm:$0xff]  ;;  %v247_v33 = vld [vmem:[%s8462_s28 + $0x648] sm:$0xff] }
  0x20   : > { %v245_v32 = vld [vmem:[%s8462_s28 + $0x640] sm:$0xff]  ;;  %242 = vst [vmem:[%s8467_s29 + $0x12c] sm:$0xff] %v241_v30  ;;  %244 = vst [vmem:[%s8467_s29 + $0x134] sm:$0xff] %v243_v31  ;;  %v251_v35 = vld [vmem:[%s8462_s28 + $0x6ac] sm:$0xff] }
  0x21   : > { %246 = vst [vmem:[%s8467_s29 + $0x140] sm:$0xff] %v245_v32  ;;  %v249_v34 = vld [vmem:[%s8462_s28 + $0x6a4] sm:$0xff]  ;;  %248 = vst [vmem:[%s8467_s29 + $0x148] sm:$0xff] %v247_v33  ;;  %v255_v37 = vld [vmem:[%s8462_s28 + $0x710] sm:$0xff] }
  0x22   : > { %250 = vst [vmem:[%s8467_s29 + $0x154] sm:$0xff] %v249_v34  ;;  %252 = vst [vmem:[%s8467_s29 + $0x15c] sm:$0xff] %v251_v35  ;;  %v253_v36 = vld [vmem:[%s8462_s28 + $0x708] sm:$0xff]  ;;  %v259_v39 = vld [vmem:[%s8462_s28 + $0x774] sm:$0xff] }
  0x23   : > { %v257_v38 = vld [vmem:[%s8462_s28 + $0x76c] sm:$0xff]  ;;  %254 = vst [vmem:[%s8467_s29 + $0x168] sm:$0xff] %v253_v36  ;;  %256 = vst [vmem:[%s8467_s29 + $0x170] sm:$0xff] %v255_v37  ;;  %v263_v41 = vld [vmem:[%s8462_s28 + $0x7d8] sm:$0xff] }
  0x24   : > { %258 = vst [vmem:[%s8467_s29 + $0x17c] sm:$0xff] %v257_v38  ;;  %v261_v40 = vld [vmem:[%s8462_s28 + $0x7d0] sm:$0xff]  ;;  %260 = vst [vmem:[%s8467_s29 + $0x184] sm:$0xff] %v259_v39  ;;  %v267_v43 = vld [vmem:[%s8462_s28 + $0x83c] sm:$0xff] }
  0x25   : > { %262 = vst [vmem:[%s8467_s29 + $0x190] sm:$0xff] %v261_v40  ;;  %264 = vst [vmem:[%s8467_s29 + $0x198] sm:$0xff] %v263_v41  ;;  %v265_v42 = vld [vmem:[%s8462_s28 + $0x834] sm:$0xff]  ;;  %v271_v45 = vld [vmem:[%s8462_s28 + $0x8a0] sm:$0xff] }
  0x26   : > { %v269_v44 = vld [vmem:[%s8462_s28 + $0x898] sm:$0xff]  ;;  %266 = vst [vmem:[%s8467_s29 + $0x1a4] sm:$0xff] %v265_v42  ;;  %268 = vst [vmem:[%s8467_s29 + $0x1ac] sm:$0xff] %v267_v43  ;;  %v275_v47 = vld [vmem:[%s8462_s28 + $0x904] sm:$0xff] }
  0x27   : > { %270 = vst [vmem:[%s8467_s29 + $0x1b8] sm:$0xff] %v269_v44  ;;  %v273_v46 = vld [vmem:[%s8462_s28 + $0x8fc] sm:$0xff]  ;;  %272 = vst [vmem:[%s8467_s29 + $0x1c0] sm:$0xff] %v271_v45  ;;  %v279_v49 = vld [vmem:[%s8462_s28 + $0x968] sm:$0xff] }
  0x28   : > { %274 = vst [vmem:[%s8467_s29 + $0x1cc] sm:$0xff] %v273_v46  ;;  %276 = vst [vmem:[%s8467_s29 + $0x1d4] sm:$0xff] %v275_v47  ;;  %v277_v48 = vld [vmem:[%s8462_s28 + $0x960] sm:$0xff]  ;;  %v283_v51 = vld [vmem:[%s8462_s28 + $0x9cc] sm:$0xff] }
  0x29   : > { %v281_v50 = vld [vmem:[%s8462_s28 + $0x9c4] sm:$0xff]  ;;  %278 = vst [vmem:[%s8467_s29 + $0x1e0] sm:$0xff] %v277_v48  ;;  %280 = vst [vmem:[%s8467_s29 + $0x1e8] sm:$0xff] %v279_v49  ;;  %v287_v53 = vld [vmem:[%s8462_s28 + $0xa30] sm:$0xff] }
  0x2a   : > { %282 = vst [vmem:[%s8467_s29 + $0x1f4] sm:$0xff] %v281_v50  ;;  %v285_v52 = vld [vmem:[%s8462_s28 + $0xa28] sm:$0xff]  ;;  %284 = vst [vmem:[%s8467_s29 + $0x1fc] sm:$0xff] %v283_v51  ;;  %v291_v55 = vld [vmem:[%s8462_s28 + $0xa94] sm:$0xff] }
  0x2b   : > { %286 = vst [vmem:[%s8467_s29 + $0x208] sm:$0xff] %v285_v52  ;;  %288 = vst [vmem:[%s8467_s29 + $0x210] sm:$0xff] %v287_v53  ;;  %v289_v54 = vld [vmem:[%s8462_s28 + $0xa8c] sm:$0xff]  ;;  %v295_v57 = vld [vmem:[%s8462_s28 + $0xaf8] sm:$0xff] }
  0x2c   : > { %v293_v56 = vld [vmem:[%s8462_s28 + $0xaf0] sm:$0xff]  ;;  %290 = vst [vmem:[%s8467_s29 + $0x21c] sm:$0xff] %v289_v54  ;;  %292 = vst [vmem:[%s8467_s29 + $0x224] sm:$0xff] %v291_v55  ;;  %v299_v59 = vld [vmem:[%s8462_s28 + $0xb5c] sm:$0xff] }
  0x2d   : > { %294 = vst [vmem:[%s8467_s29 + $0x230] sm:$0xff] %v293_v56  ;;  %v297_v58 = vld [vmem:[%s8462_s28 + $0xb54] sm:$0xff]  ;;  %296 = vst [vmem:[%s8467_s29 + $0x238] sm:$0xff] %v295_v57  ;;  %v303_v61 = vld [vmem:[%s8462_s28 + $0xbc0] sm:$0xff] }
  0x2e   : > { %298 = vst [vmem:[%s8467_s29 + $0x244] sm:$0xff] %v297_v58  ;;  %300 = vst [vmem:[%s8467_s29 + $0x24c] sm:$0xff] %v299_v59  ;;  %v301_v60 = vld [vmem:[%s8462_s28 + $0xbb8] sm:$0xff]  ;;  %v307_v63 = vld [vmem:[%s8462_s28 + $0xc24] sm:$0xff] }
  0x2f   : > { %v305_v62 = vld [vmem:[%s8462_s28 + $0xc1c] sm:$0xff]  ;;  %302 = vst [vmem:[%s8467_s29 + $0x258] sm:$0xff] %v301_v60  ;;  %304 = vst [vmem:[%s8467_s29 + $0x260] sm:$0xff] %v303_v61  ;;  %v311_v1 = vld [vmem:[%s8462_s28 + $0xc88] sm:$0xff] }
  0x30   : > { %306 = vst [vmem:[%s8467_s29 + $0x26c] sm:$0xff] %v305_v62  ;;  %v309_v0 = vld [vmem:[%s8462_s28 + $0xc80] sm:$0xff]  ;;  %308 = vst [vmem:[%s8467_s29 + $0x274] sm:$0xff] %v307_v63  ;;  %v315_v3 = vld [vmem:[%s8462_s28 + $0xcec] sm:$0xff] }
  0x31   : > { %310 = vst [vmem:[%s8467_s29 + $0x280] sm:$0xff] %v309_v0  ;;  %312 = vst [vmem:[%s8467_s29 + $0x288] sm:$0xff] %v311_v1  ;;  %v313_v2 = vld [vmem:[%s8462_s28 + $0xce4] sm:$0xff]  ;;  %v319_v5 = vld [vmem:[%s8462_s28 + $0xd50] sm:$0xff] }
  0x32   : > { %v317_v4 = vld [vmem:[%s8462_s28 + $0xd48] sm:$0xff]  ;;  %314 = vst [vmem:[%s8467_s29 + $0x294] sm:$0xff] %v313_v2  ;;  %316 = vst [vmem:[%s8467_s29 + $0x29c] sm:$0xff] %v315_v3  ;;  %v323_v7 = vld [vmem:[%s8462_s28 + $0xdb4] sm:$0xff] }
  0x33   : > { %318 = vst [vmem:[%s8467_s29 + $0x2a8] sm:$0xff] %v317_v4  ;;  %v321_v6 = vld [vmem:[%s8462_s28 + $0xdac] sm:$0xff]  ;;  %320 = vst [vmem:[%s8467_s29 + $0x2b0] sm:$0xff] %v319_v5  ;;  %v327_v9 = vld [vmem:[%s8462_s28 + $0xe18] sm:$0xff] }
  0x34   : > { %322 = vst [vmem:[%s8467_s29 + $0x2bc] sm:$0xff] %v321_v6  ;;  %324 = vst [vmem:[%s8467_s29 + $0x2c4] sm:$0xff] %v323_v7  ;;  %v325_v8 = vld [vmem:[%s8462_s28 + $0xe10] sm:$0xff]  ;;  %v331_v11 = vld [vmem:[%s8462_s28 + $0xe7c] sm:$0xff] }
  0x35   : > { %v329_v10 = vld [vmem:[%s8462_s28 + $0xe74] sm:$0xff]  ;;  %326 = vst [vmem:[%s8467_s29 + $0x2d0] sm:$0xff] %v325_v8  ;;  %328 = vst [vmem:[%s8467_s29 + $0x2d8] sm:$0xff] %v327_v9  ;;  %v335_v13 = vld [vmem:[%s8462_s28 + $0xee0] sm:$0xff] }
  0x36   : > { %330 = vst [vmem:[%s8467_s29 + $0x2e4] sm:$0xff] %v329_v10  ;;  %v333_v12 = vld [vmem:[%s8462_s28 + $0xed8] sm:$0xff]  ;;  %332 = vst [vmem:[%s8467_s29 + $0x2ec] sm:$0xff] %v331_v11  ;;  %v339_v15 = vld [vmem:[%s8462_s28 + $0xf44] sm:$0xff] }
  0x37   : > { %334 = vst [vmem:[%s8467_s29 + $0x2f8] sm:$0xff] %v333_v12  ;;  %336 = vst [vmem:[%s8467_s29 + $0x300] sm:$0xff] %v335_v13  ;;  %v337_v14 = vld [vmem:[%s8462_s28 + $0xf3c] sm:$0xff]  ;;  %v343_v17 = vld [vmem:[%s8462_s28 + $0xfa8] sm:$0xff] }
  0x38   : > { %v341_v16 = vld [vmem:[%s8462_s28 + $0xfa0] sm:$0xff]  ;;  %338 = vst [vmem:[%s8467_s29 + $0x30c] sm:$0xff] %v337_v14  ;;  %340 = vst [vmem:[%s8467_s29 + $0x314] sm:$0xff] %v339_v15  ;;  %v347_v19 = vld [vmem:[%s8462_s28 + $0x100c] sm:$0xff] }
  0x39   : > { %342 = vst [vmem:[%s8467_s29 + $0x320] sm:$0xff] %v341_v16  ;;  %v345_v18 = vld [vmem:[%s8462_s28 + $0x1004] sm:$0xff]  ;;  %344 = vst [vmem:[%s8467_s29 + $0x328] sm:$0xff] %v343_v17  ;;  %v351_v21 = vld [vmem:[%s8462_s28 + $0x1070] sm:$0xff] }
  0x3a   : > { %346 = vst [vmem:[%s8467_s29 + $0x334] sm:$0xff] %v345_v18  ;;  %348 = vst [vmem:[%s8467_s29 + $0x33c] sm:$0xff] %v347_v19  ;;  %v349_v20 = vld [vmem:[%s8462_s28 + $0x1068] sm:$0xff]  ;;  %v355_v23 = vld [vmem:[%s8462_s28 + $0x10d4] sm:$0xff] }
  0x3b   : > { %v353_v22 = vld [vmem:[%s8462_s28 + $0x10cc] sm:$0xff]  ;;  %350 = vst [vmem:[%s8467_s29 + $0x348] sm:$0xff] %v349_v20  ;;  %352 = vst [vmem:[%s8467_s29 + $0x350] sm:$0xff] %v351_v21  ;;  %v359_v25 = vld [vmem:[%s8462_s28 + $0x1138] sm:$0xff] }
  0x3c   : > { %354 = vst [vmem:[%s8467_s29 + $0x35c] sm:$0xff] %v353_v22  ;;  %v357_v24 = vld [vmem:[%s8462_s28 + $0x1130] sm:$0xff]  ;;  %356 = vst [vmem:[%s8467_s29 + $0x364] sm:$0xff] %v355_v23  ;;  %v363_v27 = vld [vmem:[%s8462_s28 + $0x119c] sm:$0xff] }
  0x3d   : > { %358 = vst [vmem:[%s8467_s29 + $0x370] sm:$0xff] %v357_v24  ;;  %360 = vst [vmem:[%s8467_s29 + $0x378] sm:$0xff] %v359_v25  ;;  %v361_v26 = vld [vmem:[%s8462_s28 + $0x1194] sm:$0xff]  ;;  %v367_v29 = vld [vmem:[%s8462_s28 + $0x1200] sm:$0xff] }
  0x3e   : > { %v365_v28 = vld [vmem:[%s8462_s28 + $0x11f8] sm:$0xff]  ;;  %362 = vst [vmem:[%s8467_s29 + $0x384] sm:$0xff] %v361_v26  ;;  %364 = vst [vmem:[%s8467_s29 + $0x38c] sm:$0xff] %v363_v27  ;;  %v371_v31 = vld [vmem:[%s8462_s28 + $0x1264] sm:$0xff] }
  0x3f   : > { %366 = vst [vmem:[%s8467_s29 + $0x398] sm:$0xff] %v365_v28  ;;  %v369_v30 = vld [vmem:[%s8462_s28 + $0x125c] sm:$0xff]  ;;  %368 = vst [vmem:[%s8467_s29 + $0x3a0] sm:$0xff] %v367_v29  ;;  %v375_v33 = vld [vmem:[%s8462_s28 + $0x12c8] sm:$0xff] }
  0x40   : > { %370 = vst [vmem:[%s8467_s29 + $0x3ac] sm:$0xff] %v369_v30  ;;  %372 = vst [vmem:[%s8467_s29 + $0x3b4] sm:$0xff] %v371_v31  ;;  %v373_v32 = vld [vmem:[%s8462_s28 + $0x12c0] sm:$0xff]  ;;  %v379_v35 = vld [vmem:[%s8462_s28 + $0x132c] sm:$0xff] }
  0x41   : > { %v377_v34 = vld [vmem:[%s8462_s28 + $0x1324] sm:$0xff]  ;;  %374 = vst [vmem:[%s8467_s29 + $0x3c0] sm:$0xff] %v373_v32  ;;  %376 = vst [vmem:[%s8467_s29 + $0x3c8] sm:$0xff] %v375_v33  ;;  %v383_v37 = vld [vmem:[%s8462_s28 + $0x1390] sm:$0xff] }
  0x42   : > { %378 = vst [vmem:[%s8467_s29 + $0x3d4] sm:$0xff] %v377_v34  ;;  %v381_v36 = vld [vmem:[%s8462_s28 + $0x1388] sm:$0xff]  ;;  %380 = vst [vmem:[%s8467_s29 + $0x3dc] sm:$0xff] %v379_v35  ;;  %v387_v39 = vld [vmem:[%s8462_s28 + $0x13f4] sm:$0xff] }
  0x43   : > { %382 = vst [vmem:[%s8467_s29 + $0x3e8] sm:$0xff] %v381_v36  ;;  %384 = vst [vmem:[%s8467_s29 + $0x3f0] sm:$0xff] %v383_v37  ;;  %v385_v38 = vld [vmem:[%s8462_s28 + $0x13ec] sm:$0xff]  ;;  %v391_v41 = vld [vmem:[%s8462_s28 + $0x1458] sm:$0xff] }
  0x44   : > { %v389_v40 = vld [vmem:[%s8462_s28 + $0x1450] sm:$0xff]  ;;  %386 = vst [vmem:[%s8467_s29 + $0x3fc] sm:$0xff] %v385_v38  ;;  %388 = vst [vmem:[%s8467_s29 + $0x404] sm:$0xff] %v387_v39  ;;  %v395_v43 = vld [vmem:[%s8462_s28 + $0x14bc] sm:$0xff] }
  0x45   : > { %390 = vst [vmem:[%s8467_s29 + $0x410] sm:$0xff] %v389_v40  ;;  %v393_v42 = vld [vmem:[%s8462_s28 + $0x14b4] sm:$0xff]  ;;  %392 = vst [vmem:[%s8467_s29 + $0x418] sm:$0xff] %v391_v41  ;;  %v399_v45 = vld [vmem:[%s8462_s28 + $0x1520] sm:$0xff] }
  0x46   : > { %394 = vst [vmem:[%s8467_s29 + $0x424] sm:$0xff] %v393_v42  ;;  %396 = vst [vmem:[%s8467_s29 + $0x42c] sm:$0xff] %v395_v43  ;;  %v397_v44 = vld [vmem:[%s8462_s28 + $0x1518] sm:$0xff]  ;;  %v403_v47 = vld [vmem:[%s8462_s28 + $0x1584] sm:$0xff] }
  0x47   : > { %v401_v46 = vld [vmem:[%s8462_s28 + $0x157c] sm:$0xff]  ;;  %398 = vst [vmem:[%s8467_s29 + $0x438] sm:$0xff] %v397_v44  ;;  %400 = vst [vmem:[%s8467_s29 + $0x440] sm:$0xff] %v399_v45  ;;  %v407_v49 = vld [vmem:[%s8462_s28 + $0x15e8] sm:$0xff] }
  0x48   : > { %402 = vst [vmem:[%s8467_s29 + $0x44c] sm:$0xff] %v401_v46  ;;  %v405_v48 = vld [vmem:[%s8462_s28 + $0x15e0] sm:$0xff]  ;;  %404 = vst [vmem:[%s8467_s29 + $0x454] sm:$0xff] %v403_v47  ;;  %v411_v51 = vld [vmem:[%s8462_s28 + $0x164c] sm:$0xff] }
  0x49   : > { %406 = vst [vmem:[%s8467_s29 + $0x460] sm:$0xff] %v405_v48  ;;  %408 = vst [vmem:[%s8467_s29 + $0x468] sm:$0xff] %v407_v49  ;;  %v409_v50 = vld [vmem:[%s8462_s28 + $0x1644] sm:$0xff]  ;;  %v415_v53 = vld [vmem:[%s8462_s28 + $0x16b0] sm:$0xff] }
  0x4a   : > { %v413_v52 = vld [vmem:[%s8462_s28 + $0x16a8] sm:$0xff]  ;;  %410 = vst [vmem:[%s8467_s29 + $0x474] sm:$0xff] %v409_v50  ;;  %412 = vst [vmem:[%s8467_s29 + $0x47c] sm:$0xff] %v411_v51  ;;  %v419_v55 = vld [vmem:[%s8462_s28 + $0x1714] sm:$0xff] }
  0x4b   : > { %414 = vst [vmem:[%s8467_s29 + $0x488] sm:$0xff] %v413_v52  ;;  %v417_v54 = vld [vmem:[%s8462_s28 + $0x170c] sm:$0xff]  ;;  %416 = vst [vmem:[%s8467_s29 + $0x490] sm:$0xff] %v415_v53  ;;  %v423_v57 = vld [vmem:[%s8462_s28 + $0x1778] sm:$0xff] }
  0x4c   : > { %418 = vst [vmem:[%s8467_s29 + $0x49c] sm:$0xff] %v417_v54  ;;  %420 = vst [vmem:[%s8467_s29 + $0x4a4] sm:$0xff] %v419_v55  ;;  %v421_v56 = vld [vmem:[%s8462_s28 + $0x1770] sm:$0xff]  ;;  %v427_v59 = vld [vmem:[%s8462_s28 + $0x17dc] sm:$0xff] }
  0x4d   : > { %v425_v58 = vld [vmem:[%s8462_s28 + $0x17d4] sm:$0xff]  ;;  %422 = vst [vmem:[%s8467_s29 + $0x4b0] sm:$0xff] %v421_v56  ;;  %424 = vst [vmem:[%s8467_s29 + $0x4b8] sm:$0xff] %v423_v57  ;;  %v431_v61 = vld [vmem:[%s8462_s28 + $0x1840] sm:$0xff] }
  0x4e   : > { %426 = vst [vmem:[%s8467_s29 + $0x4c4] sm:$0xff] %v425_v58  ;;  %v429_v60 = vld [vmem:[%s8462_s28 + $0x1838] sm:$0xff]  ;;  %428 = vst [vmem:[%s8467_s29 + $0x4cc] sm:$0xff] %v427_v59  ;;  %v435_v63 = vld [vmem:[%s8462_s28 + $0x18a4] sm:$0xff] }
  0x4f   : > { %430 = vst [vmem:[%s8467_s29 + $0x4d8] sm:$0xff] %v429_v60  ;;  %432 = vst [vmem:[%s8467_s29 + $0x4e0] sm:$0xff] %v431_v61  ;;  %v433_v62 = vld [vmem:[%s8462_s28 + $0x189c] sm:$0xff]  ;;  %v439_v1 = vld [vmem:[%s8462_s28 + $0x1908] sm:$0xff] }
  0x50   : > { %v437_v0 = vld [vmem:[%s8462_s28 + $0x1900] sm:$0xff]  ;;  %434 = vst [vmem:[%s8467_s29 + $0x4ec] sm:$0xff] %v433_v62  ;;  %436 = vst [vmem:[%s8467_s29 + $0x4f4] sm:$0xff] %v435_v63  ;;  %v443_v3 = vld [vmem:[%s8462_s28 + $0x196c] sm:$0xff] }
  0x51   : > { %438 = vst [vmem:[%s8467_s29 + $0x500] sm:$0xff] %v437_v0  ;;  %v441_v2 = vld [vmem:[%s8462_s28 + $0x1964] sm:$0xff]  ;;  %440 = vst [vmem:[%s8467_s29 + $0x508] sm:$0xff] %v439_v1  ;;  %v447_v5 = vld [vmem:[%s8462_s28 + $0x19d0] sm:$0xff] }
  0x52   : > { %442 = vst [vmem:[%s8467_s29 + $0x514] sm:$0xff] %v441_v2  ;;  %444 = vst [vmem:[%s8467_s29 + $0x51c] sm:$0xff] %v443_v3  ;;  %v445_v4 = vld [vmem:[%s8462_s28 + $0x19c8] sm:$0xff]  ;;  %v451_v7 = vld [vmem:[%s8462_s28 + $0x1a34] sm:$0xff] }
  0x53   : > { %v449_v6 = vld [vmem:[%s8462_s28 + $0x1a2c] sm:$0xff]  ;;  %446 = vst [vmem:[%s8467_s29 + $0x528] sm:$0xff] %v445_v4  ;;  %448 = vst [vmem:[%s8467_s29 + $0x530] sm:$0xff] %v447_v5  ;;  %v455_v9 = vld [vmem:[%s8462_s28 + $0x1a98] sm:$0xff] }
  0x54   : > { %450 = vst [vmem:[%s8467_s29 + $0x53c] sm:$0xff] %v449_v6  ;;  %v453_v8 = vld [vmem:[%s8462_s28 + $0x1a90] sm:$0xff]  ;;  %452 = vst [vmem:[%s8467_s29 + $0x544] sm:$0xff] %v451_v7  ;;  %v459_v11 = vld [vmem:[%s8462_s28 + $0x1afc] sm:$0xff] }
  0x55   : > { %454 = vst [vmem:[%s8467_s29 + $0x550] sm:$0xff] %v453_v8  ;;  %456 = vst [vmem:[%s8467_s29 + $0x558] sm:$0xff] %v455_v9  ;;  %v457_v10 = vld [vmem:[%s8462_s28 + $0x1af4] sm:$0xff]  ;;  %v463_v13 = vld [vmem:[%s8462_s28 + $0x1b60] sm:$0xff] }
  0x56   : > { %v461_v12 = vld [vmem:[%s8462_s28 + $0x1b58] sm:$0xff]  ;;  %458 = vst [vmem:[%s8467_s29 + $0x564] sm:$0xff] %v457_v10  ;;  %460 = vst [vmem:[%s8467_s29 + $0x56c] sm:$0xff] %v459_v11  ;;  %v467_v15 = vld [vmem:[%s8462_s28 + $0x1bc4] sm:$0xff] }
  0x57   : > { %462 = vst [vmem:[%s8467_s29 + $0x578] sm:$0xff] %v461_v12  ;;  %v465_v14 = vld [vmem:[%s8462_s28 + $0x1bbc] sm:$0xff]  ;;  %464 = vst [vmem:[%s8467_s29 + $0x580] sm:$0xff] %v463_v13  ;;  %v471_v17 = vld [vmem:[%s8462_s28 + $0x1c28] sm:$0xff] }
  0x58   : > { %466 = vst [vmem:[%s8467_s29 + $0x58c] sm:$0xff] %v465_v14  ;;  %468 = vst [vmem:[%s8467_s29 + $0x594] sm:$0xff] %v467_v15  ;;  %v469_v16 = vld [vmem:[%s8462_s28 + $0x1c20] sm:$0xff]  ;;  %v475_v19 = vld [vmem:[%s8462_s28 + $0x1c8c] sm:$0xff] }
  0x59   : > { %v473_v18 = vld [vmem:[%s8462_s28 + $0x1c84] sm:$0xff]  ;;  %470 = vst [vmem:[%s8467_s29 + $0x5a0] sm:$0xff] %v469_v16  ;;  %472 = vst [vmem:[%s8467_s29 + $0x5a8] sm:$0xff] %v471_v17  ;;  %v479_v21 = vld [vmem:[%s8462_s28 + $0x1cf0] sm:$0xff] }
  0x5a   : > { %474 = vst [vmem:[%s8467_s29 + $0x5b4] sm:$0xff] %v473_v18  ;;  %v477_v20 = vld [vmem:[%s8462_s28 + $0x1ce8] sm:$0xff]  ;;  %476 = vst [vmem:[%s8467_s29 + $0x5bc] sm:$0xff] %v475_v19  ;;  %v483_v23 = vld [vmem:[%s8462_s28 + $0x1d54] sm:$0xff] }
  0x5b   : > { %478 = vst [vmem:[%s8467_s29 + $0x5c8] sm:$0xff] %v477_v20  ;;  %480 = vst [vmem:[%s8467_s29 + $0x5d0] sm:$0xff] %v479_v21  ;;  %v481_v22 = vld [vmem:[%s8462_s28 + $0x1d4c] sm:$0xff]  ;;  %v487_v25 = vld [vmem:[%s8462_s28 + $0x1db8] sm:$0xff] }
  0x5c   : > { %v485_v24 = vld [vmem:[%s8462_s28 + $0x1db0] sm:$0xff]  ;;  %482 = vst [vmem:[%s8467_s29 + $0x5dc] sm:$0xff] %v481_v22  ;;  %484 = vst [vmem:[%s8467_s29 + $0x5e4] sm:$0xff] %v483_v23  ;;  %v491_v27 = vld [vmem:[%s8462_s28 + $0x1e1c] sm:$0xff] }
  0x5d   : > { %486 = vst [vmem:[%s8467_s29 + $0x5f0] sm:$0xff] %v485_v24  ;;  %v489_v26 = vld [vmem:[%s8462_s28 + $0x1e14] sm:$0xff]  ;;  %488 = vst [vmem:[%s8467_s29 + $0x5f8] sm:$0xff] %v487_v25  ;;  %v495_v29 = vld [vmem:[%s8462_s28 + $0x1e80] sm:$0xff] }
  0x5e   : > { %490 = vst [vmem:[%s8467_s29 + $0x604] sm:$0xff] %v489_v26  ;;  %492 = vst [vmem:[%s8467_s29 + $0x60c] sm:$0xff] %v491_v27  ;;  %v493_v28 = vld [vmem:[%s8462_s28 + $0x1e78] sm:$0xff]  ;;  %v499_v31 = vld [vmem:[%s8462_s28 + $0x1ee4] sm:$0xff] }
  0x5f   : > { %v497_v30 = vld [vmem:[%s8462_s28 + $0x1edc] sm:$0xff]  ;;  %494 = vst [vmem:[%s8467_s29 + $0x618] sm:$0xff] %v493_v28  ;;  %496 = vst [vmem:[%s8467_s29 + $0x620] sm:$0xff] %v495_v29  ;;  %v503_v33 = vld [vmem:[%s8462_s28 + $0x1f48] sm:$0xff] }
  0x60   : > { %498 = vst [vmem:[%s8467_s29 + $0x62c] sm:$0xff] %v497_v30  ;;  %v501_v32 = vld [vmem:[%s8462_s28 + $0x1f40] sm:$0xff]  ;;  %500 = vst [vmem:[%s8467_s29 + $0x634] sm:$0xff] %v499_v31  ;;  %v507_v35 = vld [vmem:[%s8462_s28 + $0x1fac] sm:$0xff] }
  0x61   : > { %502 = vst [vmem:[%s8467_s29 + $0x640] sm:$0xff] %v501_v32  ;;  %504 = vst [vmem:[%s8467_s29 + $0x648] sm:$0xff] %v503_v33  ;;  %v505_v34 = vld [vmem:[%s8462_s28 + $0x1fa4] sm:$0xff]  ;;  %v511_v37 = vld [vmem:[%s8462_s28 + $0x2010] sm:$0xff] }
  0x62   : > { %v509_v36 = vld [vmem:[%s8462_s28 + $0x2008] sm:$0xff]  ;;  %506 = vst [vmem:[%s8467_s29 + $0x654] sm:$0xff] %v505_v34  ;;  %508 = vst [vmem:[%s8467_s29 + $0x65c] sm:$0xff] %v507_v35  ;;  %v515_v39 = vld [vmem:[%s8462_s28 + $0x2074] sm:$0xff] }
  0x63   : > { %510 = vst [vmem:[%s8467_s29 + $0x668] sm:$0xff] %v509_v36  ;;  %v513_v38 = vld [vmem:[%s8462_s28 + $0x206c] sm:$0xff]  ;;  %512 = vst [vmem:[%s8467_s29 + $0x670] sm:$0xff] %v511_v37  ;;  %v519_v41 = vld [vmem:[%s8462_s28 + $0x20d8] sm:$0xff] }
  0x64   : > { %514 = vst [vmem:[%s8467_s29 + $0x67c] sm:$0xff] %v513_v38  ;;  %516 = vst [vmem:[%s8467_s29 + $0x684] sm:$0xff] %v515_v39  ;;  %v517_v40 = vld [vmem:[%s8462_s28 + $0x20d0] sm:$0xff]  ;;  %v523_v43 = vld [vmem:[%s8462_s28 + $0x213c] sm:$0xff] }
  0x65   : > { %v521_v42 = vld [vmem:[%s8462_s28 + $0x2134] sm:$0xff]  ;;  %518 = vst [vmem:[%s8467_s29 + $0x690] sm:$0xff] %v517_v40  ;;  %520 = vst [vmem:[%s8467_s29 + $0x698] sm:$0xff] %v519_v41  ;;  %v527_v45 = vld [vmem:[%s8462_s28 + $0x21a0] sm:$0xff] }
  0x66   : > { %522 = vst [vmem:[%s8467_s29 + $0x6a4] sm:$0xff] %v521_v42  ;;  %v525_v44 = vld [vmem:[%s8462_s28 + $0x2198] sm:$0xff]  ;;  %524 = vst [vmem:[%s8467_s29 + $0x6ac] sm:$0xff] %v523_v43  ;;  %v531_v47 = vld [vmem:[%s8462_s28 + $0x2204] sm:$0xff] }
  0x67   : > { %526 = vst [vmem:[%s8467_s29 + $0x6b8] sm:$0xff] %v525_v44  ;;  %528 = vst [vmem:[%s8467_s29 + $0x6c0] sm:$0xff] %v527_v45  ;;  %v529_v46 = vld [vmem:[%s8462_s28 + $0x21fc] sm:$0xff]  ;;  %v535_v49 = vld [vmem:[%s8462_s28 + $0x2268] sm:$0xff] }
  0x68   : > { %v533_v48 = vld [vmem:[%s8462_s28 + $0x2260] sm:$0xff]  ;;  %530 = vst [vmem:[%s8467_s29 + $0x6cc] sm:$0xff] %v529_v46  ;;  %532 = vst [vmem:[%s8467_s29 + $0x6d4] sm:$0xff] %v531_v47  ;;  %v539_v51 = vld [vmem:[%s8462_s28 + $0x22cc] sm:$0xff] }
  0x69   : > { %534 = vst [vmem:[%s8467_s29 + $0x6e0] sm:$0xff] %v533_v48  ;;  %v537_v50 = vld [vmem:[%s8462_s28 + $0x22c4] sm:$0xff]  ;;  %536 = vst [vmem:[%s8467_s29 + $0x6e8] sm:$0xff] %v535_v49  ;;  %v543_v53 = vld [vmem:[%s8462_s28 + $0x2330] sm:$0xff] }
  0x6a   : > { %538 = vst [vmem:[%s8467_s29 + $0x6f4] sm:$0xff] %v537_v50  ;;  %540 = vst [vmem:[%s8467_s29 + $0x6fc] sm:$0xff] %v539_v51  ;;  %v541_v52 = vld [vmem:[%s8462_s28 + $0x2328] sm:$0xff]  ;;  %v547_v55 = vld [vmem:[%s8462_s28 + $0x2394] sm:$0xff] }
  0x6b   : > { %v545_v54 = vld [vmem:[%s8462_s28 + $0x238c] sm:$0xff]  ;;  %542 = vst [vmem:[%s8467_s29 + $0x708] sm:$0xff] %v541_v52  ;;  %544 = vst [vmem:[%s8467_s29 + $0x710] sm:$0xff] %v543_v53  ;;  %v551_v57 = vld [vmem:[%s8462_s28 + $0x23f8] sm:$0xff] }
  0x6c   : > { %546 = vst [vmem:[%s8467_s29 + $0x71c] sm:$0xff] %v545_v54  ;;  %v549_v56 = vld [vmem:[%s8462_s28 + $0x23f0] sm:$0xff]  ;;  %548 = vst [vmem:[%s8467_s29 + $0x724] sm:$0xff] %v547_v55  ;;  %v555_v59 = vld [vmem:[%s8462_s28 + $0x245c] sm:$0xff] }
  0x6d   : > { %550 = vst [vmem:[%s8467_s29 + $0x730] sm:$0xff] %v549_v56  ;;  %552 = vst [vmem:[%s8467_s29 + $0x738] sm:$0xff] %v551_v57  ;;  %v553_v58 = vld [vmem:[%s8462_s28 + $0x2454] sm:$0xff]  ;;  %v559_v61 = vld [vmem:[%s8462_s28 + $0x24c0] sm:$0xff] }
  0x6e   : > { %v557_v60 = vld [vmem:[%s8462_s28 + $0x24b8] sm:$0xff]  ;;  %554 = vst [vmem:[%s8467_s29 + $0x744] sm:$0xff] %v553_v58  ;;  %556 = vst [vmem:[%s8467_s29 + $0x74c] sm:$0xff] %v555_v59  ;;  %v563_v63 = vld [vmem:[%s8462_s28 + $0x2524] sm:$0xff] }
  0x6f   : > { %558 = vst [vmem:[%s8467_s29 + $0x758] sm:$0xff] %v557_v60  ;;  %v561_v62 = vld [vmem:[%s8462_s28 + $0x251c] sm:$0xff]  ;;  %560 = vst [vmem:[%s8467_s29 + $0x760] sm:$0xff] %v559_v61  ;;  %v567_v1 = vld [vmem:[%s8462_s28 + $0x2588] sm:$0xff] }
  0x70   : > { %562 = vst [vmem:[%s8467_s29 + $0x76c] sm:$0xff] %v561_v62  ;;  %564 = vst [vmem:[%s8467_s29 + $0x774] sm:$0xff] %v563_v63  ;;  %v565_v0 = vld [vmem:[%s8462_s28 + $0x2580] sm:$0xff]  ;;  %v571_v3 = vld [vmem:[%s8462_s28 + $0x25ec] sm:$0xff] }
  0x71   : > { %v569_v2 = vld [vmem:[%s8462_s28 + $0x25e4] sm:$0xff]  ;;  %566 = vst [vmem:[%s8467_s29 + $0x780] sm:$0xff] %v565_v0  ;;  %568 = vst [vmem:[%s8467_s29 + $0x788] sm:$0xff] %v567_v1  ;;  %v575_v5 = vld [vmem:[%s8462_s28 + $0x2650] sm:$0xff] }
  0x72   : > { %570 = vst [vmem:[%s8467_s29 + $0x794] sm:$0xff] %v569_v2  ;;  %v573_v4 = vld [vmem:[%s8462_s28 + $0x2648] sm:$0xff]  ;;  %572 = vst [vmem:[%s8467_s29 + $0x79c] sm:$0xff] %v571_v3  ;;  %v579_v7 = vld [vmem:[%s8462_s28 + $0x26b4] sm:$0xff] }
  0x73   : > { %574 = vst [vmem:[%s8467_s29 + $0x7a8] sm:$0xff] %v573_v4  ;;  %576 = vst [vmem:[%s8467_s29 + $0x7b0] sm:$0xff] %v575_v5  ;;  %v577_v6 = vld [vmem:[%s8462_s28 + $0x26ac] sm:$0xff]  ;;  %v583_v9 = vld [vmem:[%s8462_s28 + $0x2718] sm:$0xff] }
  0x74   : > { %v581_v8 = vld [vmem:[%s8462_s28 + $0x2710] sm:$0xff]  ;;  %578 = vst [vmem:[%s8467_s29 + $0x7bc] sm:$0xff] %v577_v6  ;;  %580 = vst [vmem:[%s8467_s29 + $0x7c4] sm:$0xff] %v579_v7  ;;  %v587_v11 = vld [vmem:[%s8462_s28 + $0x277c] sm:$0xff] }
  0x75   : > { %582 = vst [vmem:[%s8467_s29 + $0x7d0] sm:$0xff] %v581_v8  ;;  %v585_v10 = vld [vmem:[%s8462_s28 + $0x2774] sm:$0xff]  ;;  %584 = vst [vmem:[%s8467_s29 + $0x7d8] sm:$0xff] %v583_v9  ;;  %v591_v13 = vld [vmem:[%s8462_s28 + $0x27e0] sm:$0xff] }
  0x76   : > { %586 = vst [vmem:[%s8467_s29 + $0x7e4] sm:$0xff] %v585_v10  ;;  %588 = vst [vmem:[%s8467_s29 + $0x7ec] sm:$0xff] %v587_v11  ;;  %v589_v12 = vld [vmem:[%s8462_s28 + $0x27d8] sm:$0xff]  ;;  %v595_v15 = vld [vmem:[%s8462_s28 + $0x2844] sm:$0xff] }
  0x77   : > { %v593_v14 = vld [vmem:[%s8462_s28 + $0x283c] sm:$0xff]  ;;  %590 = vst [vmem:[%s8467_s29 + $0x7f8] sm:$0xff] %v589_v12  ;;  %592 = vst [vmem:[%s8467_s29 + $0x800] sm:$0xff] %v591_v13  ;;  %v599_v17 = vld [vmem:[%s8462_s28 + $0x28a8] sm:$0xff] }
  0x78   : > { %594 = vst [vmem:[%s8467_s29 + $0x80c] sm:$0xff] %v593_v14  ;;  %v597_v16 = vld [vmem:[%s8462_s28 + $0x28a0] sm:$0xff]  ;;  %596 = vst [vmem:[%s8467_s29 + $0x814] sm:$0xff] %v595_v15  ;;  %v603_v19 = vld [vmem:[%s8462_s28 + $0x290c] sm:$0xff] }
  0x79   : > { %598 = vst [vmem:[%s8467_s29 + $0x820] sm:$0xff] %v597_v16  ;;  %600 = vst [vmem:[%s8467_s29 + $0x828] sm:$0xff] %v599_v17  ;;  %v601_v18 = vld [vmem:[%s8462_s28 + $0x2904] sm:$0xff]  ;;  %v607_v21 = vld [vmem:[%s8462_s28 + $0x2970] sm:$0xff] }
  0x7a   : > { %v605_v20 = vld [vmem:[%s8462_s28 + $0x2968] sm:$0xff]  ;;  %602 = vst [vmem:[%s8467_s29 + $0x834] sm:$0xff] %v601_v18  ;;  %604 = vst [vmem:[%s8467_s29 + $0x83c] sm:$0xff] %v603_v19  ;;  %v611_v23 = vld [vmem:[%s8462_s28 + $0x29d4] sm:$0xff] }
  0x7b   : > { %606 = vst [vmem:[%s8467_s29 + $0x848] sm:$0xff] %v605_v20  ;;  %v609_v22 = vld [vmem:[%s8462_s28 + $0x29cc] sm:$0xff]  ;;  %608 = vst [vmem:[%s8467_s29 + $0x850] sm:$0xff] %v607_v21  ;;  %v615_v25 = vld [vmem:[%s8462_s28 + $0x2a38] sm:$0xff] }
  0x7c   : > { %610 = vst [vmem:[%s8467_s29 + $0x85c] sm:$0xff] %v609_v22  ;;  %612 = vst [vmem:[%s8467_s29 + $0x864] sm:$0xff] %v611_v23  ;;  %v613_v24 = vld [vmem:[%s8462_s28 + $0x2a30] sm:$0xff]  ;;  %v619_v27 = vld [vmem:[%s8462_s28 + $0x2a9c] sm:$0xff] }
  0x7d   : > { %v617_v26 = vld [vmem:[%s8462_s28 + $0x2a94] sm:$0xff]  ;;  %614 = vst [vmem:[%s8467_s29 + $0x870] sm:$0xff] %v613_v24  ;;  %616 = vst [vmem:[%s8467_s29 + $0x878] sm:$0xff] %v615_v25  ;;  %v623_v29 = vld [vmem:[%s8462_s28 + $0x2b00] sm:$0xff] }
  0x7e   : > { %618 = vst [vmem:[%s8467_s29 + $0x884] sm:$0xff] %v617_v26  ;;  %v621_v28 = vld [vmem:[%s8462_s28 + $0x2af8] sm:$0xff]  ;;  %620 = vst [vmem:[%s8467_s29 + $0x88c] sm:$0xff] %v619_v27  ;;  %v627_v31 = vld [vmem:[%s8462_s28 + $0x2b64] sm:$0xff] }
  0x7f   : > { %622 = vst [vmem:[%s8467_s29 + $0x898] sm:$0xff] %v621_v28  ;;  %624 = vst [vmem:[%s8467_s29 + $0x8a0] sm:$0xff] %v623_v29  ;;  %v625_v30 = vld [vmem:[%s8462_s28 + $0x2b5c] sm:$0xff]  ;;  %v631_v33 = vld [vmem:[%s8462_s28 + $0x2bc8] sm:$0xff] }
  0x80   : > { %v629_v32 = vld [vmem:[%s8462_s28 + $0x2bc0] sm:$0xff]  ;;  %626 = vst [vmem:[%s8467_s29 + $0x8ac] sm:$0xff] %v625_v30  ;;  %628 = vst [vmem:[%s8467_s29 + $0x8b4] sm:$0xff] %v627_v31  ;;  %v635_v35 = vld [vmem:[%s8462_s28 + $0x2c2c] sm:$0xff] }
  0x81   : > { %630 = vst [vmem:[%s8467_s29 + $0x8c0] sm:$0xff] %v629_v32  ;;  %v633_v34 = vld [vmem:[%s8462_s28 + $0x2c24] sm:$0xff]  ;;  %632 = vst [vmem:[%s8467_s29 + $0x8c8] sm:$0xff] %v631_v33  ;;  %v639_v37 = vld [vmem:[%s8462_s28 + $0x2c90] sm:$0xff] }
  0x82   : > { %634 = vst [vmem:[%s8467_s29 + $0x8d4] sm:$0xff] %v633_v34  ;;  %636 = vst [vmem:[%s8467_s29 + $0x8dc] sm:$0xff] %v635_v35  ;;  %v637_v36 = vld [vmem:[%s8462_s28 + $0x2c88] sm:$0xff]  ;;  %v643_v39 = vld [vmem:[%s8462_s28 + $0x2cf4] sm:$0xff] }
  0x83   : > { %v641_v38 = vld [vmem:[%s8462_s28 + $0x2cec] sm:$0xff]  ;;  %638 = vst [vmem:[%s8467_s29 + $0x8e8] sm:$0xff] %v637_v36  ;;  %640 = vst [vmem:[%s8467_s29 + $0x8f0] sm:$0xff] %v639_v37  ;;  %v647_v41 = vld [vmem:[%s8462_s28 + $0x2d58] sm:$0xff] }
  0x84   : > { %642 = vst [vmem:[%s8467_s29 + $0x8fc] sm:$0xff] %v641_v38  ;;  %v645_v40 = vld [vmem:[%s8462_s28 + $0x2d50] sm:$0xff]  ;;  %644 = vst [vmem:[%s8467_s29 + $0x904] sm:$0xff] %v643_v39  ;;  %v651_v43 = vld [vmem:[%s8462_s28 + $0x2dbc] sm:$0xff] }
  0x85   : > { %646 = vst [vmem:[%s8467_s29 + $0x910] sm:$0xff] %v645_v40  ;;  %648 = vst [vmem:[%s8467_s29 + $0x918] sm:$0xff] %v647_v41  ;;  %v649_v42 = vld [vmem:[%s8462_s28 + $0x2db4] sm:$0xff]  ;;  %v655_v45 = vld [vmem:[%s8462_s28 + $0x2e20] sm:$0xff] }
  0x86   : > { %v653_v44 = vld [vmem:[%s8462_s28 + $0x2e18] sm:$0xff]  ;;  %650 = vst [vmem:[%s8467_s29 + $0x924] sm:$0xff] %v649_v42  ;;  %652 = vst [vmem:[%s8467_s29 + $0x92c] sm:$0xff] %v651_v43  ;;  %v659_v47 = vld [vmem:[%s8462_s28 + $0x2e84] sm:$0xff] }
  0x87   : > { %654 = vst [vmem:[%s8467_s29 + $0x938] sm:$0xff] %v653_v44  ;;  %v657_v46 = vld [vmem:[%s8462_s28 + $0x2e7c] sm:$0xff]  ;;  %656 = vst [vmem:[%s8467_s29 + $0x940] sm:$0xff] %v655_v45  ;;  %v663_v49 = vld [vmem:[%s8462_s28 + $0x2ee8] sm:$0xff] }
  0x88   : > { %658 = vst [vmem:[%s8467_s29 + $0x94c] sm:$0xff] %v657_v46  ;;  %660 = vst [vmem:[%s8467_s29 + $0x954] sm:$0xff] %v659_v47  ;;  %v661_v48 = vld [vmem:[%s8462_s28 + $0x2ee0] sm:$0xff]  ;;  %v667_v51 = vld [vmem:[%s8462_s28 + $0x2f4c] sm:$0xff] }
  0x89   : > { %v665_v50 = vld [vmem:[%s8462_s28 + $0x2f44] sm:$0xff]  ;;  %662 = vst [vmem:[%s8467_s29 + $0x960] sm:$0xff] %v661_v48  ;;  %664 = vst [vmem:[%s8467_s29 + $0x968] sm:$0xff] %v663_v49  ;;  %v671_v53 = vld [vmem:[%s8462_s28 + $0x2fb0] sm:$0xff] }
  0x8a   : > { %666 = vst [vmem:[%s8467_s29 + $0x974] sm:$0xff] %v665_v50  ;;  %v669_v52 = vld [vmem:[%s8462_s28 + $0x2fa8] sm:$0xff]  ;;  %668 = vst [vmem:[%s8467_s29 + $0x97c] sm:$0xff] %v667_v51  ;;  %v675_v55 = vld [vmem:[%s8462_s28 + $0x3014] sm:$0xff] }
  0x8b   : > { %670 = vst [vmem:[%s8467_s29 + $0x988] sm:$0xff] %v669_v52  ;;  %672 = vst [vmem:[%s8467_s29 + $0x990] sm:$0xff] %v671_v53  ;;  %v673_v54 = vld [vmem:[%s8462_s28 + $0x300c] sm:$0xff]  ;;  %v679_v57 = vld [vmem:[%s8462_s28 + $0x3078] sm:$0xff] }
  0x8c   : > { %v677_v56 = vld [vmem:[%s8462_s28 + $0x3070] sm:$0xff]  ;;  %674 = vst [vmem:[%s8467_s29 + $0x99c] sm:$0xff] %v673_v54  ;;  %676 = vst [vmem:[%s8467_s29 + $0x9a4] sm:$0xff] %v675_v55  ;;  %v683_v59 = vld [vmem:[%s8462_s28 + $0x30dc] sm:$0xff] }
  0x8d   : > { %678 = vst [vmem:[%s8467_s29 + $0x9b0] sm:$0xff] %v677_v56  ;;  %v681_v58 = vld [vmem:[%s8462_s28 + $0x30d4] sm:$0xff]  ;;  %680 = vst [vmem:[%s8467_s29 + $0x9b8] sm:$0xff] %v679_v57  ;;  %v687_v61 = vld [vmem:[%s8462_s28 + $0x3140] sm:$0xff] }
  0x8e   : > { %682 = vst [vmem:[%s8467_s29 + $0x9c4] sm:$0xff] %v681_v58  ;;  %684 = vst [vmem:[%s8467_s29 + $0x9cc] sm:$0xff] %v683_v59  ;;  %v685_v60 = vld [vmem:[%s8462_s28 + $0x3138] sm:$0xff]  ;;  %v691_v63 = vld [vmem:[%s8462_s28 + $0x31a4] sm:$0xff] }
  0x8f   : > { %v689_v62 = vld [vmem:[%s8462_s28 + $0x319c] sm:$0xff]  ;;  %686 = vst [vmem:[%s8467_s29 + $0x9d8] sm:$0xff] %v685_v60  ;;  %688 = vst [vmem:[%s8467_s29 + $0x9e0] sm:$0xff] %v687_v61  ;;  %v695_v1 = vld [vmem:[%s8462_s28 + $0x3208] sm:$0xff] }
  0x90   : > { %690 = vst [vmem:[%s8467_s29 + $0x9ec] sm:$0xff] %v689_v62  ;;  %v693_v0 = vld [vmem:[%s8462_s28 + $0x3200] sm:$0xff]  ;;  %692 = vst [vmem:[%s8467_s29 + $0x9f4] sm:$0xff] %v691_v63  ;;  %v699_v3 = vld [vmem:[%s8462_s28 + $0x326c] sm:$0xff] }
  0x91   : > { %694 = vst [vmem:[%s8467_s29 + $0xa00] sm:$0xff] %v693_v0  ;;  %696 = vst [vmem:[%s8467_s29 + $0xa08] sm:$0xff] %v695_v1  ;;  %v697_v2 = vld [vmem:[%s8462_s28 + $0x3264] sm:$0xff]  ;;  %v703_v5 = vld [vmem:[%s8462_s28 + $0x32d0] sm:$0xff] }
  0x92   : > { %v701_v4 = vld [vmem:[%s8462_s28 + $0x32c8] sm:$0xff]  ;;  %698 = vst [vmem:[%s8467_s29 + $0xa14] sm:$0xff] %v697_v2  ;;  %700 = vst [vmem:[%s8467_s29 + $0xa1c] sm:$0xff] %v699_v3  ;;  %v707_v7 = vld [vmem:[%s8462_s28 + $0x3334] sm:$0xff] }
  0x93   : > { %702 = vst [vmem:[%s8467_s29 + $0xa28] sm:$0xff] %v701_v4  ;;  %v705_v6 = vld [vmem:[%s8462_s28 + $0x332c] sm:$0xff]  ;;  %704 = vst [vmem:[%s8467_s29 + $0xa30] sm:$0xff] %v703_v5  ;;  %v711_v9 = vld [vmem:[%s8462_s28 + $0x3398] sm:$0xff] }
  0x94   : > { %706 = vst [vmem:[%s8467_s29 + $0xa3c] sm:$0xff] %v705_v6  ;;  %708 = vst [vmem:[%s8467_s29 + $0xa44] sm:$0xff] %v707_v7  ;;  %v709_v8 = vld [vmem:[%s8462_s28 + $0x3390] sm:$0xff]  ;;  %v715_v11 = vld [vmem:[%s8462_s28 + $0x33fc] sm:$0xff] }
  0x95   : > { %v713_v10 = vld [vmem:[%s8462_s28 + $0x33f4] sm:$0xff]  ;;  %710 = vst [vmem:[%s8467_s29 + $0xa50] sm:$0xff] %v709_v8  ;;  %712 = vst [vmem:[%s8467_s29 + $0xa58] sm:$0xff] %v711_v9  ;;  %v719_v13 = vld [vmem:[%s8462_s28 + $0x3460] sm:$0xff] }
  0x96   : > { %714 = vst [vmem:[%s8467_s29 + $0xa64] sm:$0xff] %v713_v10  ;;  %v717_v12 = vld [vmem:[%s8462_s28 + $0x3458] sm:$0xff]  ;;  %716 = vst [vmem:[%s8467_s29 + $0xa6c] sm:$0xff] %v715_v11  ;;  %v723_v15 = vld [vmem:[%s8462_s28 + $0x34c4] sm:$0xff] }
  0x97   : > { %718 = vst [vmem:[%s8467_s29 + $0xa78] sm:$0xff] %v717_v12  ;;  %720 = vst [vmem:[%s8467_s29 + $0xa80] sm:$0xff] %v719_v13  ;;  %v721_v14 = vld [vmem:[%s8462_s28 + $0x34bc] sm:$0xff]  ;;  %v727_v17 = vld [vmem:[%s8462_s28 + $0x3528] sm:$0xff] }
  0x98   : > { %v725_v16 = vld [vmem:[%s8462_s28 + $0x3520] sm:$0xff]  ;;  %722 = vst [vmem:[%s8467_s29 + $0xa8c] sm:$0xff] %v721_v14  ;;  %724 = vst [vmem:[%s8467_s29 + $0xa94] sm:$0xff] %v723_v15  ;;  %v731_v19 = vld [vmem:[%s8462_s28 + $0x358c] sm:$0xff] }
  0x99   : > { %726 = vst [vmem:[%s8467_s29 + $0xaa0] sm:$0xff] %v725_v16  ;;  %v729_v18 = vld [vmem:[%s8462_s28 + $0x3584] sm:$0xff]  ;;  %728 = vst [vmem:[%s8467_s29 + $0xaa8] sm:$0xff] %v727_v17  ;;  %v735_v21 = vld [vmem:[%s8462_s28 + $0x35f0] sm:$0xff] }
  0x9a   : > { %730 = vst [vmem:[%s8467_s29 + $0xab4] sm:$0xff] %v729_v18  ;;  %732 = vst [vmem:[%s8467_s29 + $0xabc] sm:$0xff] %v731_v19  ;;  %v733_v20 = vld [vmem:[%s8462_s28 + $0x35e8] sm:$0xff]  ;;  %v739_v23 = vld [vmem:[%s8462_s28 + $0x3654] sm:$0xff] }
  0x9b   : > { %v737_v22 = vld [vmem:[%s8462_s28 + $0x364c] sm:$0xff]  ;;  %734 = vst [vmem:[%s8467_s29 + $0xac8] sm:$0xff] %v733_v20  ;;  %736 = vst [vmem:[%s8467_s29 + $0xad0] sm:$0xff] %v735_v21  ;;  %v743_v25 = vld [vmem:[%s8462_s28 + $0x36b8] sm:$0xff] }
  0x9c   : > { %738 = vst [vmem:[%s8467_s29 + $0xadc] sm:$0xff] %v737_v22  ;;  %v741_v24 = vld [vmem:[%s8462_s28 + $0x36b0] sm:$0xff]  ;;  %740 = vst [vmem:[%s8467_s29 + $0xae4] sm:$0xff] %v739_v23  ;;  %v747_v27 = vld [vmem:[%s8462_s28 + $0x371c] sm:$0xff] }
  0x9d   : > { %742 = vst [vmem:[%s8467_s29 + $0xaf0] sm:$0xff] %v741_v24  ;;  %744 = vst [vmem:[%s8467_s29 + $0xaf8] sm:$0xff] %v743_v25  ;;  %v745_v26 = vld [vmem:[%s8462_s28 + $0x3714] sm:$0xff]  ;;  %v751_v29 = vld [vmem:[%s8462_s28 + $0x3780] sm:$0xff] }
  0x9e   : > { %v749_v28 = vld [vmem:[%s8462_s28 + $0x3778] sm:$0xff]  ;;  %746 = vst [vmem:[%s8467_s29 + $0xb04] sm:$0xff] %v745_v26  ;;  %748 = vst [vmem:[%s8467_s29 + $0xb0c] sm:$0xff] %v747_v27  ;;  %v755_v31 = vld [vmem:[%s8462_s28 + $0x37e4] sm:$0xff] }
  0x9f   : > { %750 = vst [vmem:[%s8467_s29 + $0xb18] sm:$0xff] %v749_v28  ;;  %v753_v30 = vld [vmem:[%s8462_s28 + $0x37dc] sm:$0xff]  ;;  %752 = vst [vmem:[%s8467_s29 + $0xb20] sm:$0xff] %v751_v29  ;;  %v759_v33 = vld [vmem:[%s8462_s28 + $0x3848] sm:$0xff] }
  0xa0   : > { %754 = vst [vmem:[%s8467_s29 + $0xb2c] sm:$0xff] %v753_v30  ;;  %756 = vst [vmem:[%s8467_s29 + $0xb34] sm:$0xff] %v755_v31  ;;  %v757_v32 = vld [vmem:[%s8462_s28 + $0x3840] sm:$0xff]  ;;  %v763_v35 = vld [vmem:[%s8462_s28 + $0x38ac] sm:$0xff] }
  0xa1   : > { %v761_v34 = vld [vmem:[%s8462_s28 + $0x38a4] sm:$0xff]  ;;  %758 = vst [vmem:[%s8467_s29 + $0xb40] sm:$0xff] %v757_v32  ;;  %760 = vst [vmem:[%s8467_s29 + $0xb48] sm:$0xff] %v759_v33  ;;  %v767_v37 = vld [vmem:[%s8462_s28 + $0x3910] sm:$0xff] }
  0xa2   : > { %762 = vst [vmem:[%s8467_s29 + $0xb54] sm:$0xff] %v761_v34  ;;  %v765_v36 = vld [vmem:[%s8462_s28 + $0x3908] sm:$0xff]  ;;  %764 = vst [vmem:[%s8467_s29 + $0xb5c] sm:$0xff] %v763_v35  ;;  %v771_v39 = vld [vmem:[%s8462_s28 + $0x3974] sm:$0xff] }
  0xa3   : > { %766 = vst [vmem:[%s8467_s29 + $0xb68] sm:$0xff] %v765_v36  ;;  %768 = vst [vmem:[%s8467_s29 + $0xb70] sm:$0xff] %v767_v37  ;;  %v769_v38 = vld [vmem:[%s8462_s28 + $0x396c] sm:$0xff]  ;;  %v775_v41 = vld [vmem:[%s8462_s28 + $0x39d8] sm:$0xff] }
  0xa4   : > { %v773_v40 = vld [vmem:[%s8462_s28 + $0x39d0] sm:$0xff]  ;;  %770 = vst [vmem:[%s8467_s29 + $0xb7c] sm:$0xff] %v769_v38  ;;  %772 = vst [vmem:[%s8467_s29 + $0xb84] sm:$0xff] %v771_v39  ;;  %v779_v43 = vld [vmem:[%s8462_s28 + $0x3a3c] sm:$0xff] }
  0xa5   : > { %774 = vst [vmem:[%s8467_s29 + $0xb90] sm:$0xff] %v773_v40  ;;  %v777_v42 = vld [vmem:[%s8462_s28 + $0x3a34] sm:$0xff]  ;;  %776 = vst [vmem:[%s8467_s29 + $0xb98] sm:$0xff] %v775_v41  ;;  %v783_v45 = vld [vmem:[%s8462_s28 + $0x3aa0] sm:$0xff] }
  0xa6   : > { %778 = vst [vmem:[%s8467_s29 + $0xba4] sm:$0xff] %v777_v42  ;;  %780 = vst [vmem:[%s8467_s29 + $0xbac] sm:$0xff] %v779_v43  ;;  %v781_v44 = vld [vmem:[%s8462_s28 + $0x3a98] sm:$0xff]  ;;  %v787_v47 = vld [vmem:[%s8462_s28 + $0x3b04] sm:$0xff] }
  0xa7   : > { %v785_v46 = vld [vmem:[%s8462_s28 + $0x3afc] sm:$0xff]  ;;  %782 = vst [vmem:[%s8467_s29 + $0xbb8] sm:$0xff] %v781_v44  ;;  %784 = vst [vmem:[%s8467_s29 + $0xbc0] sm:$0xff] %v783_v45  ;;  %v791_v49 = vld [vmem:[%s8462_s28 + $0x3b68] sm:$0xff] }
  0xa8   : > { %786 = vst [vmem:[%s8467_s29 + $0xbcc] sm:$0xff] %v785_v46  ;;  %v789_v48 = vld [vmem:[%s8462_s28 + $0x3b60] sm:$0xff]  ;;  %788 = vst [vmem:[%s8467_s29 + $0xbd4] sm:$0xff] %v787_v47  ;;  %v795_v51 = vld [vmem:[%s8462_s28 + $0x3bcc] sm:$0xff] }
  0xa9   : > { %790 = vst [vmem:[%s8467_s29 + $0xbe0] sm:$0xff] %v789_v48  ;;  %792 = vst [vmem:[%s8467_s29 + $0xbe8] sm:$0xff] %v791_v49  ;;  %v793_v50 = vld [vmem:[%s8462_s28 + $0x3bc4] sm:$0xff]  ;;  %v799_v53 = vld [vmem:[%s8462_s28 + $0x3c30] sm:$0xff] }
  0xaa   : > { %v797_v52 = vld [vmem:[%s8462_s28 + $0x3c28] sm:$0xff]  ;;  %794 = vst [vmem:[%s8467_s29 + $0xbf4] sm:$0xff] %v793_v50  ;;  %796 = vst [vmem:[%s8467_s29 + $0xbfc] sm:$0xff] %v795_v51  ;;  %v803_v55 = vld [vmem:[%s8462_s28 + $0x3c94] sm:$0xff] }
  0xab   : > { %798 = vst [vmem:[%s8467_s29 + $0xc08] sm:$0xff] %v797_v52  ;;  %v801_v54 = vld [vmem:[%s8462_s28 + $0x3c8c] sm:$0xff]  ;;  %800 = vst [vmem:[%s8467_s29 + $0xc10] sm:$0xff] %v799_v53  ;;  %v807_v57 = vld [vmem:[%s8462_s28 + $0x3cf8] sm:$0xff] }
  0xac   : > { %802 = vst [vmem:[%s8467_s29 + $0xc1c] sm:$0xff] %v801_v54  ;;  %804 = vst [vmem:[%s8467_s29 + $0xc24] sm:$0xff] %v803_v55  ;;  %v805_v56 = vld [vmem:[%s8462_s28 + $0x3cf0] sm:$0xff]  ;;  %v811_v59 = vld [vmem:[%s8462_s28 + $0x3d5c] sm:$0xff] }
  0xad   : > { %v809_v58 = vld [vmem:[%s8462_s28 + $0x3d54] sm:$0xff]  ;;  %806 = vst [vmem:[%s8467_s29 + $0xc30] sm:$0xff] %v805_v56  ;;  %808 = vst [vmem:[%s8467_s29 + $0xc38] sm:$0xff] %v807_v57  ;;  %v815_v61 = vld [vmem:[%s8462_s28 + $0x3dc0] sm:$0xff] }
  0xae   : > { %810 = vst [vmem:[%s8467_s29 + $0xc44] sm:$0xff] %v809_v58  ;;  %v813_v60 = vld [vmem:[%s8462_s28 + $0x3db8] sm:$0xff]  ;;  %812 = vst [vmem:[%s8467_s29 + $0xc4c] sm:$0xff] %v811_v59  ;;  %v819_v63 = vld [vmem:[%s8462_s28 + $0x3e24] sm:$0xff] }
  0xaf   : > { %814 = vst [vmem:[%s8467_s29 + $0xc58] sm:$0xff] %v813_v60  ;;  %816 = vst [vmem:[%s8467_s29 + $0xc60] sm:$0xff] %v815_v61  ;;  %v817_v62 = vld [vmem:[%s8462_s28 + $0x3e1c] sm:$0xff]  ;;  %v823_v1 = vld [vmem:[%s8462_s28 + $0x3e88] sm:$0xff] }
  0xb0   : > { %v821_v0 = vld [vmem:[%s8462_s28 + $0x3e80] sm:$0xff]  ;;  %818 = vst [vmem:[%s8467_s29 + $0xc6c] sm:$0xff] %v817_v62  ;;  %820 = vst [vmem:[%s8467_s29 + $0xc74] sm:$0xff] %v819_v63  ;;  %v827_v3 = vld [vmem:[%s8462_s28 + $0x3eec] sm:$0xff] }
  0xb1   : > { %822 = vst [vmem:[%s8467_s29 + $0xc80] sm:$0xff] %v821_v0  ;;  %v825_v2 = vld [vmem:[%s8462_s28 + $0x3ee4] sm:$0xff]  ;;  %824 = vst [vmem:[%s8467_s29 + $0xc88] sm:$0xff] %v823_v1  ;;  %v831_v5 = vld [vmem:[%s8462_s28 + $0x3f50] sm:$0xff] }
  0xb2   : > { %826 = vst [vmem:[%s8467_s29 + $0xc94] sm:$0xff] %v825_v2  ;;  %828 = vst [vmem:[%s8467_s29 + $0xc9c] sm:$0xff] %v827_v3  ;;  %v829_v4 = vld [vmem:[%s8462_s28 + $0x3f48] sm:$0xff]  ;;  %v835_v7 = vld [vmem:[%s8462_s28 + $0x3fb4] sm:$0xff] }
  0xb3   : > { %v833_v6 = vld [vmem:[%s8462_s28 + $0x3fac] sm:$0xff]  ;;  %830 = vst [vmem:[%s8467_s29 + $0xca8] sm:$0xff] %v829_v4  ;;  %832 = vst [vmem:[%s8467_s29 + $0xcb0] sm:$0xff] %v831_v5  ;;  %v839_v9 = vld [vmem:[%s8462_s28 + $0x4018] sm:$0xff] }
  0xb4   : > { %834 = vst [vmem:[%s8467_s29 + $0xcbc] sm:$0xff] %v833_v6  ;;  %v837_v8 = vld [vmem:[%s8462_s28 + $0x4010] sm:$0xff]  ;;  %836 = vst [vmem:[%s8467_s29 + $0xcc4] sm:$0xff] %v835_v7  ;;  %v843_v11 = vld [vmem:[%s8462_s28 + $0x407c] sm:$0xff] }
  0xb5   : > { %838 = vst [vmem:[%s8467_s29 + $0xcd0] sm:$0xff] %v837_v8  ;;  %840 = vst [vmem:[%s8467_s29 + $0xcd8] sm:$0xff] %v839_v9  ;;  %v841_v10 = vld [vmem:[%s8462_s28 + $0x4074] sm:$0xff]  ;;  %v847_v13 = vld [vmem:[%s8462_s28 + $0x40e0] sm:$0xff] }
  0xb6   : > { %v845_v12 = vld [vmem:[%s8462_s28 + $0x40d8] sm:$0xff]  ;;  %842 = vst [vmem:[%s8467_s29 + $0xce4] sm:$0xff] %v841_v10  ;;  %844 = vst [vmem:[%s8467_s29 + $0xcec] sm:$0xff] %v843_v11  ;;  %v851_v15 = vld [vmem:[%s8462_s28 + $0x4144] sm:$0xff] }
  0xb7   : > { %846 = vst [vmem:[%s8467_s29 + $0xcf8] sm:$0xff] %v845_v12  ;;  %v849_v14 = vld [vmem:[%s8462_s28 + $0x413c] sm:$0xff]  ;;  %848 = vst [vmem:[%s8467_s29 + $0xd00] sm:$0xff] %v847_v13  ;;  %v855_v17 = vld [vmem:[%s8462_s28 + $0x41a8] sm:$0xff] }
  0xb8   : > { %850 = vst [vmem:[%s8467_s29 + $0xd0c] sm:$0xff] %v849_v14  ;;  %852 = vst [vmem:[%s8467_s29 + $0xd14] sm:$0xff] %v851_v15  ;;  %v853_v16 = vld [vmem:[%s8462_s28 + $0x41a0] sm:$0xff]  ;;  %v859_v19 = vld [vmem:[%s8462_s28 + $0x420c] sm:$0xff] }
  0xb9   : > { %v857_v18 = vld [vmem:[%s8462_s28 + $0x4204] sm:$0xff]  ;;  %854 = vst [vmem:[%s8467_s29 + $0xd20] sm:$0xff] %v853_v16  ;;  %856 = vst [vmem:[%s8467_s29 + $0xd28] sm:$0xff] %v855_v17  ;;  %v863_v21 = vld [vmem:[%s8462_s28 + $0x4270] sm:$0xff] }
  0xba   : > { %858 = vst [vmem:[%s8467_s29 + $0xd34] sm:$0xff] %v857_v18  ;;  %v861_v20 = vld [vmem:[%s8462_s28 + $0x4268] sm:$0xff]  ;;  %860 = vst [vmem:[%s8467_s29 + $0xd3c] sm:$0xff] %v859_v19  ;;  %v867_v23 = vld [vmem:[%s8462_s28 + $0x42d4] sm:$0xff] }
  0xbb   : > { %862 = vst [vmem:[%s8467_s29 + $0xd48] sm:$0xff] %v861_v20  ;;  %864 = vst [vmem:[%s8467_s29 + $0xd50] sm:$0xff] %v863_v21  ;;  %v865_v22 = vld [vmem:[%s8462_s28 + $0x42cc] sm:$0xff]  ;;  %v871_v25 = vld [vmem:[%s8462_s28 + $0x4338] sm:$0xff] }
  0xbc   : > { %v869_v24 = vld [vmem:[%s8462_s28 + $0x4330] sm:$0xff]  ;;  %866 = vst [vmem:[%s8467_s29 + $0xd5c] sm:$0xff] %v865_v22  ;;  %868 = vst [vmem:[%s8467_s29 + $0xd64] sm:$0xff] %v867_v23  ;;  %v875_v27 = vld [vmem:[%s8462_s28 + $0x439c] sm:$0xff] }
  0xbd   : > { %870 = vst [vmem:[%s8467_s29 + $0xd70] sm:$0xff] %v869_v24  ;;  %v873_v26 = vld [vmem:[%s8462_s28 + $0x4394] sm:$0xff]  ;;  %872 = vst [vmem:[%s8467_s29 + $0xd78] sm:$0xff] %v871_v25  ;;  %v879_v29 = vld [vmem:[%s8462_s28 + $0x4400] sm:$0xff] }
  0xbe   : > { %874 = vst [vmem:[%s8467_s29 + $0xd84] sm:$0xff] %v873_v26  ;;  %876 = vst [vmem:[%s8467_s29 + $0xd8c] sm:$0xff] %v875_v27  ;;  %v877_v28 = vld [vmem:[%s8462_s28 + $0x43f8] sm:$0xff]  ;;  %v883_v31 = vld [vmem:[%s8462_s28 + $0x4464] sm:$0xff] }
  0xbf   : > { %v881_v30 = vld [vmem:[%s8462_s28 + $0x445c] sm:$0xff]  ;;  %878 = vst [vmem:[%s8467_s29 + $0xd98] sm:$0xff] %v877_v28  ;;  %880 = vst [vmem:[%s8467_s29 + $0xda0] sm:$0xff] %v879_v29  ;;  %v887_v33 = vld [vmem:[%s8462_s28 + $0x44c8] sm:$0xff] }
  0xc0   : > { %882 = vst [vmem:[%s8467_s29 + $0xdac] sm:$0xff] %v881_v30  ;;  %v885_v32 = vld [vmem:[%s8462_s28 + $0x44c0] sm:$0xff]  ;;  %884 = vst [vmem:[%s8467_s29 + $0xdb4] sm:$0xff] %v883_v31  ;;  %v891_v35 = vld [vmem:[%s8462_s28 + $0x452c] sm:$0xff] }
  0xc1   : > { %886 = vst [vmem:[%s8467_s29 + $0xdc0] sm:$0xff] %v885_v32  ;;  %888 = vst [vmem:[%s8467_s29 + $0xdc8] sm:$0xff] %v887_v33  ;;  %v889_v34 = vld [vmem:[%s8462_s28 + $0x4524] sm:$0xff]  ;;  %v895_v37 = vld [vmem:[%s8462_s28 + $0x4590] sm:$0xff] }
  0xc2   : > { %v893_v36 = vld [vmem:[%s8462_s28 + $0x4588] sm:$0xff]  ;;  %890 = vst [vmem:[%s8467_s29 + $0xdd4] sm:$0xff] %v889_v34  ;;  %892 = vst [vmem:[%s8467_s29 + $0xddc] sm:$0xff] %v891_v35  ;;  %v899_v39 = vld [vmem:[%s8462_s28 + $0x45f4] sm:$0xff] }
  0xc3   : > { %894 = vst [vmem:[%s8467_s29 + $0xde8] sm:$0xff] %v893_v36  ;;  %v897_v38 = vld [vmem:[%s8462_s28 + $0x45ec] sm:$0xff]  ;;  %896 = vst [vmem:[%s8467_s29 + $0xdf0] sm:$0xff] %v895_v37  ;;  %v903_v41 = vld [vmem:[%s8462_s28 + $0x4658] sm:$0xff] }
  0xc4   : > { %898 = vst [vmem:[%s8467_s29 + $0xdfc] sm:$0xff] %v897_v38  ;;  %900 = vst [vmem:[%s8467_s29 + $0xe04] sm:$0xff] %v899_v39  ;;  %v901_v40 = vld [vmem:[%s8462_s28 + $0x4650] sm:$0xff]  ;;  %v907_v43 = vld [vmem:[%s8462_s28 + $0x46bc] sm:$0xff] }
  0xc5   : > { %v905_v42 = vld [vmem:[%s8462_s28 + $0x46b4] sm:$0xff]  ;;  %902 = vst [vmem:[%s8467_s29 + $0xe10] sm:$0xff] %v901_v40  ;;  %904 = vst [vmem:[%s8467_s29 + $0xe18] sm:$0xff] %v903_v41  ;;  %v911_v45 = vld [vmem:[%s8462_s28 + $0x4720] sm:$0xff] }
  0xc6   : > { %906 = vst [vmem:[%s8467_s29 + $0xe24] sm:$0xff] %v905_v42  ;;  %v909_v44 = vld [vmem:[%s8462_s28 + $0x4718] sm:$0xff]  ;;  %908 = vst [vmem:[%s8467_s29 + $0xe2c] sm:$0xff] %v907_v43  ;;  %v915_v47 = vld [vmem:[%s8462_s28 + $0x4784] sm:$0xff] }
  0xc7   : > { %910 = vst [vmem:[%s8467_s29 + $0xe38] sm:$0xff] %v909_v44  ;;  %912 = vst [vmem:[%s8467_s29 + $0xe40] sm:$0xff] %v911_v45  ;;  %v913_v46 = vld [vmem:[%s8462_s28 + $0x477c] sm:$0xff]  ;;  %v919_v49 = vld [vmem:[%s8462_s28 + $0x47e8] sm:$0xff] }
  0xc8   : > { %v917_v48 = vld [vmem:[%s8462_s28 + $0x47e0] sm:$0xff]  ;;  %914 = vst [vmem:[%s8467_s29 + $0xe4c] sm:$0xff] %v913_v46  ;;  %916 = vst [vmem:[%s8467_s29 + $0xe54] sm:$0xff] %v915_v47  ;;  %v923_v51 = vld [vmem:[%s8462_s28 + $0x484c] sm:$0xff] }
  0xc9   : > { %918 = vst [vmem:[%s8467_s29 + $0xe60] sm:$0xff] %v917_v48  ;;  %v921_v50 = vld [vmem:[%s8462_s28 + $0x4844] sm:$0xff]  ;;  %920 = vst [vmem:[%s8467_s29 + $0xe68] sm:$0xff] %v919_v49  ;;  %v927_v53 = vld [vmem:[%s8462_s28 + $0x48b0] sm:$0xff] }
  0xca   : > { %922 = vst [vmem:[%s8467_s29 + $0xe74] sm:$0xff] %v921_v50  ;;  %924 = vst [vmem:[%s8467_s29 + $0xe7c] sm:$0xff] %v923_v51  ;;  %v925_v52 = vld [vmem:[%s8462_s28 + $0x48a8] sm:$0xff]  ;;  %v931_v55 = vld [vmem:[%s8462_s28 + $0x4914] sm:$0xff] }
  0xcb   : > { %v929_v54 = vld [vmem:[%s8462_s28 + $0x490c] sm:$0xff]  ;;  %926 = vst [vmem:[%s8467_s29 + $0xe88] sm:$0xff] %v925_v52  ;;  %928 = vst [vmem:[%s8467_s29 + $0xe90] sm:$0xff] %v927_v53  ;;  %v935_v57 = vld [vmem:[%s8462_s28 + $0x4978] sm:$0xff] }
  0xcc   : > { %930 = vst [vmem:[%s8467_s29 + $0xe9c] sm:$0xff] %v929_v54  ;;  %v933_v56 = vld [vmem:[%s8462_s28 + $0x4970] sm:$0xff]  ;;  %932 = vst [vmem:[%s8467_s29 + $0xea4] sm:$0xff] %v931_v55  ;;  %v939_v59 = vld [vmem:[%s8462_s28 + $0x49dc] sm:$0xff] }
  0xcd   : > { %934 = vst [vmem:[%s8467_s29 + $0xeb0] sm:$0xff] %v933_v56  ;;  %936 = vst [vmem:[%s8467_s29 + $0xeb8] sm:$0xff] %v935_v57  ;;  %v937_v58 = vld [vmem:[%s8462_s28 + $0x49d4] sm:$0xff]  ;;  %v943_v61 = vld [vmem:[%s8462_s28 + $0x4a40] sm:$0xff] }
  0xce   : > { %v941_v60 = vld [vmem:[%s8462_s28 + $0x4a38] sm:$0xff]  ;;  %938 = vst [vmem:[%s8467_s29 + $0xec4] sm:$0xff] %v937_v58  ;;  %940 = vst [vmem:[%s8467_s29 + $0xecc] sm:$0xff] %v939_v59  ;;  %v947_v63 = vld [vmem:[%s8462_s28 + $0x4aa4] sm:$0xff] }
  0xcf   : > { %942 = vst [vmem:[%s8467_s29 + $0xed8] sm:$0xff] %v941_v60  ;;  %v945_v62 = vld [vmem:[%s8462_s28 + $0x4a9c] sm:$0xff]  ;;  %944 = vst [vmem:[%s8467_s29 + $0xee0] sm:$0xff] %v943_v61  ;;  %v951_v1 = vld [vmem:[%s8462_s28 + $0x4b08] sm:$0xff] }
  0xd0   : > { %946 = vst [vmem:[%s8467_s29 + $0xeec] sm:$0xff] %v945_v62  ;;  %948 = vst [vmem:[%s8467_s29 + $0xef4] sm:$0xff] %v947_v63  ;;  %v949_v0 = vld [vmem:[%s8462_s28 + $0x4b00] sm:$0xff]  ;;  %v955_v3 = vld [vmem:[%s8462_s28 + $0x4b6c] sm:$0xff] }
  0xd1   : > { %v953_v2 = vld [vmem:[%s8462_s28 + $0x4b64] sm:$0xff]  ;;  %950 = vst [vmem:[%s8467_s29 + $0xf00] sm:$0xff] %v949_v0  ;;  %952 = vst [vmem:[%s8467_s29 + $0xf08] sm:$0xff] %v951_v1  ;;  %v959_v5 = vld [vmem:[%s8462_s28 + $0x4bd0] sm:$0xff] }
  0xd2   : > { %954 = vst [vmem:[%s8467_s29 + $0xf14] sm:$0xff] %v953_v2  ;;  %v957_v4 = vld [vmem:[%s8462_s28 + $0x4bc8] sm:$0xff]  ;;  %956 = vst [vmem:[%s8467_s29 + $0xf1c] sm:$0xff] %v955_v3  ;;  %v963_v7 = vld [vmem:[%s8462_s28 + $0x4c34] sm:$0xff] }
  0xd3   : > { %958 = vst [vmem:[%s8467_s29 + $0xf28] sm:$0xff] %v957_v4  ;;  %960 = vst [vmem:[%s8467_s29 + $0xf30] sm:$0xff] %v959_v5  ;;  %v961_v6 = vld [vmem:[%s8462_s28 + $0x4c2c] sm:$0xff]  ;;  %v967_v9 = vld [vmem:[%s8462_s28 + $0x4c98] sm:$0xff] }
  0xd4   : > { %v965_v8 = vld [vmem:[%s8462_s28 + $0x4c90] sm:$0xff]  ;;  %962 = vst [vmem:[%s8467_s29 + $0xf3c] sm:$0xff] %v961_v6  ;;  %964 = vst [vmem:[%s8467_s29 + $0xf44] sm:$0xff] %v963_v7  ;;  %v971_v11 = vld [vmem:[%s8462_s28 + $0x4cfc] sm:$0xff] }
  0xd5   : > { %966 = vst [vmem:[%s8467_s29 + $0xf50] sm:$0xff] %v965_v8  ;;  %v969_v10 = vld [vmem:[%s8462_s28 + $0x4cf4] sm:$0xff]  ;;  %968 = vst [vmem:[%s8467_s29 + $0xf58] sm:$0xff] %v967_v9  ;;  %v975_v13 = vld [vmem:[%s8462_s28 + $0x4d60] sm:$0xff] }
  0xd6   : > { %970 = vst [vmem:[%s8467_s29 + $0xf64] sm:$0xff] %v969_v10  ;;  %972 = vst [vmem:[%s8467_s29 + $0xf6c] sm:$0xff] %v971_v11  ;;  %v973_v12 = vld [vmem:[%s8462_s28 + $0x4d58] sm:$0xff]  ;;  %v979_v15 = vld [vmem:[%s8462_s28 + $0x4dc4] sm:$0xff] }
  0xd7   : > { %v977_v14 = vld [vmem:[%s8462_s28 + $0x4dbc] sm:$0xff]  ;;  %974 = vst [vmem:[%s8467_s29 + $0xf78] sm:$0xff] %v973_v12  ;;  %976 = vst [vmem:[%s8467_s29 + $0xf80] sm:$0xff] %v975_v13  ;;  %v6377_v16 = vld [vmem:[%s8462_s28 + $0x10] sm:$0xf] }
  0xd8   : > { %978 = vst [vmem:[%s8467_s29 + $0xf8c] sm:$0xff] %v977_v14  ;;  %v6379_v17 = vld [vmem:[%s8462_s28 + $0x74] sm:$0xf]  ;;  %980 = vst [vmem:[%s8467_s29 + $0xf94] sm:$0xff] %v979_v15  ;;  %v6381_v18 = vld [vmem:[%s8462_s28 + $0xd8] sm:$0xf] }
  0xd9   : > { %6378 = vst [vmem:[%s8467_s29 + $0x10] sm:$0xf] %v6377_v16  ;;  %6380 = vst [vmem:[%s8467_s29 + $0x24] sm:$0xf] %v6379_v17  ;;  %v6383_v19 = vld [vmem:[%s8462_s28 + $0x13c] sm:$0xf] }
  0xda   : > { %v6385_v20 = vld [vmem:[%s8462_s28 + $0x1a0] sm:$0xf]  ;;  %6382 = vst [vmem:[%s8467_s29 + $0x38] sm:$0xf] %v6381_v18  ;;  %6384 = vst [vmem:[%s8467_s29 + $0x4c] sm:$0xf] %v6383_v19 }
  0xdb   : > { %6386 = vst [vmem:[%s8467_s29 + $0x60] sm:$0xf] %v6385_v20  ;;  %v6387_v21 = vld [vmem:[%s8462_s28 + $0x204] sm:$0xf]  ;;  %v6389_v22 = vld [vmem:[%s8462_s28 + $0x268] sm:$0xf] }
  0xdc   : > { %v6391_v23 = vld [vmem:[%s8462_s28 + $0x2cc] sm:$0xf]  ;;  %6388 = vst [vmem:[%s8467_s29 + $0x74] sm:$0xf] %v6387_v21  ;;  %6390 = vst [vmem:[%s8467_s29 + $0x88] sm:$0xf] %v6389_v22 }
  0xdd   : > { %6392 = vst [vmem:[%s8467_s29 + $0x9c] sm:$0xf] %v6391_v23  ;;  %v6393_v24 = vld [vmem:[%s8462_s28 + $0x330] sm:$0xf]  ;;  %v6395_v25 = vld [vmem:[%s8462_s28 + $0x394] sm:$0xf] }
  0xde   : > { %v6397_v26 = vld [vmem:[%s8462_s28 + $0x3f8] sm:$0xf]  ;;  %6394 = vst [vmem:[%s8467_s29 + $0xb0] sm:$0xf] %v6393_v24  ;;  %6396 = vst [vmem:[%s8467_s29 + $0xc4] sm:$0xf] %v6395_v25 }
  0xdf   : > { %6398 = vst [vmem:[%s8467_s29 + $0xd8] sm:$0xf] %v6397_v26  ;;  %v6399_v27 = vld [vmem:[%s8462_s28 + $0x45c] sm:$0xf]  ;;  %v6401_v28 = vld [vmem:[%s8462_s28 + $0x4c0] sm:$0xf] }
  0xe0   : > { %v6403_v29 = vld [vmem:[%s8462_s28 + $0x524] sm:$0xf]  ;;  %6400 = vst [vmem:[%s8467_s29 + $0xec] sm:$0xf] %v6399_v27  ;;  %6402 = vst [vmem:[%s8467_s29 + $0x100] sm:$0xf] %v6401_v28 }
  0xe1   : > { %6404 = vst [vmem:[%s8467_s29 + $0x114] sm:$0xf] %v6403_v29  ;;  %v6405_v30 = vld [vmem:[%s8462_s28 + $0x588] sm:$0xf]  ;;  %v6407_v31 = vld [vmem:[%s8462_s28 + $0x5ec] sm:$0xf] }
  0xe2   : > { %v6409_v32 = vld [vmem:[%s8462_s28 + $0x650] sm:$0xf]  ;;  %6406 = vst [vmem:[%s8467_s29 + $0x128] sm:$0xf] %v6405_v30  ;;  %6408 = vst [vmem:[%s8467_s29 + $0x13c] sm:$0xf] %v6407_v31 }
  0xe3   : > { %6410 = vst [vmem:[%s8467_s29 + $0x150] sm:$0xf] %v6409_v32  ;;  %v6411_v33 = vld [vmem:[%s8462_s28 + $0x6b4] sm:$0xf]  ;;  %v6413_v34 = vld [vmem:[%s8462_s28 + $0x718] sm:$0xf] }
  0xe4   : > { %v6415_v35 = vld [vmem:[%s8462_s28 + $0x77c] sm:$0xf]  ;;  %6412 = vst [vmem:[%s8467_s29 + $0x164] sm:$0xf] %v6411_v33  ;;  %6414 = vst [vmem:[%s8467_s29 + $0x178] sm:$0xf] %v6413_v34 }
  0xe5   : > { %6416 = vst [vmem:[%s8467_s29 + $0x18c] sm:$0xf] %v6415_v35  ;;  %v6417_v36 = vld [vmem:[%s8462_s28 + $0x7e0] sm:$0xf]  ;;  %v6419_v37 = vld [vmem:[%s8462_s28 + $0x844] sm:$0xf] }
  0xe6   : > { %v6421_v38 = vld [vmem:[%s8462_s28 + $0x8a8] sm:$0xf]  ;;  %6418 = vst [vmem:[%s8467_s29 + $0x1a0] sm:$0xf] %v6417_v36  ;;  %6420 = vst [vmem:[%s8467_s29 + $0x1b4] sm:$0xf] %v6419_v37 }
  0xe7   : > { %6422 = vst [vmem:[%s8467_s29 + $0x1c8] sm:$0xf] %v6421_v38  ;;  %v6423_v39 = vld [vmem:[%s8462_s28 + $0x90c] sm:$0xf]  ;;  %v6425_v40 = vld [vmem:[%s8462_s28 + $0x970] sm:$0xf] }
  0xe8   : > { %v6427_v41 = vld [vmem:[%s8462_s28 + $0x9d4] sm:$0xf]  ;;  %6424 = vst [vmem:[%s8467_s29 + $0x1dc] sm:$0xf] %v6423_v39  ;;  %6426 = vst [vmem:[%s8467_s29 + $0x1f0] sm:$0xf] %v6425_v40 }
  0xe9   : > { %6428 = vst [vmem:[%s8467_s29 + $0x204] sm:$0xf] %v6427_v41  ;;  %v6429_v42 = vld [vmem:[%s8462_s28 + $0xa38] sm:$0xf]  ;;  %v6431_v43 = vld [vmem:[%s8462_s28 + $0xa9c] sm:$0xf] }
  0xea   : > { %v6433_v44 = vld [vmem:[%s8462_s28 + $0xb00] sm:$0xf]  ;;  %6430 = vst [vmem:[%s8467_s29 + $0x218] sm:$0xf] %v6429_v42  ;;  %6432 = vst [vmem:[%s8467_s29 + $0x22c] sm:$0xf] %v6431_v43 }
  0xeb   : > { %6434 = vst [vmem:[%s8467_s29 + $0x240] sm:$0xf] %v6433_v44  ;;  %v6435_v45 = vld [vmem:[%s8462_s28 + $0xb64] sm:$0xf]  ;;  %v6437_v46 = vld [vmem:[%s8462_s28 + $0xbc8] sm:$0xf] }
  0xec   : > { %v6439_v47 = vld [vmem:[%s8462_s28 + $0xc2c] sm:$0xf]  ;;  %6436 = vst [vmem:[%s8467_s29 + $0x254] sm:$0xf] %v6435_v45  ;;  %6438 = vst [vmem:[%s8467_s29 + $0x268] sm:$0xf] %v6437_v46 }
  0xed   : > { %6440 = vst [vmem:[%s8467_s29 + $0x27c] sm:$0xf] %v6439_v47  ;;  %v6441_v48 = vld [vmem:[%s8462_s28 + $0xc90] sm:$0xf]  ;;  %v6443_v49 = vld [vmem:[%s8462_s28 + $0xcf4] sm:$0xf] }
  0xee   : > { %v6445_v50 = vld [vmem:[%s8462_s28 + $0xd58] sm:$0xf]  ;;  %6442 = vst [vmem:[%s8467_s29 + $0x290] sm:$0xf] %v6441_v48  ;;  %6444 = vst [vmem:[%s8467_s29 + $0x2a4] sm:$0xf] %v6443_v49 }
  0xef   : > { %6446 = vst [vmem:[%s8467_s29 + $0x2b8] sm:$0xf] %v6445_v50  ;;  %v6447_v51 = vld [vmem:[%s8462_s28 + $0xdbc] sm:$0xf]  ;;  %v6449_v52 = vld [vmem:[%s8462_s28 + $0xe20] sm:$0xf] }
  0xf0   : > { %v6451_v53 = vld [vmem:[%s8462_s28 + $0xe84] sm:$0xf]  ;;  %6448 = vst [vmem:[%s8467_s29 + $0x2cc] sm:$0xf] %v6447_v51  ;;  %6450 = vst [vmem:[%s8467_s29 + $0x2e0] sm:$0xf] %v6449_v52 }
  0xf1   : > { %6452 = vst [vmem:[%s8467_s29 + $0x2f4] sm:$0xf] %v6451_v53  ;;  %v6453_v54 = vld [vmem:[%s8462_s28 + $0xee8] sm:$0xf]  ;;  %v6455_v55 = vld [vmem:[%s8462_s28 + $0xf4c] sm:$0xf] }
  0xf2   : > { %v6457_v56 = vld [vmem:[%s8462_s28 + $0xfb0] sm:$0xf]  ;;  %6454 = vst [vmem:[%s8467_s29 + $0x308] sm:$0xf] %v6453_v54  ;;  %6456 = vst [vmem:[%s8467_s29 + $0x31c] sm:$0xf] %v6455_v55 }
  0xf3   : > { %6458 = vst [vmem:[%s8467_s29 + $0x330] sm:$0xf] %v6457_v56  ;;  %v6459_v57 = vld [vmem:[%s8462_s28 + $0x1014] sm:$0xf]  ;;  %v6461_v58 = vld [vmem:[%s8462_s28 + $0x1078] sm:$0xf] }
  0xf4   : > { %v6463_v59 = vld [vmem:[%s8462_s28 + $0x10dc] sm:$0xf]  ;;  %6460 = vst [vmem:[%s8467_s29 + $0x344] sm:$0xf] %v6459_v57  ;;  %6462 = vst [vmem:[%s8467_s29 + $0x358] sm:$0xf] %v6461_v58 }
  0xf5   : > { %6464 = vst [vmem:[%s8467_s29 + $0x36c] sm:$0xf] %v6463_v59  ;;  %v6465_v60 = vld [vmem:[%s8462_s28 + $0x1140] sm:$0xf]  ;;  %v6467_v61 = vld [vmem:[%s8462_s28 + $0x11a4] sm:$0xf] }
  0xf6   : > { %v6469_v62 = vld [vmem:[%s8462_s28 + $0x1208] sm:$0xf]  ;;  %6466 = vst [vmem:[%s8467_s29 + $0x380] sm:$0xf] %v6465_v60  ;;  %6468 = vst [vmem:[%s8467_s29 + $0x394] sm:$0xf] %v6467_v61 }
  0xf7   : > { %6470 = vst [vmem:[%s8467_s29 + $0x3a8] sm:$0xf] %v6469_v62  ;;  %v6471_v63 = vld [vmem:[%s8462_s28 + $0x126c] sm:$0xf]  ;;  %v6473_v0 = vld [vmem:[%s8462_s28 + $0x12d0] sm:$0xf] }
  0xf8   : > { %v6475_v1 = vld [vmem:[%s8462_s28 + $0x1334] sm:$0xf]  ;;  %6472 = vst [vmem:[%s8467_s29 + $0x3bc] sm:$0xf] %v6471_v63  ;;  %6474 = vst [vmem:[%s8467_s29 + $0x3d0] sm:$0xf] %v6473_v0 }
  0xf9   : > { %6476 = vst [vmem:[%s8467_s29 + $0x3e4] sm:$0xf] %v6475_v1  ;;  %v6477_v2 = vld [vmem:[%s8462_s28 + $0x1398] sm:$0xf]  ;;  %v6479_v3 = vld [vmem:[%s8462_s28 + $0x13fc] sm:$0xf] }
  0xfa   : > { %v6481_v4 = vld [vmem:[%s8462_s28 + $0x1460] sm:$0xf]  ;;  %6478 = vst [vmem:[%s8467_s29 + $0x3f8] sm:$0xf] %v6477_v2  ;;  %6480 = vst [vmem:[%s8467_s29 + $0x40c] sm:$0xf] %v6479_v3 }
  0xfb   : > { %6482 = vst [vmem:[%s8467_s29 + $0x420] sm:$0xf] %v6481_v4  ;;  %v6483_v5 = vld [vmem:[%s8462_s28 + $0x14c4] sm:$0xf]  ;;  %v6485_v6 = vld [vmem:[%s8462_s28 + $0x1528] sm:$0xf] }
  0xfc   : > { %v6487_v7 = vld [vmem:[%s8462_s28 + $0x158c] sm:$0xf]  ;;  %6484 = vst [vmem:[%s8467_s29 + $0x434] sm:$0xf] %v6483_v5  ;;  %6486 = vst [vmem:[%s8467_s29 + $0x448] sm:$0xf] %v6485_v6 }
  0xfd   : > { %6488 = vst [vmem:[%s8467_s29 + $0x45c] sm:$0xf] %v6487_v7  ;;  %v6489_v8 = vld [vmem:[%s8462_s28 + $0x15f0] sm:$0xf]  ;;  %v6491_v9 = vld [vmem:[%s8462_s28 + $0x1654] sm:$0xf] }
  0xfe   : > { %v6493_v10 = vld [vmem:[%s8462_s28 + $0x16b8] sm:$0xf]  ;;  %6490 = vst [vmem:[%s8467_s29 + $0x470] sm:$0xf] %v6489_v8  ;;  %6492 = vst [vmem:[%s8467_s29 + $0x484] sm:$0xf] %v6491_v9 }
  0xff   : > { %6494 = vst [vmem:[%s8467_s29 + $0x498] sm:$0xf] %v6493_v10  ;;  %v6495_v11 = vld [vmem:[%s8462_s28 + $0x171c] sm:$0xf]  ;;  %v6497_v12 = vld [vmem:[%s8462_s28 + $0x1780] sm:$0xf] }
 0x100   : > { %v6499_v13 = vld [vmem:[%s8462_s28 + $0x17e4] sm:$0xf]  ;;  %6496 = vst [vmem:[%s8467_s29 + $0x4ac] sm:$0xf] %v6495_v11  ;;  %6498 = vst [vmem:[%s8467_s29 + $0x4c0] sm:$0xf] %v6497_v12 }
 0x101   : > { %6500 = vst [vmem:[%s8467_s29 + $0x4d4] sm:$0xf] %v6499_v13  ;;  %v6501_v14 = vld [vmem:[%s8462_s28 + $0x1848] sm:$0xf]  ;;  %v6503_v15 = vld [vmem:[%s8462_s28 + $0x18ac] sm:$0xf] }
 0x102   : > { %v6505_v16 = vld [vmem:[%s8462_s28 + $0x1910] sm:$0xf]  ;;  %6502 = vst [vmem:[%s8467_s29 + $0x4e8] sm:$0xf] %v6501_v14  ;;  %6504 = vst [vmem:[%s8467_s29 + $0x4fc] sm:$0xf] %v6503_v15 }
 0x103   : > { %6506 = vst [vmem:[%s8467_s29 + $0x510] sm:$0xf] %v6505_v16  ;;  %v6507_v17 = vld [vmem:[%s8462_s28 + $0x1974] sm:$0xf]  ;;  %v6509_v18 = vld [vmem:[%s8462_s28 + $0x19d8] sm:$0xf] }
 0x104   : > { %v6511_v19 = vld [vmem:[%s8462_s28 + $0x1a3c] sm:$0xf]  ;;  %6508 = vst [vmem:[%s8467_s29 + $0x524] sm:$0xf] %v6507_v17  ;;  %6510 = vst [vmem:[%s8467_s29 + $0x538] sm:$0xf] %v6509_v18 }
 0x105   : > { %6512 = vst [vmem:[%s8467_s29 + $0x54c] sm:$0xf] %v6511_v19  ;;  %v6513_v20 = vld [vmem:[%s8462_s28 + $0x1aa0] sm:$0xf]  ;;  %v6515_v21 = vld [vmem:[%s8462_s28 + $0x1b04] sm:$0xf] }
 0x106   : > { %v6517_v22 = vld [vmem:[%s8462_s28 + $0x1b68] sm:$0xf]  ;;  %6514 = vst [vmem:[%s8467_s29 + $0x560] sm:$0xf] %v6513_v20  ;;  %6516 = vst [vmem:[%s8467_s29 + $0x574] sm:$0xf] %v6515_v21 }
 0x107   : > { %6518 = vst [vmem:[%s8467_s29 + $0x588] sm:$0xf] %v6517_v22  ;;  %v6519_v23 = vld [vmem:[%s8462_s28 + $0x1bcc] sm:$0xf]  ;;  %v6521_v24 = vld [vmem:[%s8462_s28 + $0x1c30] sm:$0xf] }
 0x108   : > { %v6523_v25 = vld [vmem:[%s8462_s28 + $0x1c94] sm:$0xf]  ;;  %6520 = vst [vmem:[%s8467_s29 + $0x59c] sm:$0xf] %v6519_v23  ;;  %6522 = vst [vmem:[%s8467_s29 + $0x5b0] sm:$0xf] %v6521_v24 }
 0x109   : > { %6524 = vst [vmem:[%s8467_s29 + $0x5c4] sm:$0xf] %v6523_v25  ;;  %v6525_v26 = vld [vmem:[%s8462_s28 + $0x1cf8] sm:$0xf]  ;;  %v6527_v27 = vld [vmem:[%s8462_s28 + $0x1d5c] sm:$0xf] }
 0x10a   : > { %v6529_v28 = vld [vmem:[%s8462_s28 + $0x1dc0] sm:$0xf]  ;;  %6526 = vst [vmem:[%s8467_s29 + $0x5d8] sm:$0xf] %v6525_v26  ;;  %6528 = vst [vmem:[%s8467_s29 + $0x5ec] sm:$0xf] %v6527_v27 }
 0x10b   : > { %6530 = vst [vmem:[%s8467_s29 + $0x600] sm:$0xf] %v6529_v28  ;;  %v6531_v29 = vld [vmem:[%s8462_s28 + $0x1e24] sm:$0xf]  ;;  %v6533_v30 = vld [vmem:[%s8462_s28 + $0x1e88] sm:$0xf] }
 0x10c   : > { %v6535_v31 = vld [vmem:[%s8462_s28 + $0x1eec] sm:$0xf]  ;;  %6532 = vst [vmem:[%s8467_s29 + $0x614] sm:$0xf] %v6531_v29  ;;  %6534 = vst [vmem:[%s8467_s29 + $0x628] sm:$0xf] %v6533_v30 }
 0x10d   : > { %6536 = vst [vmem:[%s8467_s29 + $0x63c] sm:$0xf] %v6535_v31  ;;  %v6537_v32 = vld [vmem:[%s8462_s28 + $0x1f50] sm:$0xf]  ;;  %v6539_v33 = vld [vmem:[%s8462_s28 + $0x1fb4] sm:$0xf] }
 0x10e   : > { %v6541_v34 = vld [vmem:[%s8462_s28 + $0x2018] sm:$0xf]  ;;  %6538 = vst [vmem:[%s8467_s29 + $0x650] sm:$0xf] %v6537_v32  ;;  %6540 = vst [vmem:[%s8467_s29 + $0x664] sm:$0xf] %v6539_v33 }
 0x10f   : > { %6542 = vst [vmem:[%s8467_s29 + $0x678] sm:$0xf] %v6541_v34  ;;  %v6543_v35 = vld [vmem:[%s8462_s28 + $0x207c] sm:$0xf]  ;;  %v6545_v36 = vld [vmem:[%s8462_s28 + $0x20e0] sm:$0xf] }
 0x110   : > { %v6547_v37 = vld [vmem:[%s8462_s28 + $0x2144] sm:$0xf]  ;;  %6544 = vst [vmem:[%s8467_s29 + $0x68c] sm:$0xf] %v6543_v35  ;;  %6546 = vst [vmem:[%s8467_s29 + $0x6a0] sm:$0xf] %v6545_v36 }
 0x111   : > { %6548 = vst [vmem:[%s8467_s29 + $0x6b4] sm:$0xf] %v6547_v37  ;;  %v6549_v38 = vld [vmem:[%s8462_s28 + $0x21a8] sm:$0xf]  ;;  %v6551_v39 = vld [vmem:[%s8462_s28 + $0x220c] sm:$0xf] }
 0x112   : > { %v6553_v40 = vld [vmem:[%s8462_s28 + $0x2270] sm:$0xf]  ;;  %6550 = vst [vmem:[%s8467_s29 + $0x6c8] sm:$0xf] %v6549_v38  ;;  %6552 = vst [vmem:[%s8467_s29 + $0x6dc] sm:$0xf] %v6551_v39 }
 0x113   : > { %6554 = vst [vmem:[%s8467_s29 + $0x6f0] sm:$0xf] %v6553_v40  ;;  %v6555_v41 = vld [vmem:[%s8462_s28 + $0x22d4] sm:$0xf]  ;;  %v6557_v42 = vld [vmem:[%s8462_s28 + $0x2338] sm:$0xf] }
 0x114   : > { %v6559_v43 = vld [vmem:[%s8462_s28 + $0x239c] sm:$0xf]  ;;  %6556 = vst [vmem:[%s8467_s29 + $0x704] sm:$0xf] %v6555_v41  ;;  %6558 = vst [vmem:[%s8467_s29 + $0x718] sm:$0xf] %v6557_v42 }
 0x115   : > { %6560 = vst [vmem:[%s8467_s29 + $0x72c] sm:$0xf] %v6559_v43  ;;  %v6561_v44 = vld [vmem:[%s8462_s28 + $0x2400] sm:$0xf]  ;;  %v6563_v45 = vld [vmem:[%s8462_s28 + $0x2464] sm:$0xf] }
 0x116   : > { %v6565_v46 = vld [vmem:[%s8462_s28 + $0x24c8] sm:$0xf]  ;;  %6562 = vst [vmem:[%s8467_s29 + $0x740] sm:$0xf] %v6561_v44  ;;  %6564 = vst [vmem:[%s8467_s29 + $0x754] sm:$0xf] %v6563_v45 }
 0x117   : > { %6566 = vst [vmem:[%s8467_s29 + $0x768] sm:$0xf] %v6565_v46  ;;  %v6567_v47 = vld [vmem:[%s8462_s28 + $0x252c] sm:$0xf]  ;;  %v6569_v48 = vld [vmem:[%s8462_s28 + $0x2590] sm:$0xf] }
 0x118   : > { %v6571_v49 = vld [vmem:[%s8462_s28 + $0x25f4] sm:$0xf]  ;;  %6568 = vst [vmem:[%s8467_s29 + $0x77c] sm:$0xf] %v6567_v47  ;;  %6570 = vst [vmem:[%s8467_s29 + $0x790] sm:$0xf] %v6569_v48 }
 0x119   : > { %6572 = vst [vmem:[%s8467_s29 + $0x7a4] sm:$0xf] %v6571_v49  ;;  %v6573_v50 = vld [vmem:[%s8462_s28 + $0x2658] sm:$0xf]  ;;  %v6575_v51 = vld [vmem:[%s8462_s28 + $0x26bc] sm:$0xf] }
 0x11a   : > { %v6577_v52 = vld [vmem:[%s8462_s28 + $0x2720] sm:$0xf]  ;;  %6574 = vst [vmem:[%s8467_s29 + $0x7b8] sm:$0xf] %v6573_v50  ;;  %6576 = vst [vmem:[%s8467_s29 + $0x7cc] sm:$0xf] %v6575_v51 }
 0x11b   : > { %6578 = vst [vmem:[%s8467_s29 + $0x7e0] sm:$0xf] %v6577_v52  ;;  %v6579_v53 = vld [vmem:[%s8462_s28 + $0x2784] sm:$0xf]  ;;  %v6581_v54 = vld [vmem:[%s8462_s28 + $0x27e8] sm:$0xf] }
 0x11c   : > { %v6583_v55 = vld [vmem:[%s8462_s28 + $0x284c] sm:$0xf]  ;;  %6580 = vst [vmem:[%s8467_s29 + $0x7f4] sm:$0xf] %v6579_v53  ;;  %6582 = vst [vmem:[%s8467_s29 + $0x808] sm:$0xf] %v6581_v54 }
 0x11d   : > { %6584 = vst [vmem:[%s8467_s29 + $0x81c] sm:$0xf] %v6583_v55  ;;  %v6585_v56 = vld [vmem:[%s8462_s28 + $0x28b0] sm:$0xf]  ;;  %v6587_v57 = vld [vmem:[%s8462_s28 + $0x2914] sm:$0xf] }
 0x11e   : > { %v6589_v58 = vld [vmem:[%s8462_s28 + $0x2978] sm:$0xf]  ;;  %6586 = vst [vmem:[%s8467_s29 + $0x830] sm:$0xf] %v6585_v56  ;;  %6588 = vst [vmem:[%s8467_s29 + $0x844] sm:$0xf] %v6587_v57 }
 0x11f   : > { %6590 = vst [vmem:[%s8467_s29 + $0x858] sm:$0xf] %v6589_v58  ;;  %v6591_v59 = vld [vmem:[%s8462_s28 + $0x29dc] sm:$0xf]  ;;  %v6593_v60 = vld [vmem:[%s8462_s28 + $0x2a40] sm:$0xf] }
 0x120   : > { %v6595_v61 = vld [vmem:[%s8462_s28 + $0x2aa4] sm:$0xf]  ;;  %6592 = vst [vmem:[%s8467_s29 + $0x86c] sm:$0xf] %v6591_v59  ;;  %6594 = vst [vmem:[%s8467_s29 + $0x880] sm:$0xf] %v6593_v60 }
 0x121   : > { %6596 = vst [vmem:[%s8467_s29 + $0x894] sm:$0xf] %v6595_v61  ;;  %v6597_v62 = vld [vmem:[%s8462_s28 + $0x2b08] sm:$0xf]  ;;  %v6599_v63 = vld [vmem:[%s8462_s28 + $0x2b6c] sm:$0xf] }
 0x122   : > { %v6601_v0 = vld [vmem:[%s8462_s28 + $0x2bd0] sm:$0xf]  ;;  %6598 = vst [vmem:[%s8467_s29 + $0x8a8] sm:$0xf] %v6597_v62  ;;  %6600 = vst [vmem:[%s8467_s29 + $0x8bc] sm:$0xf] %v6599_v63 }
 0x123   : > { %6602 = vst [vmem:[%s8467_s29 + $0x8d0] sm:$0xf] %v6601_v0  ;;  %v6603_v1 = vld [vmem:[%s8462_s28 + $0x2c34] sm:$0xf]  ;;  %v6605_v2 = vld [vmem:[%s8462_s28 + $0x2c98] sm:$0xf] }
 0x124   : > { %v6607_v3 = vld [vmem:[%s8462_s28 + $0x2cfc] sm:$0xf]  ;;  %6604 = vst [vmem:[%s8467_s29 + $0x8e4] sm:$0xf] %v6603_v1  ;;  %6606 = vst [vmem:[%s8467_s29 + $0x8f8] sm:$0xf] %v6605_v2 }
 0x125   : > { %6608 = vst [vmem:[%s8467_s29 + $0x90c] sm:$0xf] %v6607_v3  ;;  %v6609_v4 = vld [vmem:[%s8462_s28 + $0x2d60] sm:$0xf]  ;;  %v6611_v5 = vld [vmem:[%s8462_s28 + $0x2dc4] sm:$0xf] }
 0x126   : > { %v6613_v6 = vld [vmem:[%s8462_s28 + $0x2e28] sm:$0xf]  ;;  %6610 = vst [vmem:[%s8467_s29 + $0x920] sm:$0xf] %v6609_v4  ;;  %6612 = vst [vmem:[%s8467_s29 + $0x934] sm:$0xf] %v6611_v5 }
 0x127   : > { %6614 = vst [vmem:[%s8467_s29 + $0x948] sm:$0xf] %v6613_v6  ;;  %v6615_v7 = vld [vmem:[%s8462_s28 + $0x2e8c] sm:$0xf]  ;;  %v6617_v8 = vld [vmem:[%s8462_s28 + $0x2ef0] sm:$0xf] }
 0x128   : > { %v6619_v9 = vld [vmem:[%s8462_s28 + $0x2f54] sm:$0xf]  ;;  %6616 = vst [vmem:[%s8467_s29 + $0x95c] sm:$0xf] %v6615_v7  ;;  %6618 = vst [vmem:[%s8467_s29 + $0x970] sm:$0xf] %v6617_v8 }
 0x129   : > { %6620 = vst [vmem:[%s8467_s29 + $0x984] sm:$0xf] %v6619_v9  ;;  %v6621_v10 = vld [vmem:[%s8462_s28 + $0x2fb8] sm:$0xf]  ;;  %v6623_v11 = vld [vmem:[%s8462_s28 + $0x301c] sm:$0xf] }
 0x12a   : > { %v6625_v12 = vld [vmem:[%s8462_s28 + $0x3080] sm:$0xf]  ;;  %6622 = vst [vmem:[%s8467_s29 + $0x998] sm:$0xf] %v6621_v10  ;;  %6624 = vst [vmem:[%s8467_s29 + $0x9ac] sm:$0xf] %v6623_v11 }
 0x12b   : > { %6626 = vst [vmem:[%s8467_s29 + $0x9c0] sm:$0xf] %v6625_v12  ;;  %v6627_v13 = vld [vmem:[%s8462_s28 + $0x30e4] sm:$0xf]  ;;  %v6629_v14 = vld [vmem:[%s8462_s28 + $0x3148] sm:$0xf] }
 0x12c   : > { %v6631_v15 = vld [vmem:[%s8462_s28 + $0x31ac] sm:$0xf]  ;;  %6628 = vst [vmem:[%s8467_s29 + $0x9d4] sm:$0xf] %v6627_v13  ;;  %6630 = vst [vmem:[%s8467_s29 + $0x9e8] sm:$0xf] %v6629_v14 }
 0x12d   : > { %6632 = vst [vmem:[%s8467_s29 + $0x9fc] sm:$0xf] %v6631_v15  ;;  %v6633_v16 = vld [vmem:[%s8462_s28 + $0x3210] sm:$0xf]  ;;  %v6635_v17 = vld [vmem:[%s8462_s28 + $0x3274] sm:$0xf] }
 0x12e   : > { %v6637_v18 = vld [vmem:[%s8462_s28 + $0x32d8] sm:$0xf]  ;;  %6634 = vst [vmem:[%s8467_s29 + $0xa10] sm:$0xf] %v6633_v16  ;;  %6636 = vst [vmem:[%s8467_s29 + $0xa24] sm:$0xf] %v6635_v17 }
 0x12f   : > { %6638 = vst [vmem:[%s8467_s29 + $0xa38] sm:$0xf] %v6637_v18  ;;  %v6639_v19 = vld [vmem:[%s8462_s28 + $0x333c] sm:$0xf]  ;;  %v6641_v20 = vld [vmem:[%s8462_s28 + $0x33a0] sm:$0xf] }
 0x130   : > { %v6643_v21 = vld [vmem:[%s8462_s28 + $0x3404] sm:$0xf]  ;;  %6640 = vst [vmem:[%s8467_s29 + $0xa4c] sm:$0xf] %v6639_v19  ;;  %6642 = vst [vmem:[%s8467_s29 + $0xa60] sm:$0xf] %v6641_v20 }
 0x131   : > { %6644 = vst [vmem:[%s8467_s29 + $0xa74] sm:$0xf] %v6643_v21  ;;  %v6645_v22 = vld [vmem:[%s8462_s28 + $0x3468] sm:$0xf]  ;;  %v6647_v23 = vld [vmem:[%s8462_s28 + $0x34cc] sm:$0xf] }
 0x132   : > { %v6649_v24 = vld [vmem:[%s8462_s28 + $0x3530] sm:$0xf]  ;;  %6646 = vst [vmem:[%s8467_s29 + $0xa88] sm:$0xf] %v6645_v22  ;;  %6648 = vst [vmem:[%s8467_s29 + $0xa9c] sm:$0xf] %v6647_v23 }
 0x133   : > { %6650 = vst [vmem:[%s8467_s29 + $0xab0] sm:$0xf] %v6649_v24  ;;  %v6651_v25 = vld [vmem:[%s8462_s28 + $0x3594] sm:$0xf]  ;;  %v6653_v26 = vld [vmem:[%s8462_s28 + $0x35f8] sm:$0xf] }
 0x134   : > { %v6655_v27 = vld [vmem:[%s8462_s28 + $0x365c] sm:$0xf]  ;;  %6652 = vst [vmem:[%s8467_s29 + $0xac4] sm:$0xf] %v6651_v25  ;;  %6654 = vst [vmem:[%s8467_s29 + $0xad8] sm:$0xf] %v6653_v26 }
 0x135   : > { %6656 = vst [vmem:[%s8467_s29 + $0xaec] sm:$0xf] %v6655_v27  ;;  %v6657_v28 = vld [vmem:[%s8462_s28 + $0x36c0] sm:$0xf]  ;;  %v6659_v29 = vld [vmem:[%s8462_s28 + $0x3724] sm:$0xf] }
 0x136   : > { %v6661_v30 = vld [vmem:[%s8462_s28 + $0x3788] sm:$0xf]  ;;  %6658 = vst [vmem:[%s8467_s29 + $0xb00] sm:$0xf] %v6657_v28  ;;  %6660 = vst [vmem:[%s8467_s29 + $0xb14] sm:$0xf] %v6659_v29 }
 0x137   : > { %6662 = vst [vmem:[%s8467_s29 + $0xb28] sm:$0xf] %v6661_v30  ;;  %v6663_v31 = vld [vmem:[%s8462_s28 + $0x37ec] sm:$0xf]  ;;  %v6665_v32 = vld [vmem:[%s8462_s28 + $0x3850] sm:$0xf] }
 0x138   : > { %v6667_v33 = vld [vmem:[%s8462_s28 + $0x38b4] sm:$0xf]  ;;  %6664 = vst [vmem:[%s8467_s29 + $0xb3c] sm:$0xf] %v6663_v31  ;;  %6666 = vst [vmem:[%s8467_s29 + $0xb50] sm:$0xf] %v6665_v32 }
 0x139   : > { %6668 = vst [vmem:[%s8467_s29 + $0xb64] sm:$0xf] %v6667_v33  ;;  %v6669_v34 = vld [vmem:[%s8462_s28 + $0x3918] sm:$0xf]  ;;  %v6671_v35 = vld [vmem:[%s8462_s28 + $0x397c] sm:$0xf] }
 0x13a   : > { %v6673_v36 = vld [vmem:[%s8462_s28 + $0x39e0] sm:$0xf]  ;;  %6670 = vst [vmem:[%s8467_s29 + $0xb78] sm:$0xf] %v6669_v34  ;;  %6672 = vst [vmem:[%s8467_s29 + $0xb8c] sm:$0xf] %v6671_v35 }
 0x13b   : > { %6674 = vst [vmem:[%s8467_s29 + $0xba0] sm:$0xf] %v6673_v36  ;;  %v6675_v37 = vld [vmem:[%s8462_s28 + $0x3a44] sm:$0xf]  ;;  %v6677_v38 = vld [vmem:[%s8462_s28 + $0x3aa8] sm:$0xf] }
 0x13c   : > { %v6679_v39 = vld [vmem:[%s8462_s28 + $0x3b0c] sm:$0xf]  ;;  %6676 = vst [vmem:[%s8467_s29 + $0xbb4] sm:$0xf] %v6675_v37  ;;  %6678 = vst [vmem:[%s8467_s29 + $0xbc8] sm:$0xf] %v6677_v38 }
 0x13d   : > { %6680 = vst [vmem:[%s8467_s29 + $0xbdc] sm:$0xf] %v6679_v39  ;;  %v6681_v40 = vld [vmem:[%s8462_s28 + $0x3b70] sm:$0xf]  ;;  %v6683_v41 = vld [vmem:[%s8462_s28 + $0x3bd4] sm:$0xf] }
 0x13e   : > { %v6685_v42 = vld [vmem:[%s8462_s28 + $0x3c38] sm:$0xf]  ;;  %6682 = vst [vmem:[%s8467_s29 + $0xbf0] sm:$0xf] %v6681_v40  ;;  %6684 = vst [vmem:[%s8467_s29 + $0xc04] sm:$0xf] %v6683_v41 }
 0x13f   : > { %6686 = vst [vmem:[%s8467_s29 + $0xc18] sm:$0xf] %v6685_v42  ;;  %v6687_v43 = vld [vmem:[%s8462_s28 + $0x3c9c] sm:$0xf]  ;;  %v6689_v44 = vld [vmem:[%s8462_s28 + $0x3d00] sm:$0xf] }
 0x140   : > { %v6691_v45 = vld [vmem:[%s8462_s28 + $0x3d64] sm:$0xf]  ;;  %6688 = vst [vmem:[%s8467_s29 + $0xc2c] sm:$0xf] %v6687_v43  ;;  %6690 = vst [vmem:[%s8467_s29 + $0xc40] sm:$0xf] %v6689_v44 }
 0x141   : > { %6692 = vst [vmem:[%s8467_s29 + $0xc54] sm:$0xf] %v6691_v45  ;;  %v6693_v46 = vld [vmem:[%s8462_s28 + $0x3dc8] sm:$0xf]  ;;  %v6695_v47 = vld [vmem:[%s8462_s28 + $0x3e2c] sm:$0xf] }
 0x142   : > { %v6697_v48 = vld [vmem:[%s8462_s28 + $0x3e90] sm:$0xf]  ;;  %6694 = vst [vmem:[%s8467_s29 + $0xc68] sm:$0xf] %v6693_v46  ;;  %6696 = vst [vmem:[%s8467_s29 + $0xc7c] sm:$0xf] %v6695_v47 }
 0x143   : > { %6698 = vst [vmem:[%s8467_s29 + $0xc90] sm:$0xf] %v6697_v48  ;;  %v6699_v49 = vld [vmem:[%s8462_s28 + $0x3ef4] sm:$0xf]  ;;  %v6701_v50 = vld [vmem:[%s8462_s28 + $0x3f58] sm:$0xf] }
 0x144   : > { %v6703_v51 = vld [vmem:[%s8462_s28 + $0x3fbc] sm:$0xf]  ;;  %6700 = vst [vmem:[%s8467_s29 + $0xca4] sm:$0xf] %v6699_v49  ;;  %6702 = vst [vmem:[%s8467_s29 + $0xcb8] sm:$0xf] %v6701_v50 }
 0x145   : > { %6704 = vst [vmem:[%s8467_s29 + $0xccc] sm:$0xf] %v6703_v51  ;;  %v6705_v52 = vld [vmem:[%s8462_s28 + $0x4020] sm:$0xf]  ;;  %v6707_v53 = vld [vmem:[%s8462_s28 + $0x4084] sm:$0xf] }
 0x146   : > { %v6709_v54 = vld [vmem:[%s8462_s28 + $0x40e8] sm:$0xf]  ;;  %6706 = vst [vmem:[%s8467_s29 + $0xce0] sm:$0xf] %v6705_v52  ;;  %6708 = vst [vmem:[%s8467_s29 + $0xcf4] sm:$0xf] %v6707_v53 }
 0x147   : > { %6710 = vst [vmem:[%s8467_s29 + $0xd08] sm:$0xf] %v6709_v54  ;;  %v6711_v55 = vld [vmem:[%s8462_s28 + $0x414c] sm:$0xf]  ;;  %v6713_v56 = vld [vmem:[%s8462_s28 + $0x41b0] sm:$0xf] }
 0x148   : > { %v6715_v57 = vld [vmem:[%s8462_s28 + $0x4214] sm:$0xf]  ;;  %6712 = vst [vmem:[%s8467_s29 + $0xd1c] sm:$0xf] %v6711_v55  ;;  %6714 = vst [vmem:[%s8467_s29 + $0xd30] sm:$0xf] %v6713_v56 }
 0x149   : > { %6716 = vst [vmem:[%s8467_s29 + $0xd44] sm:$0xf] %v6715_v57  ;;  %v6717_v58 = vld [vmem:[%s8462_s28 + $0x4278] sm:$0xf]  ;;  %v6719_v59 = vld [vmem:[%s8462_s28 + $0x42dc] sm:$0xf] }
 0x14a   : > { %v6721_v60 = vld [vmem:[%s8462_s28 + $0x4340] sm:$0xf]  ;;  %6718 = vst [vmem:[%s8467_s29 + $0xd58] sm:$0xf] %v6717_v58  ;;  %6720 = vst [vmem:[%s8467_s29 + $0xd6c] sm:$0xf] %v6719_v59 }
 0x14b   : > { %6722 = vst [vmem:[%s8467_s29 + $0xd80] sm:$0xf] %v6721_v60  ;;  %v6723_v61 = vld [vmem:[%s8462_s28 + $0x43a4] sm:$0xf]  ;;  %v6725_v62 = vld [vmem:[%s8462_s28 + $0x4408] sm:$0xf] }
 0x14c   : > { %v6727_v63 = vld [vmem:[%s8462_s28 + $0x446c] sm:$0xf]  ;;  %6724 = vst [vmem:[%s8467_s29 + $0xd94] sm:$0xf] %v6723_v61  ;;  %6726 = vst [vmem:[%s8467_s29 + $0xda8] sm:$0xf] %v6725_v62 }
 0x14d   : > { %6728 = vst [vmem:[%s8467_s29 + $0xdbc] sm:$0xf] %v6727_v63  ;;  %v6729_v0 = vld [vmem:[%s8462_s28 + $0x44d0] sm:$0xf]  ;;  %v6731_v1 = vld [vmem:[%s8462_s28 + $0x4534] sm:$0xf] }
 0x14e   : > { %v6733_v2 = vld [vmem:[%s8462_s28 + $0x4598] sm:$0xf]  ;;  %6730 = vst [vmem:[%s8467_s29 + $0xdd0] sm:$0xf] %v6729_v0  ;;  %6732 = vst [vmem:[%s8467_s29 + $0xde4] sm:$0xf] %v6731_v1 }
 0x14f   : > { %6734 = vst [vmem:[%s8467_s29 + $0xdf8] sm:$0xf] %v6733_v2  ;;  %v6735_v3 = vld [vmem:[%s8462_s28 + $0x45fc] sm:$0xf]  ;;  %v6737_v4 = vld [vmem:[%s8462_s28 + $0x4660] sm:$0xf] }
 0x150   : > { %v6739_v5 = vld [vmem:[%s8462_s28 + $0x46c4] sm:$0xf]  ;;  %6736 = vst [vmem:[%s8467_s29 + $0xe0c] sm:$0xf] %v6735_v3  ;;  %6738 = vst [vmem:[%s8467_s29 + $0xe20] sm:$0xf] %v6737_v4 }
 0x151   : > { %6740 = vst [vmem:[%s8467_s29 + $0xe34] sm:$0xf] %v6739_v5  ;;  %v6741_v6 = vld [vmem:[%s8462_s28 + $0x4728] sm:$0xf]  ;;  %v6743_v7 = vld [vmem:[%s8462_s28 + $0x478c] sm:$0xf] }
 0x152   : > { %v6745_v8 = vld [vmem:[%s8462_s28 + $0x47f0] sm:$0xf]  ;;  %6742 = vst [vmem:[%s8467_s29 + $0xe48] sm:$0xf] %v6741_v6  ;;  %6744 = vst [vmem:[%s8467_s29 + $0xe5c] sm:$0xf] %v6743_v7 }
 0x153   : > { %6746 = vst [vmem:[%s8467_s29 + $0xe70] sm:$0xf] %v6745_v8  ;;  %v6747_v9 = vld [vmem:[%s8462_s28 + $0x4854] sm:$0xf]  ;;  %v6749_v10 = vld [vmem:[%s8462_s28 + $0x48b8] sm:$0xf] }
 0x154   : > { %v6751_v11 = vld [vmem:[%s8462_s28 + $0x491c] sm:$0xf]  ;;  %6748 = vst [vmem:[%s8467_s29 + $0xe84] sm:$0xf] %v6747_v9  ;;  %6750 = vst [vmem:[%s8467_s29 + $0xe98] sm:$0xf] %v6749_v10 }
 0x155   : > { %6752 = vst [vmem:[%s8467_s29 + $0xeac] sm:$0xf] %v6751_v11  ;;  %v6753_v12 = vld [vmem:[%s8462_s28 + $0x4980] sm:$0xf]  ;;  %v6755_v13 = vld [vmem:[%s8462_s28 + $0x49e4] sm:$0xf] }
 0x156   : > { %v6757_v14 = vld [vmem:[%s8462_s28 + $0x4a48] sm:$0xf]  ;;  %6754 = vst [vmem:[%s8467_s29 + $0xec0] sm:$0xf] %v6753_v12  ;;  %6756 = vst [vmem:[%s8467_s29 + $0xed4] sm:$0xf] %v6755_v13 }
 0x157   : > { %6758 = vst [vmem:[%s8467_s29 + $0xee8] sm:$0xf] %v6757_v14  ;;  %v6759_v15 = vld [vmem:[%s8462_s28 + $0x4aac] sm:$0xf]  ;;  %v6761_v16 = vld [vmem:[%s8462_s28 + $0x4b10] sm:$0xf] }
 0x158   : > { %v6763_v17 = vld [vmem:[%s8462_s28 + $0x4b74] sm:$0xf]  ;;  %6760 = vst [vmem:[%s8467_s29 + $0xefc] sm:$0xf] %v6759_v15  ;;  %6762 = vst [vmem:[%s8467_s29 + $0xf10] sm:$0xf] %v6761_v16 }
 0x159   : > { %6764 = vst [vmem:[%s8467_s29 + $0xf24] sm:$0xf] %v6763_v17  ;;  %v6765_v18 = vld [vmem:[%s8462_s28 + $0x4bd8] sm:$0xf]  ;;  %v6767_v19 = vld [vmem:[%s8462_s28 + $0x4c3c] sm:$0xf] }
 0x15a   : > { %v6769_v20 = vld [vmem:[%s8462_s28 + $0x4ca0] sm:$0xf]  ;;  %6766 = vst [vmem:[%s8467_s29 + $0xf38] sm:$0xf] %v6765_v18  ;;  %6768 = vst [vmem:[%s8467_s29 + $0xf4c] sm:$0xf] %v6767_v19 }
 0x15b   : > { %6770 = vst [vmem:[%s8467_s29 + $0xf60] sm:$0xf] %v6769_v20  ;;  %v6771_v21 = vld [vmem:[%s8462_s28 + $0x4d04] sm:$0xf]  ;;  %v6773_v22 = vld [vmem:[%s8462_s28 + $0x4d68] sm:$0xf] }
 0x15c   : > { %v6775_v23 = vld [vmem:[%s8462_s28 + $0x4dcc] sm:$0xf]  ;;  %6772 = vst [vmem:[%s8467_s29 + $0xf74] sm:$0xf] %v6771_v21  ;;  %6774 = vst [vmem:[%s8467_s29 + $0xf88] sm:$0xf] %v6773_v22 }
 0x15d   : > { %6776 = vst [vmem:[%s8467_s29 + $0xf9c] sm:$0xf] %v6775_v23 }
 0x15e PF: > { %p6777_p5 = scmp.ge.s32.totalorder %s8395_s17, 1  ;;  %p1411_p6 = scmp.lt.s32.totalorder %s8395_s17, 6 }
 0x160   : > { %p1412_p7 = pnand %p6777_p5, %p1411_p6 }
 0x161   : > { %s1418_s30 = sand.u32 (!%p1412_p7), 1, %s8387_s15   ;;  %s1454_s11 = smul.u32 (!%p1412_p7), 5, %s8442_s18 }
 0x162   : > { %1415 = sbr.rel (%p1412_p7) target bundleno = 1271 (0x4f7), region = 58  ;;  %p1466_p10 = scmp.lt.s32.totalorder (!%p1412_p7), %s8442_s18, 4 }
 0x163   : > { %s7521_s5 = smul.u32 (!%p1412_p7), 4000, %s1418_s30  ;;  %p1455_p8 = scmp.lt.s32.totalorder (!%p1412_p7), %s1454_s11, 24 }
 0x164   : > { %s1459_s15 = smul.u32 (!%p1412_p7), 80, %s8442_s18 }
 0x165   : > { %s9676_s8 = scalar_lea.vmem (!%p1412_p7), [#allocation2], %s7521_s5 }
 0x166   : > { %p1460_p9 = scmp.lt.s32.totalorder (!%p1412_p7), %s1459_s15, 399 }
 0x167   : > { %v2076_v24 = vlaneseq  ;;  %v8397_v25 = vmov 1966171168   ;;  %v9674_v28 = vld [vmem:[%s10456_s0] sm:$0xff]  ;;  %v7550_v30 = vld [vmem:[%s9676_s8 + $0x11c] ss:$20 sps:$4 sm:$0xff]   ;;  %vm4803_vm0 = vcmask 523264  }
 0x168   : > { %v2105_v26 = vunpack.c.l.s4 %v8397_v25  ;;  %v7552_v31 = vld [vmem:[%s9676_s8 + $0x39c] ss:$20 sps:$4 sm:$0xff]   ;;  %4807 = vmatprep.subr.bf16.mxu0 %v7550_v30  ;;  %v7554_v33 = vld [vmem:[%s9676_s8 + $0x118] ss:$20 sps:$4 sm:$0xff]   ;;  %v7556_v35 = vld [vmem:[%s9676_s8 + $0xf4] ss:$20 sps:$4 sm:$0xff]   ;;  %v2103_v25 = vcombine.high %v9674_v28, %v9674_v28 }
 0x169   : > { %v9669_v27 = vshrl.u32 %v2076_v24, 7  ;;  %v7555_v34 = vld [vmem:[%s9676_s8 + $0x398] ss:$20 sps:$4 sm:$0xff]   ;;  %4848 = vmatprep.subr.bf16.mxu1 %v7552_v31  ;;  %4808 = vmatpush1.bf16.msra.mxu0 %v7554_v33  ;;  %v7558_v37 = vld [vmem:[%s9676_s8 + $0x374] ss:$20 sps:$4 sm:$0xff]   ;;  %s10465_s11 = smov (!%p1455_p8, %s1454_s11), 24 }
 0x16a   : > { %v2106_v29 = vunpack.c.0.s8 %v2105_v26  ;;  %4849 = vmatpush1.bf16.msra.mxu1 %v7555_v34  ;;  %v7560_v38 = vld [vmem:[%s9676_s8 + $0xf0] ss:$20 sps:$4 sm:$0xff]   ;;  %4809 = vmatprep.subr.bf16.mxu0 %v7556_v35  ;;  %v7562_v41 = vld [vmem:[%s9676_s8 + $0xcc] ss:$20 sps:$4 sm:$0xff]   ;;  %v7566_v43 = vld [vmem:[%s9676_s8 + $0xc8] ss:$20 sps:$4 sm:$0xff]   ;;  %s10031_s14 = scalar_lea.vmem %s10458_s2, %s10465_s11 }
 0x16b   : > { %v7561_v39 = vld [vmem:[%s9676_s8 + $0x370] ss:$20 sps:$4 sm:$0xff]   ;;  %4850 = vmatprep.subr.bf16.mxu1 %v7558_v37  ;;  %v7564_v42 = vld [vmem:[%s9676_s8 + $0x34c] ss:$20 sps:$4 sm:$0xff]   ;;  %v7567_v44 = vld [vmem:[%s9676_s8 + $0x348] ss:$20 sps:$4 sm:$0xff]  }
 0x16c   : > { %v9681_v32 = vsub.s32 %v2106_v29, %v9669_v27  ;;  %v7568_v46 = vld [vmem:[%s9676_s8 + $0xa4] ss:$20 sps:$4 sm:$0xff]   ;;  %v7572_v49 = vld [vmem:[%s9676_s8 + $0xa0] ss:$20 sps:$4 sm:$0xff]   ;;  %v7574_v51 = vld [vmem:[%s9676_s8 + $0x7c] ss:$20 sps:$4 sm:$0xff]  }
 0x16d   : > { %4810 = vmatpush1.bf16.msra.mxu0 %v7560_v38  ;;  %v7570_v47 = vld [vmem:[%s9676_s8 + $0x324] ss:$20 sps:$4 sm:$0xff]   ;;  %v7573_v50 = vld [vmem:[%s9676_s8 + $0x320] ss:$20 sps:$4 sm:$0xff]   ;;  %v7576_v52 = vld [vmem:[%s9676_s8 + $0x2fc] ss:$20 sps:$4 sm:$0xff]  }
 0x16e   : > { %v9688_v36 = vrot.slane %v9674_v28, %v9681_v32  ;;  %4851 = vmatpush1.bf16.msra.mxu1 %v7561_v39  ;;  %4811 = vmatprep.subr.bf16.mxu0 %v7562_v41  ;;  %v7578_v53 = vld [vmem:[%s9676_s8 + $0x78] ss:$20 sps:$4 sm:$0xff]   ;;  %v7580_v55 = vld [vmem:[%s9676_s8 + $0x54] ss:$20 sps:$4 sm:$0xff]   ;;  %v7584_v57 = vld [vmem:[%s9676_s8 + $0x50] ss:$20 sps:$4 sm:$0xff]   ;;  %v9757_v33 = vrot.slane %v2103_v25, %v9681_v32 }
 0x16f   : > { %4852 = vmatprep.subr.bf16.mxu1 %v7564_v42  ;;  %v7579_v54 = vld [vmem:[%s9676_s8 + $0x2f8] ss:$20 sps:$4 sm:$0xff]   ;;  %v7582_v56 = vld [vmem:[%s9676_s8 + $0x2d4] ss:$20 sps:$4 sm:$0xff]   ;;  %v7585_v58 = vld [vmem:[%s9676_s8 + $0x2d0] ss:$20 sps:$4 sm:$0xff]  }
 0x170   : > { %v2118_v40 = vcombine.high %v9688_v36, %v9688_v36  ;;  %v7586_v59 = vld [vmem:[%s9676_s8 + $0x2c] ss:$20 sps:$4 sm:$0xff]   ;;  %v7590_v61 = vld [vmem:[%s9676_s8 + $0x28] ss:$20 sps:$4 sm:$0xff]   ;;  %v7592_v63 = vld [vmem:[%s9676_s8 + $0x4] ss:$20 sps:$4 sm:$0xff]   ;;  %v2119_v38 = vcombine.high %v9757_v33, %v9757_v33  ;;  %v9769_v41 = vrot.slane %v9688_v36, %v9681_v32 }
 0x171   : > { %4812 = vmatpush1.bf16.msra.mxu0 %v7566_v43  ;;  %v7588_v60 = vld [vmem:[%s9676_s8 + $0x2ac] ss:$20 sps:$4 sm:$0xff]   ;;  %v7591_v62 = vld [vmem:[%s9676_s8 + $0x2a8] ss:$20 sps:$4 sm:$0xff]   ;;  %v7594_v0 = vld [vmem:[%s9676_s8 + $0x284] ss:$20 sps:$4 sm:$0xff]  }
 0x172   : > { %v9700_v45 = vrot.slane %v2118_v40, %v9681_v32  ;;  %4853 = vmatpush1.bf16.msra.mxu1 %v7567_v44  ;;  %4813 = vmatprep.subr.bf16.mxu0 %v7568_v46  ;;  %v7596_v1 = vld [vmem:[%s9676_s8] ss:$20 sps:$4 sm:$0xff]   ;;  %v7598_v3 = vld [vmem:[%s9676_s8 + $0x25c] ss:$20 sps:$4 sm:$0xff]   ;;  %v7602_v5 = vld [vmem:[%s9676_s8 + $0x258] ss:$20 sps:$4 sm:$0xff]   ;;  %v9774_v44 = vrot.slane %v2119_v38, %v9681_v32 }
 0x173   : > { %4854 = vmatprep.subr.bf16.mxu1 %v7570_v47  ;;  %v7597_v2 = vld [vmem:[%s9676_s8 + $0x280] ss:$20 sps:$4 sm:$0xff]   ;;  %v7600_v4 = vld [vmem:[%s9676_s8 + $0x4dc] ss:$20 sps:$4 sm:$0xff]   ;;  %v7603_v6 = vld [vmem:[%s9676_s8 + $0x4d8] ss:$20 sps:$4 sm:$0xff]  }
 0x174   : > { %v9706_v48 = vcombine.high %v9700_v45, %v9700_v45  ;;  %4839 = vmatprep.mubr.bf16.mxu0 %v9700_v45  ;;  %v7604_v7 = vld [vmem:[%s9676_s8 + $0x234] ss:$20 sps:$4 sm:$0xff]   ;;  %v7608_v9 = vld [vmem:[%s9676_s8 + $0x230] ss:$20 sps:$4 sm:$0xff]   ;;  %v7610_v11 = vld [vmem:[%s9676_s8 + $0x20c] ss:$20 sps:$4 sm:$0xff]  }
 0x175   : > { %4814 = vmatpush1.bf16.msra.mxu0 %v7572_v49  ;;  %v7606_v8 = vld [vmem:[%s9676_s8 + $0x4b4] ss:$20 sps:$4 sm:$0xff]   ;;  %v7609_v10 = vld [vmem:[%s9676_s8 + $0x4b0] ss:$20 sps:$4 sm:$0xff]   ;;  %v7612_v12 = vld [vmem:[%s9676_s8 + $0x48c] ss:$20 sps:$4 sm:$0xff]   ;;  %v9780_v49 = vcombine.high %v9769_v41, %v9769_v41 }
 0x176   : > { %4880 = vmatprep.mubr.bf16.mxu1 %v9706_v48  ;;  %4855 = vmatpush1.bf16.msra.mxu1 %v7573_v50  ;;  %v7614_v13 = vld [vmem:[%s9676_s8 + $0x208] ss:$20 sps:$4 sm:$0xff]   ;;  %v7616_v15 = vld [vmem:[%s9676_s8 + $0x1e4] ss:$20 sps:$4 sm:$0xff]   ;;  %v7620_v17 = vld [vmem:[%s9676_s8 + $0x1e0] ss:$20 sps:$4 sm:$0xff]  }
 0x177   : > { %4815 = vmatprep.subr.bf16.mxu0 %v7574_v51  ;;  %4856 = vmatprep.subr.bf16.mxu1 %v7576_v52  ;;  %v7615_v14 = vld [vmem:[%s9676_s8 + $0x488] ss:$20 sps:$4 sm:$0xff]   ;;  %v7618_v16 = vld [vmem:[%s9676_s8 + $0x464] ss:$20 sps:$4 sm:$0xff]   ;;  %v7621_v18 = vld [vmem:[%s9676_s8 + $0x460] ss:$20 sps:$4 sm:$0xff]   ;;  %v9786_v51 = vcombine.high %v9774_v44, %v9774_v44 }
 0x178   : > { %v7622_v19 = vld [vmem:[%s9676_s8 + $0x1bc] ss:$20 sps:$4 sm:$0xff]   ;;  %v7626_v21 = vld [vmem:[%s9676_s8 + $0x1b8] ss:$20 sps:$4 sm:$0xff]   ;;  %v7628_v23 = vld [vmem:[%s9676_s8 + $0x194] ss:$20 sps:$4 sm:$0xff]  }
 0x179   : > { %4816 = vmatpush1.bf16.msra.mxu0 %v7578_v53  ;;  %v7624_v20 = vld [vmem:[%s9676_s8 + $0x43c] ss:$20 sps:$4 sm:$0xff]   ;;  %v7627_v22 = vld [vmem:[%s9676_s8 + $0x438] ss:$20 sps:$4 sm:$0xff]   ;;  %v7630_v24 = vld [vmem:[%s9676_s8 + $0x414] ss:$20 sps:$4 sm:$0xff]  }
 0x17a   : > { %4857 = vmatpush1.bf16.msra.mxu1 %v7579_v54  ;;  %4817 = vmatprep.subr.bf16.mxu0 %v7580_v55  ;;  %v7632_v26 = vld [vmem:[%s9676_s8 + $0x190] ss:$20 sps:$4 sm:$0xff]   ;;  %v7634_v30 = vld [vmem:[%s9676_s8 + $0x16c] ss:$20 sps:$4 sm:$0xff]   ;;  %v7638_v34 = vld [vmem:[%s9676_s8 + $0x168] ss:$20 sps:$4 sm:$0xff]  }
 0x17b   : > { %4858 = vmatprep.subr.bf16.mxu1 %v7582_v56  ;;  %v7633_v29 = vld [vmem:[%s9676_s8 + $0x410] ss:$20 sps:$4 sm:$0xff]   ;;  %v7636_v31 = vld [vmem:[%s9676_s8 + $0x3ec] ss:$20 sps:$4 sm:$0xff]   ;;  %v7639_v35 = vld [vmem:[%s9676_s8 + $0x3e8] ss:$20 sps:$4 sm:$0xff]  }
 0x17c   : > { %v7640_v28 = vld [vmem:[%s9676_s8 + $0x144] ss:$20 sps:$4 sm:$0xff]   ;;  %v7644_v39 = vld [vmem:[%s9676_s8 + $0x140] ss:$20 sps:$4 sm:$0xff]   ;;  %v7648_v42 = vld [vmem:[%s9676_s8 + $0x61c] ss:$20 sps:$4 sm:$0xff]  }
 0x17d   : > { %4818 = vmatpush1.bf16.msra.mxu0 %v7584_v57  ;;  %v7642_v37 = vld [vmem:[%s9676_s8 + $0x3c4] ss:$20 sps:$4 sm:$0xff]   ;;  %v7645_v40 = vld [vmem:[%s9676_s8 + $0x3c0] ss:$20 sps:$4 sm:$0xff]   ;;  %v7651_v43 = vld [vmem:[%s9676_s8 + $0x89c] ss:$20 sps:$4 sm:$0xff]  }
 0x17e   : > { %4859 = vmatpush1.bf16.msra.mxu1 %v7585_v58  ;;  %4819 = vmatprep.subr.bf16.mxu0 %v7586_v59  ;;  %v7646_v46 = vld [vmem:[%s9676_s8 + $0x618] ss:$20 sps:$4 sm:$0xff]   ;;  %v7654_v36 = vld [vmem:[%s9676_s8 + $0x5f4] ss:$20 sps:$4 sm:$0xff]   ;;  %v7652_v52 = vld [vmem:[%s9676_s8 + $0x5f0] ss:$20 sps:$4 sm:$0xff]  }
 0x17f   : > { %4860 = vmatprep.subr.bf16.mxu1 %v7588_v60  ;;  %v7649_v47 = vld [vmem:[%s9676_s8 + $0x898] ss:$20 sps:$4 sm:$0xff]   ;;  %v7657_v50 = vld [vmem:[%s9676_s8 + $0x874] ss:$20 sps:$4 sm:$0xff]   ;;  %v7655_v53 = vld [vmem:[%s9676_s8 + $0x870] ss:$20 sps:$4 sm:$0xff]  }
 0x180   : > { %v7660_v54 = vld [vmem:[%s9676_s8 + $0x5cc] ss:$20 sps:$4 sm:$0xff]   ;;  %v7658_v56 = vld [vmem:[%s9676_s8 + $0x5c8] ss:$20 sps:$4 sm:$0xff]   ;;  %v7666_v58 = vld [vmem:[%s9676_s8 + $0x5a4] ss:$20 sps:$4 sm:$0xff]  }
 0x181   : > { %4820 = vmatpush1.bf16.msra.mxu0 %v7590_v61  ;;  %v7663_v55 = vld [vmem:[%s9676_s8 + $0x84c] ss:$20 sps:$4 sm:$0xff]   ;;  %v7661_v57 = vld [vmem:[%s9676_s8 + $0x848] ss:$20 sps:$4 sm:$0xff]   ;;  %v7669_v59 = vld [vmem:[%s9676_s8 + $0x824] ss:$20 sps:$4 sm:$0xff]  }
 0x182   : > { %4861 = vmatpush1.bf16.msra.mxu1 %v7591_v62  ;;  %4821 = vmatprep.subr.bf16.mxu0 %v7592_v63  ;;  %v7664_v60 = vld [vmem:[%s9676_s8 + $0x5a0] ss:$20 sps:$4 sm:$0xff]   ;;  %v7672_v62 = vld [vmem:[%s9676_s8 + $0x57c] ss:$20 sps:$4 sm:$0xff]   ;;  %s10467_s15 = smov (!%p1460_p9, %s1459_s15), 399  ;;  %vm8400_vm1 = vmmov 0  }
 0x183   : > { %4862 = vmatprep.subr.bf16.mxu1 %v7594_v0  ;;  %v7667_v61 = vld [vmem:[%s9676_s8 + $0x820] ss:$20 sps:$4 sm:$0xff]   ;;  %v7675_v63 = vld [vmem:[%s9676_s8 + $0x7fc] ss:$20 sps:$4 sm:$0xff]   ;;  %v7670_v0 = vld [vmem:[%s9676_s8 + $0x578] ss:$20 sps:$4 sm:$0xff]  }
 0x184   : > { %v7709_v25 = vld [vmem:[%s9676_s8 + $0x988] ss:$20 sps:$4 sm:$0xff]   ;;  %s7369_s17 = sshll.u32 %s10467_s15, 3  ;;  %s10469_s18 = smov (!%p1466_p10, %s8442_s18), 4 }
 0x185   : > { %4822 = vmatpush1.bf16.msra.mxu0 %v7596_v1  ;;  %v7673_v1 = vld [vmem:[%s9676_s8 + $0x7f8] ss:$20 sps:$4 sm:$0xff]   ;;  %v7726_v38 = vld [vmem:[%s9676_s8 + $0x694] ss:$20 sps:$4 sm:$0xff]   ;;  %s10178_s23 = scalar_lea.vmem %s10459_s3, %s7369_s17  ;;  %s7370_s24 = sshll.u32 %s10469_s18, 2 }
 0x186   : > { %4863 = vmatpush1.bf16.msra.mxu1 %v7597_v2  ;;  %4823 = vmatprep.subr.bf16.mxu0 %v7598_v3  ;;  %v7678_v2 = vld [vmem:[%s9676_s8 + $0x554] ss:$20 sps:$4 sm:$0xff]   ;;  %s1470_s27 = scalar_lea.vmem %s10460_s4, %s7370_s24 }
 0x187   : > { %4864 = vmatprep.subr.bf16.mxu1 %v7600_v4  ;;  %v7681_v3 = vld [vmem:[%s9676_s8 + $0x7d4] ss:$20 sps:$4 sm:$0xff]   ;;  %v7676_v4 = vld [vmem:[%s9676_s8 + $0x550] ss:$20 sps:$4 sm:$0xff]  }
 0x189   : > { %4824 = vmatpush2.bf16.msra.mxu0 %v7602_v5  ;;  %v7679_v5 = vld [vmem:[%s9676_s8 + $0x7d0] ss:$20 sps:$4 sm:$0xff]  }
 0x18a   : > { %4865 = vmatpush2.bf16.msra.mxu1 %v7603_v6  ;;  %4825 = vmatprep.subr.bf16.mxu0 %v7604_v7  ;;  %v7684_v6 = vld [vmem:[%s9676_s8 + $0x52c] ss:$20 sps:$4 sm:$0xff]  }
 0x18b   : > { %4866 = vmatprep.subr.bf16.mxu1 %v7606_v8  ;;  %v7687_v7 = vld [vmem:[%s9676_s8 + $0x7ac] ss:$20 sps:$4 sm:$0xff]   ;;  %v7682_v8 = vld [vmem:[%s9676_s8 + $0x528] ss:$20 sps:$4 sm:$0xff]  }
 0x18d   : > { %4826 = vmatpush2.bf16.msra.mxu0 %v7608_v9  ;;  %v7685_v9 = vld [vmem:[%s9676_s8 + $0x7a8] ss:$20 sps:$4 sm:$0xff]  }
 0x18e   : > { %4867 = vmatpush2.bf16.msra.mxu1 %v7609_v10  ;;  %4827 = vmatprep.subr.bf16.mxu0 %v7610_v11  ;;  %v7690_v10 = vld [vmem:[%s9676_s8 + $0x504] ss:$20 sps:$4 sm:$0xff]  }
 0x18f   : > { %4868 = vmatprep.subr.bf16.mxu1 %v7612_v12  ;;  %v7693_v11 = vld [vmem:[%s9676_s8 + $0x784] ss:$20 sps:$4 sm:$0xff]   ;;  %v7688_v12 = vld [vmem:[%s9676_s8 + $0x500] ss:$20 sps:$4 sm:$0xff]  }
 0x191   : > { %4828 = vmatpush2.bf16.msra.mxu0 %v7614_v13  ;;  %v7691_v13 = vld [vmem:[%s9676_s8 + $0x780] ss:$20 sps:$4 sm:$0xff]  }
 0x192   : > { %4869 = vmatpush2.bf16.msra.mxu1 %v7615_v14  ;;  %4829 = vmatprep.subr.bf16.mxu0 %v7616_v15  ;;  %v7696_v14 = vld [vmem:[%s9676_s8 + $0x75c] ss:$20 sps:$4 sm:$0xff]  }
 0x193   : > { %4870 = vmatprep.subr.bf16.mxu1 %v7618_v16  ;;  %v7699_v15 = vld [vmem:[%s9676_s8 + $0x9dc] ss:$20 sps:$4 sm:$0xff]   ;;  %v7694_v16 = vld [vmem:[%s9676_s8 + $0x758] ss:$20 sps:$4 sm:$0xff]  }
 0x195   : > { %4830 = vmatpush2.bf16.msra.mxu0 %v7620_v17  ;;  %v7697_v17 = vld [vmem:[%s9676_s8 + $0x9d8] ss:$20 sps:$4 sm:$0xff]  }
 0x196   : > { %4871 = vmatpush2.bf16.msra.mxu1 %v7621_v18  ;;  %4831 = vmatprep.subr.bf16.mxu0 %v7622_v19  ;;  %v7702_v18 = vld [vmem:[%s9676_s8 + $0x734] ss:$20 sps:$4 sm:$0xff]  }
 0x197   : > { %4872 = vmatprep.subr.bf16.mxu1 %v7624_v20  ;;  %v7705_v19 = vld [vmem:[%s9676_s8 + $0x9b4] ss:$20 sps:$4 sm:$0xff]   ;;  %v7700_v20 = vld [vmem:[%s9676_s8 + $0x730] ss:$20 sps:$4 sm:$0xff]  }
 0x199   : > { %4832 = vmatpush2.bf16.msra.mxu0 %v7626_v21  ;;  %v7703_v21 = vld [vmem:[%s9676_s8 + $0x9b0] ss:$20 sps:$4 sm:$0xff]  }
 0x19a   : > { %4873 = vmatpush2.bf16.msra.mxu1 %v7627_v22  ;;  %4833 = vmatprep.subr.bf16.mxu0 %v7628_v23  ;;  %v7708_v22 = vld [vmem:[%s9676_s8 + $0x70c] ss:$20 sps:$4 sm:$0xff]  }
 0x19b   : > { %4874 = vmatprep.subr.bf16.mxu1 %v7630_v24  ;;  %v7711_v23 = vld [vmem:[%s9676_s8 + $0x98c] ss:$20 sps:$4 sm:$0xff]   ;;  %v7706_v24 = vld [vmem:[%s9676_s8 + $0x708] ss:$20 sps:$4 sm:$0xff]  }
 0x19d   : > { %4834 = vmatpush2.bf16.msra.mxu0 %v7632_v26  ;;  %v7714_v26 = vld [vmem:[%s9676_s8 + $0x6e4] ss:$20 sps:$4 sm:$0xff]  }
 0x19e   : > { %4875 = vmatpush2.bf16.msra.mxu1 %v7633_v29  ;;  %4835 = vmatprep.subr.bf16.mxu0 %v7634_v30  ;;  %v7717_v29 = vld [vmem:[%s9676_s8 + $0x964] ss:$20 sps:$4 sm:$0xff]   ;;  %v7712_v30 = vld [vmem:[%s9676_s8 + $0x6e0] ss:$20 sps:$4 sm:$0xff]  }
 0x19f   : > { %4876 = vmatprep.subr.bf16.mxu1 %v7636_v31  ;;  %v7715_v31 = vld [vmem:[%s9676_s8 + $0x960] ss:$20 sps:$4 sm:$0xff]  }
 0x1a1   : > { %4836 = vmatpush2.bf16.msra.mxu0 %v7638_v34  ;;  %v7720_v34 = vld [vmem:[%s9676_s8 + $0x6bc] ss:$20 sps:$4 sm:$0xff]  }
 0x1a2   : > { %4877 = vmatpush2.bf16.msra.mxu1 %v7639_v35  ;;  %4837 = vmatprep.subr.bf16.mxu0 %v7640_v28  ;;  %v7723_v35 = vld [vmem:[%s9676_s8 + $0x93c] ss:$20 sps:$4 sm:$0xff]   ;;  %v7718_v28 = vld [vmem:[%s9676_s8 + $0x6b8] ss:$20 sps:$4 sm:$0xff]  }
 0x1a3   : > { %4878 = vmatprep.subr.bf16.mxu1 %v7642_v37  ;;  %v7721_v37 = vld [vmem:[%s9676_s8 + $0x938] ss:$20 sps:$4 sm:$0xff]  }
 0x1a5   : > { %4838 = vmatpush2.bf16.msra.mxu0 %v7644_v39  ;;  %v7729_v39 = vld [vmem:[%s9676_s8 + $0x914] ss:$20 sps:$4 sm:$0xff]  }
 0x1a6   : > { %4879 = vmatpush2.bf16.msra.mxu1 %v7645_v40  ;;  %4889 = vmatprep.subr.bf16.mxu0 %v7648_v42  ;;  %v7724_v40 = vld [vmem:[%s9676_s8 + $0x690] ss:$20 sps:$4 sm:$0xff]  }
 0x1a7   : > { %4930 = vmatprep.subr.bf16.mxu1 %v7651_v43  ;;  %v7727_v42 = vld [vmem:[%s9676_s8 + $0x910] ss:$20 sps:$4 sm:$0xff]   ;;  %v7732_v43 = vld [vmem:[%s9676_s8 + $0x66c] ss:$20 sps:$4 sm:$0xff]  }
 0x1a8   : > { %4840 = vmatmul.mubr.bf16.vlgmr.msra.gmra.mxu0 %v9769_v41 }
 0x1a9   : > { %4881 = vmatmul.mubr.bf16.vlgmr.msra.gmra.mxu1 %v9780_v49  ;;  %4890 = vmatpush1.bf16.msra.mxu0 %v7646_v46  ;;  %v7735_v46 = vld [vmem:[%s9676_s8 + $0x8ec] ss:$20 sps:$4 sm:$0xff]  }
 0x1aa   : > { %4931 = vmatpush1.bf16.msra.mxu1 %v7649_v47  ;;  %4891 = vmatprep.subr.bf16.mxu0 %v7654_v36  ;;  %v7730_v47 = vld [vmem:[%s9676_s8 + $0x668] ss:$20 sps:$4 sm:$0xff]  }
 0x1ab   : > { %4932 = vmatprep.subr.bf16.mxu1 %v7657_v50  ;;  %4921 = vmatprep.mubr.bf16.mxu0 %v9774_v44  ;;  %v7733_v36 = vld [vmem:[%s9676_s8 + $0x8e8] ss:$20 sps:$4 sm:$0xff]   ;;  %v7738_v50 = vld [vmem:[%s9676_s8 + $0x644] ss:$20 sps:$4 sm:$0xff]  }
 0x1ac   : > { %4962 = vmatprep.mubr.bf16.mxu1 %v9786_v51 }
 0x1ad   : > { %4892 = vmatpush1.bf16.msra.mxu0 %v7652_v52  ;;  %v7741_v52 = vld [vmem:[%s9676_s8 + $0x8c4] ss:$20 sps:$4 sm:$0xff]  }
 0x1ae   : > { %4933 = vmatpush1.bf16.msra.mxu1 %v7655_v53  ;;  %4893 = vmatprep.subr.bf16.mxu0 %v7660_v54  ;;  %v7736_v53 = vld [vmem:[%s9676_s8 + $0x640] ss:$20 sps:$4 sm:$0xff]  }
 0x1af   : > { %4934 = vmatprep.subr.bf16.mxu1 %v7663_v55  ;;  %v7739_v54 = vld [vmem:[%s9676_s8 + $0x8c0] ss:$20 sps:$4 sm:$0xff]   ;;  %v9852_v55 = vrot.slane %v9757_v33, %v9681_v32  ;;  %v9865_v33 = vld [vmem:[%s10456_s0 + $0x8] sm:$0x1f] }
 0x1b1   : > { %4894 = vmatpush1.bf16.msra.mxu0 %v7658_v56  ;;  %v7745_v56 = vld [vmem:[%s9676_s8 + $0xb1c] ss:$20 sps:$4 sm:$0xff]  }
 0x1b2   : > { %4935 = vmatpush1.bf16.msra.mxu1 %v7661_v57  ;;  %4895 = vmatprep.subr.bf16.mxu0 %v7666_v58  ;;  %v7748_v57 = vld [vmem:[%s9676_s8 + $0xd9c] ss:$20 sps:$4 sm:$0xff]   ;;  %v7743_v58 = vld [vmem:[%s9676_s8 + $0xb18] ss:$20 sps:$4 sm:$0xff]  }
 0x1b3   : > { %4936 = vmatprep.subr.bf16.mxu1 %v7669_v59  ;;  %v7746_v59 = vld [vmem:[%s9676_s8 + $0xd98] ss:$20 sps:$4 sm:$0xff]  }
 0x1b5   : > { %4896 = vmatpush1.bf16.msra.mxu0 %v7664_v60  ;;  %v9860_v60 = vcombine.high %v9852_v55, %v9852_v55 }
 0x1b6   : > { %4937 = vmatpush1.bf16.msra.mxu1 %v7667_v61  ;;  %4897 = vmatprep.subr.bf16.mxu0 %v7672_v62  ;;  %v7751_v61 = vld [vmem:[%s9676_s8 + $0xaf4] ss:$20 sps:$4 sm:$0xff]  }
 0x1b7   : > { %4938 = vmatprep.subr.bf16.mxu1 %v7675_v63  ;;  %v7754_v62 = vld [vmem:[%s9676_s8 + $0xd74] ss:$20 sps:$4 sm:$0xff]   ;;  %v9871_v63 = vrot.slane %v9865_v33, %v9681_v32 }
 0x1b9   : > { %4898 = vmatpush1.bf16.msra.mxu0 %v7670_v0  ;;  %v7749_v0 = vld [vmem:[%s9676_s8 + $0xaf0] ss:$20 sps:$4 sm:$0xff]  }
 0x1ba   : > { %4939 = vmatpush1.bf16.msra.mxu1 %v7673_v1  ;;  %4899 = vmatprep.subr.bf16.mxu0 %v7678_v2  ;;  %v2167_v1 = vcombine.high %v9871_v63, %v9871_v63  ;;  %v7752_v2 = vld [vmem:[%s9676_s8 + $0xd70] ss:$20 sps:$4 sm:$0xff]  }
 0x1bb   : > { %4940 = vmatprep.subr.bf16.mxu1 %v7681_v3  ;;  %v7757_v3 = vld [vmem:[%s9676_s8 + $0xacc] ss:$20 sps:$4 sm:$0xff]  }
 0x1bd   : > { %4900 = vmatpush1.bf16.msra.mxu0 %v7676_v4  ;;  %v7760_v4 = vld [vmem:[%s9676_s8 + $0xd4c] ss:$20 sps:$4 sm:$0xff]  }
 0x1be   : > { %4941 = vmatpush1.bf16.msra.mxu1 %v7679_v5  ;;  %4901 = vmatprep.subr.bf16.mxu0 %v7684_v6  ;;  %v9882_v5 = vrot.slane %v2167_v1, %v9681_v32  ;;  %v7755_v6 = vld [vmem:[%s9676_s8 + $0xac8] ss:$20 sps:$4 sm:$0xff]   ;;  %v7829_v1 = vld [vmem:[%s9676_s8 + $0xb6c] ss:$20 sps:$4 sm:$0xff]  }
 0x1bf   : > { %4942 = vmatprep.subr.bf16.mxu1 %v7687_v7 }
 0x1c0   : > { %v9888_v7 = vcombine.high %v9882_v5, %v9882_v5 }
 0x1c1   : > { %4902 = vmatpush1.bf16.msra.mxu0 %v7682_v8  ;;  %v7758_v8 = vld [vmem:[%s9676_s8 + $0xd48] ss:$20 sps:$4 sm:$0xff]  }
 0x1c2   : > { %4943 = vmatpush1.bf16.msra.mxu1 %v7685_v9  ;;  %4903 = vmatprep.subr.bf16.mxu0 %v7690_v10  ;;  %v7763_v9 = vld [vmem:[%s9676_s8 + $0xaa4] ss:$20 sps:$4 sm:$0xff]  }
 0x1c3   : > { %4944 = vmatprep.subr.bf16.mxu1 %v7693_v11  ;;  %v7766_v10 = vld [vmem:[%s9676_s8 + $0xd24] ss:$20 sps:$4 sm:$0xff]   ;;  %v7761_v11 = vld [vmem:[%s9676_s8 + $0xaa0] ss:$20 sps:$4 sm:$0xff]  }
 0x1c5   : > { %4904 = vmatpush1.bf16.msra.mxu0 %v7688_v12  ;;  %v7764_v12 = vld [vmem:[%s9676_s8 + $0xd20] ss:$20 sps:$4 sm:$0xff]  }
 0x1c6   : > { %4945 = vmatpush1.bf16.msra.mxu1 %v7691_v13  ;;  %4905 = vmatprep.subr.bf16.mxu0 %v7696_v14  ;;  %v7769_v13 = vld [vmem:[%s9676_s8 + $0xa7c] ss:$20 sps:$4 sm:$0xff]  }
 0x1c7   : > { %4946 = vmatprep.subr.bf16.mxu1 %v7699_v15  ;;  %v7772_v14 = vld [vmem:[%s9676_s8 + $0xcfc] ss:$20 sps:$4 sm:$0xff]   ;;  %v7767_v15 = vld [vmem:[%s9676_s8 + $0xa78] ss:$20 sps:$4 sm:$0xff]  }
 0x1c9   : > { %4906 = vmatpush2.bf16.msra.mxu0 %v7694_v16  ;;  %v7770_v16 = vld [vmem:[%s9676_s8 + $0xcf8] ss:$20 sps:$4 sm:$0xff]  }
 0x1ca   : > { %4947 = vmatpush2.bf16.msra.mxu1 %v7697_v17  ;;  %4907 = vmatprep.subr.bf16.mxu0 %v7702_v18  ;;  %v7775_v17 = vld [vmem:[%s9676_s8 + $0xa54] ss:$20 sps:$4 sm:$0xff]  }
 0x1cb   : > { %4948 = vmatprep.subr.bf16.mxu1 %v7705_v19  ;;  %v7778_v18 = vld [vmem:[%s9676_s8 + $0xcd4] ss:$20 sps:$4 sm:$0xff]   ;;  %v7773_v19 = vld [vmem:[%s9676_s8 + $0xa50] ss:$20 sps:$4 sm:$0xff]  }
 0x1cd   : > { %4908 = vmatpush2.bf16.msra.mxu0 %v7700_v20  ;;  %v7776_v20 = vld [vmem:[%s9676_s8 + $0xcd0] ss:$20 sps:$4 sm:$0xff]  }
 0x1ce   : > { %4949 = vmatpush2.bf16.msra.mxu1 %v7703_v21  ;;  %4909 = vmatprep.subr.bf16.mxu0 %v7708_v22  ;;  %v7781_v21 = vld [vmem:[%s9676_s8 + $0xa2c] ss:$20 sps:$4 sm:$0xff]  }
 0x1cf   : > { %4950 = vmatprep.subr.bf16.mxu1 %v7711_v23  ;;  %v7784_v22 = vld [vmem:[%s9676_s8 + $0xcac] ss:$20 sps:$4 sm:$0xff]   ;;  %v7779_v23 = vld [vmem:[%s9676_s8 + $0xa28] ss:$20 sps:$4 sm:$0xff]  }
 0x1d1   : > { %4910 = vmatpush2.bf16.msra.mxu0 %v7706_v24  ;;  %v7782_v24 = vld [vmem:[%s9676_s8 + $0xca8] ss:$20 sps:$4 sm:$0xff]  }
 0x1d2   : > { %4951 = vmatpush2.bf16.msra.mxu1 %v7709_v25  ;;  %4911 = vmatprep.subr.bf16.mxu0 %v7714_v26  ;;  %v7787_v25 = vld [vmem:[%s9676_s8 + $0xa04] ss:$20 sps:$4 sm:$0xff]  }
 0x1d3   : > { %4952 = vmatprep.subr.bf16.mxu1 %v7717_v29  ;;  %v7790_v26 = vld [vmem:[%s9676_s8 + $0xc84] ss:$20 sps:$4 sm:$0xff]   ;;  %v7785_v29 = vld [vmem:[%s9676_s8 + $0xa00] ss:$20 sps:$4 sm:$0xff]  }
 0x1d5   : > { %4912 = vmatpush2.bf16.msra.mxu0 %v7712_v30  ;;  %v7788_v30 = vld [vmem:[%s9676_s8 + $0xc80] ss:$20 sps:$4 sm:$0xff]  }
 0x1d6   : > { %4953 = vmatpush2.bf16.msra.mxu1 %v7715_v31  ;;  %4913 = vmatprep.subr.bf16.mxu0 %v7720_v34  ;;  %v7793_v31 = vld [vmem:[%s9676_s8 + $0xc5c] ss:$20 sps:$4 sm:$0xff]  }
 0x1d7   : > { %4954 = vmatprep.subr.bf16.mxu1 %v7723_v35  ;;  %v7796_v34 = vld [vmem:[%s9676_s8 + $0xedc] ss:$20 sps:$4 sm:$0xff]   ;;  %v7791_v35 = vld [vmem:[%s9676_s8 + $0xc58] ss:$20 sps:$4 sm:$0xff]  }
 0x1d9   : > { %4914 = vmatpush2.bf16.msra.mxu0 %v7718_v28  ;;  %v7794_v28 = vld [vmem:[%s9676_s8 + $0xed8] ss:$20 sps:$4 sm:$0xff]  }
 0x1da   : > { %4955 = vmatpush2.bf16.msra.mxu1 %v7721_v37  ;;  %4915 = vmatprep.subr.bf16.mxu0 %v7726_v38  ;;  %v7799_v37 = vld [vmem:[%s9676_s8 + $0xc34] ss:$20 sps:$4 sm:$0xff]  }
 0x1db   : > { %4956 = vmatprep.subr.bf16.mxu1 %v7729_v39  ;;  %v7802_v38 = vld [vmem:[%s9676_s8 + $0xeb4] ss:$20 sps:$4 sm:$0xff]   ;;  %v7797_v39 = vld [vmem:[%s9676_s8 + $0xc30] ss:$20 sps:$4 sm:$0xff]  }
 0x1dd   : > { %4916 = vmatpush2.bf16.msra.mxu0 %v7724_v40  ;;  %v7800_v40 = vld [vmem:[%s9676_s8 + $0xeb0] ss:$20 sps:$4 sm:$0xff]  }
 0x1de   : > { %4957 = vmatpush2.bf16.msra.mxu1 %v7727_v42  ;;  %4917 = vmatprep.subr.bf16.mxu0 %v7732_v43  ;;  %v7805_v42 = vld [vmem:[%s9676_s8 + $0xc0c] ss:$20 sps:$4 sm:$0xff]  }
 0x1df   : > { %4958 = vmatprep.subr.bf16.mxu1 %v7735_v46  ;;  %v7808_v43 = vld [vmem:[%s9676_s8 + $0xe8c] ss:$20 sps:$4 sm:$0xff]   ;;  %v7803_v46 = vld [vmem:[%s9676_s8 + $0xc08] ss:$20 sps:$4 sm:$0xff]  }
 0x1e1   : > { %4918 = vmatpush2.bf16.msra.mxu0 %v7730_v47  ;;  %v7806_v47 = vld [vmem:[%s9676_s8 + $0xe88] ss:$20 sps:$4 sm:$0xff]  }
 0x1e2   : > { %4959 = vmatpush2.bf16.msra.mxu1 %v7733_v36  ;;  %4919 = vmatprep.subr.bf16.mxu0 %v7738_v50  ;;  %v7811_v36 = vld [vmem:[%s9676_s8 + $0xbe4] ss:$20 sps:$4 sm:$0xff]  }
 0x1e3   : > { %4960 = vmatprep.subr.bf16.mxu1 %v7741_v52  ;;  %v7814_v50 = vld [vmem:[%s9676_s8 + $0xe64] ss:$20 sps:$4 sm:$0xff]   ;;  %v7809_v52 = vld [vmem:[%s9676_s8 + $0xbe0] ss:$20 sps:$4 sm:$0xff]  }
 0x1e5   : > { %4920 = vmatpush2.bf16.msra.mxu0 %v7736_v53  ;;  %v7812_v53 = vld [vmem:[%s9676_s8 + $0xe60] ss:$20 sps:$4 sm:$0xff]  }
 0x1e6   : > { %4961 = vmatpush2.bf16.msra.mxu1 %v7739_v54  ;;  %4971 = vmatprep.subr.bf16.mxu0 %v7745_v56  ;;  %v7817_v54 = vld [vmem:[%s9676_s8 + $0xbbc] ss:$20 sps:$4 sm:$0xff]  }
 0x1e7   : > { %5012 = vmatprep.subr.bf16.mxu1 %v7748_v57  ;;  %v7820_v56 = vld [vmem:[%s9676_s8 + $0xe3c] ss:$20 sps:$4 sm:$0xff]   ;;  %v7815_v57 = vld [vmem:[%s9676_s8 + $0xbb8] ss:$20 sps:$4 sm:$0xff]  }
 0x1e8   : > { %4922 = vmatmul.mubr.bf16.vlgmr.msra.gmra.mxu0 %v9852_v55 }
 0x1e9   : > { %4963 = vmatmul.mubr.bf16.vlgmr.msra.gmra.mxu1 %v9860_v60  ;;  %4972 = vmatpush1.bf16.msra.mxu0 %v7743_v58  ;;  %v7818_v58 = vld [vmem:[%s9676_s8 + $0xe38] ss:$20 sps:$4 sm:$0xff]  }
 0x1ea   : > { %5013 = vmatpush1.bf16.msra.mxu1 %v7746_v59  ;;  %4973 = vmatprep.subr.bf16.mxu0 %v7751_v61  ;;  %v7823_v59 = vld [vmem:[%s9676_s8 + $0xb94] ss:$20 sps:$4 sm:$0xff]  }
 0x1eb   : > { %5014 = vmatprep.subr.bf16.mxu1 %v7754_v62  ;;  %5003 = vmatprep.mubr.bf16.mxu0 %v9882_v5  ;;  %v7826_v61 = vld [vmem:[%s9676_s8 + $0xe14] ss:$20 sps:$4 sm:$0xff]   ;;  %v7821_v62 = vld [vmem:[%s9676_s8 + $0xb90] ss:$20 sps:$4 sm:$0xff]  }
 0x1ec   : > { %5044 = vmatprep.mubr.bf16.mxu1 %v9888_v7 }
 0x1ed   : > { %4974 = vmatpush1.bf16.msra.mxu0 %v7749_v0  ;;  %v7824_v0 = vld [vmem:[%s9676_s8 + $0xe10] ss:$20 sps:$4 sm:$0xff]  }
 0x1ee   : > { %5015 = vmatpush1.bf16.msra.mxu1 %v7752_v2  ;;  %4975 = vmatprep.subr.bf16.mxu0 %v7757_v3  ;;  %v7832_v2 = vld [vmem:[%s9676_s8 + $0xdec] ss:$20 sps:$4 sm:$0xff]   ;;  %v7827_v3 = vld [vmem:[%s9676_s8 + $0xb68] ss:$20 sps:$4 sm:$0xff]  }
 0x1ef   : > { %5016 = vmatprep.subr.bf16.mxu1 %v7760_v4  ;;  %v7830_v4 = vld [vmem:[%s9676_s8 + $0xde8] ss:$20 sps:$4 sm:$0xff]  }
 0x1f1   : > { %4976 = vmatpush1.bf16.msra.mxu0 %v7755_v6  ;;  %v7835_v6 = vld [vmem:[%s9676_s8 + $0xb44] ss:$20 sps:$4 sm:$0xff]  }
 0x1f2   : > { %5017 = vmatpush1.bf16.msra.mxu1 %v7758_v8  ;;  %4977 = vmatprep.subr.bf16.mxu0 %v7763_v9  ;;  %v7838_v8 = vld [vmem:[%s9676_s8 + $0xdc4] ss:$20 sps:$4 sm:$0xff]   ;;  %v9944_v9 = vrot.slane %v9871_v63, %v9681_v32 }
 0x1f3   : > { %5018 = vmatprep.subr.bf16.mxu1 %v7766_v10  ;;  %v7833_v10 = vld [vmem:[%s9676_s8 + $0xb40] ss:$20 sps:$4 sm:$0xff]   ;;  %v7840_v63 = vld [vmem:[%s9676_s8 + $0xf78] ss:$20 sps:$4 sm:$0xff]  }
 0x1f5   : > { %4978 = vmatpush1.bf16.msra.mxu0 %v7761_v11  ;;  %v7836_v11 = vld [vmem:[%s9676_s8 + $0xdc0] ss:$20 sps:$4 sm:$0xff]  }
 0x1f6   : > { %5019 = vmatpush1.bf16.msra.mxu1 %v7764_v12  ;;  %4979 = vmatprep.subr.bf16.mxu0 %v7769_v13  ;;  %v7842_v12 = vld [vmem:[%s9676_s8 + $0xf7c] ss:$20 sps:$4 sm:$0xff]   ;;  %v7845_v13 = vld [vmem:[%s9676_s8 + $0x124] ss:$20 sps:$4 sm:$0xff]  }
 0x1f7   : > { %5020 = vmatprep.subr.bf16.mxu1 %v7772_v14  ;;  %v9952_v14 = vcombine.high %v9944_v9, %v9944_v9 }
 0x1f9   : > { %4980 = vmatpush1.bf16.msra.mxu0 %v7767_v15  ;;  %v7843_v15 = vld [vmem:[%s9676_s8 + $0x120] ss:$20 sps:$4 sm:$0xff]  }
 0x1fa   : > { %5021 = vmatpush1.bf16.msra.mxu1 %v7770_v16  ;;  %4981 = vmatprep.subr.bf16.mxu0 %v7775_v17  ;;  %v7848_v16 = vld [vmem:[%s9676_s8 + $0xf54] ss:$20 sps:$4 sm:$0xff]   ;;  %v7851_v17 = vld [vmem:[%s9676_s8 + $0xfc] ss:$20 sps:$4 sm:$0xff]  }
 0x1fb   : > { %5022 = vmatprep.subr.bf16.mxu1 %v7778_v18  ;;  %v7846_v18 = vld [vmem:[%s9676_s8 + $0xf50] ss:$20 sps:$4 sm:$0xff]  }
 0x1fd   : > { %4982 = vmatpush1.bf16.msra.mxu0 %v7773_v19  ;;  %v7849_v19 = vld [vmem:[%s9676_s8 + $0xf8] ss:$20 sps:$4 sm:$0xff]  }
 0x1fe   : > { %5023 = vmatpush1.bf16.msra.mxu1 %v7776_v20  ;;  %4983 = vmatprep.subr.bf16.mxu0 %v7781_v21  ;;  %v7854_v20 = vld [vmem:[%s9676_s8 + $0xf2c] ss:$20 sps:$4 sm:$0xff]   ;;  %v7857_v21 = vld [vmem:[%s9676_s8 + $0xd4] ss:$20 sps:$4 sm:$0xff]  }
 0x1ff   : > { %5024 = vmatprep.subr.bf16.mxu1 %v7784_v22  ;;  %v8398_v22 = vmov 0  }
 0x201   : > { %4984 = vmatpush1.bf16.msra.mxu0 %v7779_v23  ;;  %v2152_v23 = vcombine.high %v9865_v33, %v9865_v33  ;;  %v7861_v33 = vld [vmem:[%s9676_s8 + $0xa8] ss:$20 sps:$4 sm:$0xff]  }
 0x202   : > { %5025 = vmatpush1.bf16.msra.mxu1 %v7782_v24  ;;  %4985 = vmatprep.subr.bf16.mxu0 %v7787_v25  ;;  %v7852_v24 = vld [vmem:[%s9676_s8 + $0xf28] ss:$20 sps:$4 sm:$0xff]   ;;  %v7855_v25 = vld [vmem:[%s9676_s8 + $0xd0] ss:$20 sps:$4 sm:$0xff]  }
 0x203   : > { %5026 = vmatprep.subr.bf16.mxu1 %v7790_v26  ;;  %v7860_v26 = vld [vmem:[%s9676_s8 + $0xf04] ss:$20 sps:$4 sm:$0xff]  }
 0x205   : > { %4986 = vmatpush1.bf16.msra.mxu0 %v7785_v29  ;;  %v7863_v29 = vld [vmem:[%s9676_s8 + $0xac] ss:$20 sps:$4 sm:$0xff]  }
 0x206   : > { %5027 = vmatpush1.bf16.msra.mxu1 %v7788_v30  ;;  %4987 = vmatprep.subr.bf16.mxu0 %v7793_v31  ;;  %v2166_v30 = vrot.slane %v2152_v23, %v9681_v32  ;;  %v7858_v31 = vld [vmem:[%s9676_s8 + $0xf00] ss:$20 sps:$4 sm:$0xff]  }
 0x207   : > { %5028 = vmatprep.subr.bf16.mxu1 %v7796_v34  ;;  %v7866_v34 = vld [vmem:[%s9676_s8 + $0x84] ss:$20 sps:$4 sm:$0xff]   ;;  %v7929_v23 = vld [vmem:[%s9676_s8 + $0x494] ss:$20 sps:$4 sm:$0xff]  }
 0x209   : > { %4988 = vmatpush2.bf16.msra.mxu0 %v7791_v35  ;;  %v7869_v35 = vld [vmem:[%s9676_s8 + $0x3a4] ss:$20 sps:$4 sm:$0xff]  }
 0x20a   : > { %5029 = vmatpush2.bf16.msra.mxu1 %v7794_v28  ;;  %4989 = vmatprep.subr.bf16.mxu0 %v7799_v37  ;;  %v9978_v28 = vrot.slane %v2166_v30, %v9681_v32  ;;  %v7864_v37 = vld [vmem:[%s9676_s8 + $0x80] ss:$20 sps:$4 sm:$0xff]   ;;  %v7870_v32 = vld [vmem:[%s9676_s8 + $0x58] ss:$20 sps:$4 sm:$0xff]   ;;  %v7930_v30 = vld [vmem:[%s9676_s8 + $0x148] ss:$20 sps:$4 sm:$0xff]  }
 0x20b   : > { %5030 = vmatprep.subr.bf16.mxu1 %v7802_v38  ;;  %v7867_v38 = vld [vmem:[%s9676_s8 + $0x3a0] ss:$20 sps:$4 sm:$0xff]  }
 0x20d   : > { %4990 = vmatpush2.bf16.msra.mxu0 %v7797_v39  ;;  %v7872_v39 = vld [vmem:[%s9676_s8 + $0x5c] ss:$20 sps:$4 sm:$0xff]  }
 0x20e   : > { %5031 = vmatpush2.bf16.msra.mxu1 %v7800_v40  ;;  %4991 = vmatprep.subr.bf16.mxu0 %v7805_v42  ;;  %v7875_v40 = vld [vmem:[%s9676_s8 + $0x37c] ss:$20 sps:$4 sm:$0xff]   ;;  %v7873_v42 = vld [vmem:[%s9676_s8 + $0x378] ss:$20 sps:$4 sm:$0xff]  }
 0x20f   : > { %5032 = vmatprep.subr.bf16.mxu1 %v7808_v43  ;;  %v7878_v43 = vld [vmem:[%s9676_s8 + $0x34] ss:$20 sps:$4 sm:$0xff]  }
 0x211   : > { %4992 = vmatpush2.bf16.msra.mxu0 %v7803_v46  ;;  %v7881_v46 = vld [vmem:[%s9676_s8 + $0x354] ss:$20 sps:$4 sm:$0xff]  }
 0x212   : > { %5033 = vmatpush2.bf16.msra.mxu1 %v7806_v47  ;;  %4993 = vmatprep.subr.bf16.mxu0 %v7811_v36  ;;  %v7876_v47 = vld [vmem:[%s9676_s8 + $0x30] ss:$20 sps:$4 sm:$0xff]  }
 0x213   : > { %5034 = vmatprep.subr.bf16.mxu1 %v7814_v50  ;;  %v7879_v36 = vld [vmem:[%s9676_s8 + $0x350] ss:$20 sps:$4 sm:$0xff]   ;;  %v7884_v50 = vld [vmem:[%s9676_s8 + $0xc] ss:$20 sps:$4 sm:$0xff]  }
 0x215   : > { %4994 = vmatpush2.bf16.msra.mxu0 %v7809_v52  ;;  %v7887_v52 = vld [vmem:[%s9676_s8 + $0x32c] ss:$20 sps:$4 sm:$0xff]  }
 0x216   : > { %5035 = vmatpush2.bf16.msra.mxu1 %v7812_v53  ;;  %4995 = vmatprep.subr.bf16.mxu0 %v7817_v54  ;;  %v7882_v53 = vld [vmem:[%s9676_s8 + $0x8] ss:$20 sps:$4 sm:$0xff]  }
 0x217   : > { %5036 = vmatprep.subr.bf16.mxu1 %v7820_v56  ;;  %v7885_v54 = vld [vmem:[%s9676_s8 + $0x328] ss:$20 sps:$4 sm:$0xff]   ;;  %v7890_v56 = vld [vmem:[%s9676_s8 + $0x264] ss:$20 sps:$4 sm:$0xff]  }
 0x219   : > { %4996 = vmatpush2.bf16.msra.mxu0 %v7815_v57  ;;  %v7893_v57 = vld [vmem:[%s9676_s8 + $0x304] ss:$20 sps:$4 sm:$0xff]  }
 0x21a   : > { %5037 = vmatpush2.bf16.msra.mxu1 %v7818_v58  ;;  %4997 = vmatprep.subr.bf16.mxu0 %v7823_v59  ;;  %v7888_v58 = vld [vmem:[%s9676_s8 + $0x260] ss:$20 sps:$4 sm:$0xff]  }
 0x21b   : > { %5038 = vmatprep.subr.bf16.mxu1 %v7826_v61  ;;  %v7891_v59 = vld [vmem:[%s9676_s8 + $0x300] ss:$20 sps:$4 sm:$0xff]   ;;  %v7896_v61 = vld [vmem:[%s9676_s8 + $0x23c] ss:$20 sps:$4 sm:$0xff]  }
 0x21d   : > { %4998 = vmatpush2.bf16.msra.mxu0 %v7821_v62  ;;  %v7899_v62 = vld [vmem:[%s9676_s8 + $0x2dc] ss:$20 sps:$4 sm:$0xff]  }
 0x21e   : > { %5039 = vmatpush2.bf16.msra.mxu1 %v7824_v0  ;;  %4999 = vmatprep.subr.bf16.mxu0 %v7829_v1  ;;  %v7894_v0 = vld [vmem:[%s9676_s8 + $0x238] ss:$20 sps:$4 sm:$0xff]  }
 0x21f   : > { %5040 = vmatprep.subr.bf16.mxu1 %v7832_v2  ;;  %v7897_v1 = vld [vmem:[%s9676_s8 + $0x2d8] ss:$20 sps:$4 sm:$0xff]   ;;  %v7902_v2 = vld [vmem:[%s9676_s8 + $0x214] ss:$20 sps:$4 sm:$0xff]  }
 0x221   : > { %5000 = vmatpush2.bf16.msra.mxu0 %v7827_v3  ;;  %v7905_v3 = vld [vmem:[%s9676_s8 + $0x2b4] ss:$20 sps:$4 sm:$0xff]  }
 0x222   : > { %5041 = vmatpush2.bf16.msra.mxu1 %v7830_v4  ;;  %5001 = vmatprep.subr.bf16.mxu0 %v7835_v6  ;;  %v7900_v4 = vld [vmem:[%s9676_s8 + $0x210] ss:$20 sps:$4 sm:$0xff]  }
 0x223   : > { %5042 = vmatprep.subr.bf16.mxu1 %v7838_v8  ;;  %v7903_v6 = vld [vmem:[%s9676_s8 + $0x2b0] ss:$20 sps:$4 sm:$0xff]   ;;  %v7908_v8 = vld [vmem:[%s9676_s8 + $0x1ec] ss:$20 sps:$4 sm:$0xff]  }
 0x225   : > { %5002 = vmatpush2.bf16.msra.mxu0 %v7833_v10  ;;  %v7911_v10 = vld [vmem:[%s9676_s8 + $0x28c] ss:$20 sps:$4 sm:$0xff]  }
 0x226   : > { %5043 = vmatpush2.bf16.msra.mxu1 %v7836_v11  ;;  %5061 = vmatprep.subr.bf16.mxu0 %v7842_v12  ;;  %v7906_v11 = vld [vmem:[%s9676_s8 + $0x1e8] ss:$20 sps:$4 sm:$0xff]  }
 0x227   : > { %5094 = vmatprep.subr.bf16.mxu1 %v7845_v13  ;;  %v7909_v12 = vld [vmem:[%s9676_s8 + $0x288] ss:$20 sps:$4 sm:$0xff]   ;;  %v7914_v13 = vld [vmem:[%s9676_s8 + $0x1c4] ss:$20 sps:$4 sm:$0xff]  }
 0x228   : > { %5004 = vmatmul.mubr.bf16.vlgmr.msra.gmra.mxu0 %v9944_v9 }
 0x229   : > { %5045 = vmatmul.mubr.bf16.vlgmr.msra.gmra.mxu1 %v9952_v14  ;;  %5062 = vmatpush1.bf16.msra.mxu0 %v7840_v63  ;;  %v7917_v63 = vld [vmem:[%s9676_s8 + $0x4e4] ss:$20 sps:$4 sm:$0xff]  }
 0x22a   : > { %5095 = vmatpush1.bf16.msra.mxu1 %v7843_v15  ;;  %5063 = vmatprep.subr.bf16.mxu0 %v7848_v16  ;;  %v7912_v15 = vld [vmem:[%s9676_s8 + $0x1c0] ss:$20 sps:$4 sm:$0xff]  }
 0x22b   : > { %5096 = vmatprep.subr.bf16.mxu1 %v7851_v17  ;;  %5085 = vmatprep.mubr.bf16.mxu0 %v8398_v22  ;;  %v7915_v16 = vld [vmem:[%s9676_s8 + $0x4e0] ss:$20 sps:$4 sm:$0xff]   ;;  %v7920_v17 = vld [vmem:[%s9676_s8 + $0x19c] ss:$20 sps:$4 sm:$0xff]  }
 0x22c   : > { %5126 = vmatprep.mubr.bf16.mxu1 %v9700_v45 }
 0x22d   : > { %5064 = vmatpush1.bf16.msra.mxu0 %v7846_v18  ;;  %v7923_v18 = vld [vmem:[%s9676_s8 + $0x4bc] ss:$20 sps:$4 sm:$0xff]  }
 0x22e   : > { %5097 = vmatpush1.bf16.msra.mxu1 %v7849_v19  ;;  %5065 = vmatprep.subr.bf16.mxu0 %v7854_v20  ;;  %v7918_v19 = vld [vmem:[%s9676_s8 + $0x198] ss:$20 sps:$4 sm:$0xff]  }
 0x22f   : > { %5098 = vmatprep.subr.bf16.mxu1 %v7857_v21  ;;  %v7921_v20 = vld [vmem:[%s9676_s8 + $0x4b8] ss:$20 sps:$4 sm:$0xff]   ;;  %v7926_v21 = vld [vmem:[%s9676_s8 + $0x174] ss:$20 sps:$4 sm:$0xff]  }
 0x231   : > { %5066 = vmatpush1.bf16.msra.mxu0 %v7852_v24  ;;  %v7924_v24 = vld [vmem:[%s9676_s8 + $0x170] ss:$20 sps:$4 sm:$0xff]  }
 0x232   : > { %5099 = vmatpush1.bf16.msra.mxu1 %v7855_v25  ;;  %5067 = vmatprep.subr.bf16.mxu0 %v7860_v26  ;;  %v7927_v25 = vld [vmem:[%s9676_s8 + $0x490] ss:$20 sps:$4 sm:$0xff]   ;;  %v7932_v26 = vld [vmem:[%s9676_s8 + $0x14c] ss:$20 sps:$4 sm:$0xff]  }
 0x233   : > { %5100 = vmatprep.subr.bf16.mxu1 %v7863_v29  ;;  %v7935_v29 = vld [vmem:[%s9676_s8 + $0x46c] ss:$20 sps:$4 sm:$0xff]  }
 0x235   : > { %5068 = vmatpush1.bf16.msra.mxu0 %v7858_v31  ;;  %v7933_v31 = vld [vmem:[%s9676_s8 + $0x468] ss:$20 sps:$4 sm:$0xff]  }
 0x236   : > { %5101 = vmatpush1.bf16.msra.mxu1 %v7861_v33  ;;  %5135 = vmatprep.subr.bf16.mxu0 %v7869_v35  ;;  %v2074_v33 = vld [vmem:[%s10031_s14] sm:$0x1f] }
 0x237   : > { %5102 = vmatprep.subr.bf16.mxu1 %v7866_v34  ;;  %v2078_v34 = vsub.s32 0, %v9669_v27  ;;  %v7938_v35 = vld [vmem:[%s9676_s8 + $0x444] ss:$20 sps:$4 sm:$0xff]  }
 0x238   : > { %7282 = vmatmul.mubr.msk.bf16.vlgmr.msra.gmra.mxu0 %vm4803_vm0, %v9978_v28 }
 0x239   : > { %5136 = vmatpush1.bf16.msra.mxu0 %v7867_v38  ;;  %5167 = vmatprep.mubr.bf16.mxu0 %v9706_v48  ;;  %v2082_v38 = vsub.s32 1, %v9669_v27 }
 0x23a   : > { %5103 = vmatpush1.bf16.msra.mxu1 %v7864_v37  ;;  %5137 = vmatprep.subr.bf16.mxu0 %v7875_v40  ;;  %v7941_v37 = vld [vmem:[%s9676_s8 + $0x624] ss:$20 sps:$4 sm:$0xff]   ;;  %v2079_v40 = vrot.slane %v2074_v33, %v2078_v34 }
 0x23b   : > { %5104 = vmatprep.subr.bf16.mxu1 %v7872_v39  ;;  %v7936_v39 = vld [vmem:[%s9676_s8 + $0x440] ss:$20 sps:$4 sm:$0xff]   ;;  %v7989_v34 = vld [vmem:[%s9676_s8 + $0x804] ss:$20 sps:$4 sm:$0xff]  }
 0x23d   : > { %5138 = vmatpush1.bf16.msra.mxu0 %v7873_v42  ;;  %v7944_v42 = vld [vmem:[%s9676_s8 + $0x41c] ss:$20 sps:$4 sm:$0xff]  }
 0x23e   : > { %5105 = vmatpush1.bf16.msra.mxu1 %v7870_v32  ;;  %5139 = vmatprep.subr.bf16.mxu0 %v7881_v46  ;;  %v7939_v32 = vld [vmem:[%s9676_s8 + $0x620] ss:$20 sps:$4 sm:$0xff]   ;;  %v2083_v46 = vrot.slane %v2074_v33, %v2082_v38  ;;  %v7986_v33 = vld [vmem:[%s9676_s8 + $0x764] ss:$20 sps:$4 sm:$0xff]   ;;  %v7992_v38 = vld [vmem:[%s9676_s8 + $0x73c] ss:$20 sps:$4 sm:$0xff]  }
 0x23f   : > { %5106 = vmatprep.subr.bf16.mxu1 %v7878_v43  ;;  %v7947_v43 = vld [vmem:[%s9676_s8 + $0x5fc] ss:$20 sps:$4 sm:$0xff]  }
 0x241   : > { %5140 = vmatpush1.bf16.msra.mxu0 %v7879_v36 }
 0x242   : > { %5107 = vmatpush1.bf16.msra.mxu1 %v7876_v47  ;;  %5141 = vmatprep.subr.bf16.mxu0 %v7887_v52  ;;  %v7942_v47 = vld [vmem:[%s9676_s8 + $0x418] ss:$20 sps:$4 sm:$0xff]  }
 0x243   : > { %5108 = vmatprep.subr.bf16.mxu1 %v7884_v50  ;;  %v7945_v52 = vld [vmem:[%s9676_s8 + $0x5f8] ss:$20 sps:$4 sm:$0xff]  }
 0x245   : > { %5142 = vmatpush1.bf16.msra.mxu0 %v7885_v54 }
 0x246   : > { %5109 = vmatpush1.bf16.msra.mxu1 %v7882_v53  ;;  %5143 = vmatprep.subr.bf16.mxu0 %v7893_v57  ;;  %v7950_v57 = vld [vmem:[%s9676_s8 + $0x3f4] ss:$20 sps:$4 sm:$0xff]  }
 0x247   : > { %5110 = vmatprep.subr.bf16.mxu1 %v7890_v56 }
 0x249   : > { %5144 = vmatpush1.bf16.msra.mxu0 %v7891_v59 }
 0x24a   : > { %5111 = vmatpush2.bf16.msra.mxu1 %v7888_v58  ;;  %5145 = vmatprep.subr.bf16.mxu0 %v7899_v62  ;;  %v7953_v58 = vld [vmem:[%s9676_s8 + $0x5d4] ss:$20 sps:$4 sm:$0xff]   ;;  %v7948_v62 = vld [vmem:[%s9676_s8 + $0x3f0] ss:$20 sps:$4 sm:$0xff]  }
 0x24b   : > { %5112 = vmatprep.subr.bf16.mxu1 %v7896_v61 }
 0x24d   : > { %5146 = vmatpush1.bf16.msra.mxu0 %v7897_v1 }
 0x24e   : > { %5113 = vmatpush2.bf16.msra.mxu1 %v7894_v0  ;;  %5147 = vmatprep.subr.bf16.mxu0 %v7905_v3  ;;  %v7951_v0 = vld [vmem:[%s9676_s8 + $0x5d0] ss:$20 sps:$4 sm:$0xff]  }
 0x24f   : > { %5114 = vmatprep.subr.bf16.mxu1 %v7902_v2 }
 0x251   : > { %5148 = vmatpush1.bf16.msra.mxu0 %v7903_v6 }
 0x252   : > { %5115 = vmatpush2.bf16.msra.mxu1 %v7900_v4  ;;  %5149 = vmatprep.subr.bf16.mxu0 %v7911_v10  ;;  %v7959_v10 = vld [vmem:[%s9676_s8 + $0x5ac] ss:$20 sps:$4 sm:$0xff]  }
 0x253   : > { %5116 = vmatprep.subr.bf16.mxu1 %v7908_v8  ;;  %v7956_v8 = vld [vmem:[%s9676_s8 + $0x3cc] ss:$20 sps:$4 sm:$0xff]  }
 0x255   : > { %5150 = vmatpush1.bf16.msra.mxu0 %v7909_v12  ;;  %v7957_v12 = vld [vmem:[%s9676_s8 + $0x5a8] ss:$20 sps:$4 sm:$0xff]  }
 0x256   : > { %5117 = vmatpush2.bf16.msra.mxu1 %v7906_v11  ;;  %5151 = vmatprep.subr.bf16.mxu0 %v7917_v63  ;;  %v7954_v11 = vld [vmem:[%s9676_s8 + $0x3c8] ss:$20 sps:$4 sm:$0xff]   ;;  %v7965_v63 = vld [vmem:[%s9676_s8 + $0x8a4] ss:$20 sps:$4 sm:$0xff]  }
 0x257   : > { %5118 = vmatprep.subr.bf16.mxu1 %v7914_v13  ;;  %v7962_v13 = vld [vmem:[%s9676_s8 + $0x584] ss:$20 sps:$4 sm:$0xff]  }
 0x259   : > { %5152 = vmatpush2.bf16.msra.mxu0 %v7915_v16  ;;  %v7963_v16 = vld [vmem:[%s9676_s8 + $0x8a0] ss:$20 sps:$4 sm:$0xff]  }
 0x25a   : > { %5119 = vmatpush2.bf16.msra.mxu1 %v7912_v15  ;;  %5153 = vmatprep.subr.bf16.mxu0 %v7923_v18  ;;  %v7960_v15 = vld [vmem:[%s9676_s8 + $0x580] ss:$20 sps:$4 sm:$0xff]   ;;  %v7971_v18 = vld [vmem:[%s9676_s8 + $0x87c] ss:$20 sps:$4 sm:$0xff]  }
 0x25b   : > { %5120 = vmatprep.subr.bf16.mxu1 %v7920_v17  ;;  %v7968_v17 = vld [vmem:[%s9676_s8 + $0x55c] ss:$20 sps:$4 sm:$0xff]  }
 0x25d   : > { %5154 = vmatpush2.bf16.msra.mxu0 %v7921_v20  ;;  %v7969_v20 = vld [vmem:[%s9676_s8 + $0x878] ss:$20 sps:$4 sm:$0xff]  }
 0x25e   : > { %5121 = vmatpush2.bf16.msra.mxu1 %v7918_v19  ;;  %5155 = vmatprep.subr.bf16.mxu0 %v7929_v23  ;;  %v7966_v19 = vld [vmem:[%s9676_s8 + $0x558] ss:$20 sps:$4 sm:$0xff]   ;;  %v7977_v23 = vld [vmem:[%s9676_s8 + $0x854] ss:$20 sps:$4 sm:$0xff]  }
 0x25f   : > { %5122 = vmatprep.subr.bf16.mxu1 %v7926_v21  ;;  %v7974_v21 = vld [vmem:[%s9676_s8 + $0x534] ss:$20 sps:$4 sm:$0xff]  }
 0x261   : > { %5156 = vmatpush2.bf16.msra.mxu0 %v7927_v25  ;;  %v7975_v25 = vld [vmem:[%s9676_s8 + $0x850] ss:$20 sps:$4 sm:$0xff]  }
 0x262   : > { %5123 = vmatpush2.bf16.msra.mxu1 %v7924_v24  ;;  %5157 = vmatprep.subr.bf16.mxu0 %v7935_v29  ;;  %v7972_v24 = vld [vmem:[%s9676_s8 + $0x530] ss:$20 sps:$4 sm:$0xff]   ;;  %v7983_v29 = vld [vmem:[%s9676_s8 + $0x82c] ss:$20 sps:$4 sm:$0xff]  }
 0x263   : > { %5124 = vmatprep.subr.bf16.mxu1 %v7932_v26  ;;  %v7980_v26 = vld [vmem:[%s9676_s8 + $0x50c] ss:$20 sps:$4 sm:$0xff]  }
 0x265   : > { %5158 = vmatpush2.bf16.msra.mxu0 %v7933_v31  ;;  %v7981_v31 = vld [vmem:[%s9676_s8 + $0x828] ss:$20 sps:$4 sm:$0xff]  }
 0x266   : > { %5125 = vmatpush2.bf16.msra.mxu1 %v7930_v30  ;;  %5159 = vmatprep.subr.bf16.mxu0 %v7938_v35  ;;  %v7978_v30 = vld [vmem:[%s9676_s8 + $0x508] ss:$20 sps:$4 sm:$0xff]   ;;  %v7984_v35 = vld [vmem:[%s9676_s8 + $0x760] ss:$20 sps:$4 sm:$0xff]  }
 0x267   : > { %5176 = vmatprep.subr.bf16.mxu1 %v7941_v37  ;;  %v7987_v37 = vld [vmem:[%s9676_s8 + $0x800] ss:$20 sps:$4 sm:$0xff]  }
 0x268   : > { %v4841_v36 = vpop.f32.mrf.mxu0 }
 0x269   : > { %5127 = vmatmul.mubr.bf16.vlgmr.msra.gmra.mxu1 %v9769_v41  ;;  %v4882_v50 = vpop.f32.mrf.mxu1  ;;  %v4842_v53 = vadd.f32 %v4841_v36, %v2079_v40  ;;  %5160 = vmatpush2.bf16.msra.mxu0 %v7936_v39  ;;  %v7995_v39 = vld [vmem:[%s9676_s8 + $0x7dc] ss:$20 sps:$4 sm:$0xff]   ;;  %v7990_v40 = vld [vmem:[%s9676_s8 + $0x738] ss:$20 sps:$4 sm:$0xff]  }
 0x26a   : > { %5177 = vmatpush1.bf16.msra.mxu1 %v7939_v32  ;;  %v4843_v54 = vpop.f32.mrf.mxu0  ;;  %5161 = vmatprep.subr.bf16.mxu0 %v7944_v42  ;;  %v7993_v32 = vld [vmem:[%s9676_s8 + $0x7d8] ss:$20 sps:$4 sm:$0xff]   ;;  %v7998_v42 = vld [vmem:[%s9676_s8 + $0x714] ss:$20 sps:$4 sm:$0xff]  }
 0x26b   : > { %v4884_v56 = vpop.f32.mrf.mxu1  ;;  %5178 = vmatprep.subr.bf16.mxu1 %v7947_v43  ;;  %v4844_v59 = vadd.f32 %v4843_v54, %v2083_v46  ;;  %v10049_v61 = vadd.f32 %v4882_v50, %v4842_v53  ;;  %5208 = vmatprep.mubr.bf16.mxu1 %v9774_v44  ;;  %v8001_v43 = vld [vmem:[%s9676_s8 + $0x7b4] ss:$20 sps:$4 sm:$0xff]   ;;  %v7996_v46 = vld [vmem:[%s9676_s8 + $0x710] ss:$20 sps:$4 sm:$0xff]   ;;  %v8004_v36 = vld [vmem:[%s9676_s8 + $0x6ec] ss:$20 sps:$4 sm:$0xff]  }
 0x26c   : > { %v4845_v1 = vpop.f32.mrf.mxu0  ;;  %v8007_v50 = vld [vmem:[%s9676_s8 + $0x78c] ss:$20 sps:$4 sm:$0xff]   ;;  %v8005_v53 = vld [vmem:[%s9676_s8 + $0x788] ss:$20 sps:$4 sm:$0xff]   ;;  %v8010_v54 = vld [vmem:[%s9676_s8 + $0x6c4] ss:$20 sps:$4 sm:$0xff]  }
 0x26d   : > { %v4886_v2 = vpop.f32.mrf.mxu1  ;;  %v10054_v3 = vadd.f32 %v4884_v56, %v4844_v59  ;;  %5162 = vmatpush2.bf16.msra.mxu0 %v7942_v47  ;;  %v7999_v47 = vld [vmem:[%s9676_s8 + $0x7b0] ss:$20 sps:$4 sm:$0xff]   ;;  %v8017_v1 = vld [vmem:[%s9676_s8 + $0x9b8] ss:$20 sps:$4 sm:$0xff]  }
 0x26e   : > { %5179 = vmatpush1.bf16.msra.mxu1 %v7945_v52  ;;  %v4846_v4 = vpop.f32.mrf.mxu0  ;;  %5163 = vmatprep.subr.bf16.mxu0 %v7950_v57  ;;  %v8002_v52 = vld [vmem:[%s9676_s8 + $0x6e8] ss:$20 sps:$4 sm:$0xff]   ;;  %v8013_v56 = vld [vmem:[%s9676_s8 + $0x9e4] ss:$20 sps:$4 sm:$0xff]   ;;  %v8008_v57 = vld [vmem:[%s9676_s8 + $0x6c0] ss:$20 sps:$4 sm:$0xff]  }
 0x26f   : > { %5180 = vmatprep.subr.bf16.mxu1 %v7953_v58  ;;  %v4887_v6 = vpop.f32.mrf.mxu1  ;;  %v8011_v58 = vld [vmem:[%s9676_s8 + $0x9e0] ss:$20 sps:$4 sm:$0xff]   ;;  %v8016_v59 = vld [vmem:[%s9676_s8 + $0x69c] ss:$20 sps:$4 sm:$0xff]  }
 0x270   : > { %v8022_v2 = vld [vmem:[%s9676_s8 + $0x674] ss:$20 sps:$4 sm:$0xff]   ;;  %v8020_v6 = vld [vmem:[%s9676_s8 + $0x670] ss:$20 sps:$4 sm:$0xff]  }
 0x271   : > { %5164 = vmatpush2.bf16.msra.mxu0 %v7948_v62  ;;  %v8019_v62 = vld [vmem:[%s9676_s8 + $0x9bc] ss:$20 sps:$4 sm:$0xff]   ;;  %v8025_v4 = vld [vmem:[%s9676_s8 + $0x994] ss:$20 sps:$4 sm:$0xff]  }
 0x272   : > { %5181 = vmatpush1.bf16.msra.mxu1 %v7951_v0  ;;  %5165 = vmatprep.subr.bf16.mxu0 %v7956_v8  ;;  %v8014_v0 = vld [vmem:[%s9676_s8 + $0x698] ss:$20 sps:$4 sm:$0xff]   ;;  %v8023_v8 = vld [vmem:[%s9676_s8 + $0x990] ss:$20 sps:$4 sm:$0xff]  }
 0x273   : > { %5182 = vmatprep.subr.bf16.mxu1 %v7959_v10  ;;  %v8028_v10 = vld [vmem:[%s9676_s8 + $0x64c] ss:$20 sps:$4 sm:$0xff]  }
 0x275   : > { %5166 = vmatpush2.bf16.msra.mxu0 %v7954_v11  ;;  %v8031_v11 = vld [vmem:[%s9676_s8 + $0x96c] ss:$20 sps:$4 sm:$0xff]  }
 0x276   : > { %5183 = vmatpush1.bf16.msra.mxu1 %v7957_v12  ;;  %5217 = vmatprep.subr.bf16.mxu0 %v7965_v63  ;;  %v8026_v12 = vld [vmem:[%s9676_s8 + $0x648] ss:$20 sps:$4 sm:$0xff]   ;;  %v8034_v63 = vld [vmem:[%s9676_s8 + $0x944] ss:$20 sps:$4 sm:$0xff]  }
 0x277   : > { %5184 = vmatprep.subr.bf16.mxu1 %v7962_v13  ;;  %v8029_v13 = vld [vmem:[%s9676_s8 + $0x968] ss:$20 sps:$4 sm:$0xff]  }
 0x278   : > { %5168 = vmatmul.mubr.bf16.vlgmr.msra.gmra.mxu0 %v9780_v49 }
 0x279   : > { %5218 = vmatpush1.bf16.msra.mxu0 %v7963_v16  ;;  %5249 = vmatprep.mubr.bf16.mxu0 %v9786_v51  ;;  %v8032_v16 = vld [vmem:[%s9676_s8 + $0x940] ss:$20 sps:$4 sm:$0xff]  }
 0x27a   : > { %5185 = vmatpush1.bf16.msra.mxu1 %v7960_v15  ;;  %5219 = vmatprep.subr.bf16.mxu0 %v7971_v18  ;;  %v8037_v15 = vld [vmem:[%s9676_s8 + $0xb24] ss:$20 sps:$4 sm:$0xff]   ;;  %v8040_v18 = vld [vmem:[%s9676_s8 + $0x91c] ss:$20 sps:$4 sm:$0xff]  }
 0x27b   : > { %5186 = vmatprep.subr.bf16.mxu1 %v7968_v17  ;;  %v8035_v17 = vld [vmem:[%s9676_s8 + $0xb20] ss:$20 sps:$4 sm:$0xff]  }
 0x27d   : > { %5220 = vmatpush1.bf16.msra.mxu0 %v7969_v20  ;;  %v8038_v20 = vld [vmem:[%s9676_s8 + $0x918] ss:$20 sps:$4 sm:$0xff]  }
 0x27e   : > { %5187 = vmatpush1.bf16.msra.mxu1 %v7966_v19  ;;  %5221 = vmatprep.subr.bf16.mxu0 %v7977_v23  ;;  %v8043_v19 = vld [vmem:[%s9676_s8 + $0xafc] ss:$20 sps:$4 sm:$0xff]  }
 0x27f   : > { %5188 = vmatprep.subr.bf16.mxu1 %v7974_v21 }
 0x281   : > { %5222 = vmatpush1.bf16.msra.mxu0 %v7975_v25  ;;  %v8041_v25 = vld [vmem:[%s9676_s8 + $0xaf8] ss:$20 sps:$4 sm:$0xff]  }
 0x282   : > { %5189 = vmatpush1.bf16.msra.mxu1 %v7972_v24  ;;  %5223 = vmatprep.subr.bf16.mxu0 %v7983_v29 }
 0x283   : > { %5190 = vmatprep.subr.bf16.mxu1 %v7980_v26 }
 0x285   : > { %5224 = vmatpush1.bf16.msra.mxu0 %v7981_v31  ;;  %v8049_v31 = vld [vmem:[%s9676_s8 + $0xad4] ss:$20 sps:$4 sm:$0xff]  }
 0x286   : > { %5191 = vmatpush1.bf16.msra.mxu1 %v7978_v30  ;;  %5225 = vmatprep.subr.bf16.mxu0 %v7989_v34  ;;  %v8046_v30 = vld [vmem:[%s9676_s8 + $0x8f4] ss:$20 sps:$4 sm:$0xff]  }
 0x287   : > { %5192 = vmatprep.subr.bf16.mxu1 %v7986_v33 }
 0x289   : > { %5226 = vmatpush1.bf16.msra.mxu0 %v7987_v37 }
 0x28a   : > { %5193 = vmatpush2.bf16.msra.mxu1 %v7984_v35  ;;  %5227 = vmatprep.subr.bf16.mxu0 %v7995_v39  ;;  %v8047_v39 = vld [vmem:[%s9676_s8 + $0xad0] ss:$20 sps:$4 sm:$0xff]  }
 0x28b   : > { %5194 = vmatprep.subr.bf16.mxu1 %v7992_v38  ;;  %v8044_v38 = vld [vmem:[%s9676_s8 + $0x8f0] ss:$20 sps:$4 sm:$0xff]  }
 0x28d   : > { %5228 = vmatpush1.bf16.msra.mxu0 %v7993_v32  ;;  %v8052_v32 = vld [vmem:[%s9676_s8 + $0x8cc] ss:$20 sps:$4 sm:$0xff]  }
 0x28e   : > { %5195 = vmatpush2.bf16.msra.mxu1 %v7990_v40  ;;  %5229 = vmatprep.subr.bf16.mxu0 %v8001_v43  ;;  %v8050_v43 = vld [vmem:[%s9676_s8 + $0x8c8] ss:$20 sps:$4 sm:$0xff]  }
 0x28f   : > { %5196 = vmatprep.subr.bf16.mxu1 %v7998_v42  ;;  %v8055_v42 = vld [vmem:[%s9676_s8 + $0xaac] ss:$20 sps:$4 sm:$0xff]  }
 0x291   : > { %5230 = vmatpush1.bf16.msra.mxu0 %v7999_v47  ;;  %v8058_v47 = vld [vmem:[%s9676_s8 + $0xa84] ss:$20 sps:$4 sm:$0xff]  }
 0x292   : > { %5197 = vmatpush2.bf16.msra.mxu1 %v7996_v46  ;;  %5231 = vmatprep.subr.bf16.mxu0 %v8007_v50  ;;  %v8053_v46 = vld [vmem:[%s9676_s8 + $0xaa8] ss:$20 sps:$4 sm:$0xff]   ;;  %v8056_v50 = vld [vmem:[%s9676_s8 + $0xa80] ss:$20 sps:$4 sm:$0xff]  }
 0x293   : > { %5198 = vmatprep.subr.bf16.mxu1 %v8004_v36  ;;  %v8061_v36 = vld [vmem:[%s9676_s8 + $0xda4] ss:$20 sps:$4 sm:$0xff]  }
 0x295   : > { %5232 = vmatpush1.bf16.msra.mxu0 %v8005_v53  ;;  %v8064_v53 = vld [vmem:[%s9676_s8 + $0xa5c] ss:$20 sps:$4 sm:$0xff]  }
 0x296   : > { %5199 = vmatpush2.bf16.msra.mxu1 %v8002_v52  ;;  %5233 = vmatprep.subr.bf16.mxu0 %v8013_v56  ;;  %v8059_v52 = vld [vmem:[%s9676_s8 + $0xda0] ss:$20 sps:$4 sm:$0xff]   ;;  %v8062_v56 = vld [vmem:[%s9676_s8 + $0xa58] ss:$20 sps:$4 sm:$0xff]  }
 0x297   : > { %5200 = vmatprep.subr.bf16.mxu1 %v8010_v54  ;;  %v8067_v54 = vld [vmem:[%s9676_s8 + $0xd7c] ss:$20 sps:$4 sm:$0xff]  }
 0x299   : > { %5234 = vmatpush2.bf16.msra.mxu0 %v8011_v58  ;;  %v8070_v58 = vld [vmem:[%s9676_s8 + $0xa34] ss:$20 sps:$4 sm:$0xff]  }
 0x29a   : > { %5201 = vmatpush2.bf16.msra.mxu1 %v8008_v57  ;;  %5235 = vmatprep.subr.bf16.mxu0 %v8019_v62  ;;  %v8065_v57 = vld [vmem:[%s9676_s8 + $0xd78] ss:$20 sps:$4 sm:$0xff]   ;;  %v8068_v62 = vld [vmem:[%s9676_s8 + $0xa30] ss:$20 sps:$4 sm:$0xff]  }
 0x29b   : > { %5202 = vmatprep.subr.bf16.mxu1 %v8016_v59  ;;  %v8073_v59 = vld [vmem:[%s9676_s8 + $0xd54] ss:$20 sps:$4 sm:$0xff]  }
 0x29d   : > { %5236 = vmatpush2.bf16.msra.mxu0 %v8017_v1  ;;  %v8076_v1 = vld [vmem:[%s9676_s8 + $0xa0c] ss:$20 sps:$4 sm:$0xff]  }
 0x29e   : > { %5203 = vmatpush2.bf16.msra.mxu1 %v8014_v0  ;;  %5237 = vmatprep.subr.bf16.mxu0 %v8025_v4  ;;  %v8071_v0 = vld [vmem:[%s9676_s8 + $0xd50] ss:$20 sps:$4 sm:$0xff]   ;;  %v8074_v4 = vld [vmem:[%s9676_s8 + $0xa08] ss:$20 sps:$4 sm:$0xff]  }
 0x29f   : > { %5204 = vmatprep.subr.bf16.mxu1 %v8022_v2  ;;  %v8079_v2 = vld [vmem:[%s9676_s8 + $0xd2c] ss:$20 sps:$4 sm:$0xff]  }
 0x2a1   : > { %5238 = vmatpush2.bf16.msra.mxu0 %v8023_v8  ;;  %v8082_v8 = vld [vmem:[%s9676_s8 + $0xc64] ss:$20 sps:$4 sm:$0xff]  }
 0x2a2   : > { %5205 = vmatpush2.bf16.msra.mxu1 %v8020_v6  ;;  %5239 = vmatprep.subr.bf16.mxu0 %v8031_v11  ;;  %v8077_v6 = vld [vmem:[%s9676_s8 + $0xd28] ss:$20 sps:$4 sm:$0xff]   ;;  %v8080_v11 = vld [vmem:[%s9676_s8 + $0xc60] ss:$20 sps:$4 sm:$0xff]  }
 0x2a3   : > { %5206 = vmatprep.subr.bf16.mxu1 %v8028_v10  ;;  %v8085_v10 = vld [vmem:[%s9676_s8 + $0xd04] ss:$20 sps:$4 sm:$0xff]  }
 0x2a5   : > { %5240 = vmatpush2.bf16.msra.mxu0 %v8029_v13  ;;  %v8088_v13 = vld [vmem:[%s9676_s8 + $0xc3c] ss:$20 sps:$4 sm:$0xff]  }
 0x2a6   : > { %5207 = vmatpush2.bf16.msra.mxu1 %v8026_v12  ;;  %5241 = vmatprep.subr.bf16.mxu0 %v8034_v63  ;;  %v8083_v12 = vld [vmem:[%s9676_s8 + $0xd00] ss:$20 sps:$4 sm:$0xff]   ;;  %v8091_v63 = vld [vmem:[%s9676_s8 + $0xcdc] ss:$20 sps:$4 sm:$0xff]  }
 0x2a7   : > { %5258 = vmatprep.subr.bf16.mxu1 %v8037_v15  ;;  %v8086_v15 = vld [vmem:[%s9676_s8 + $0xc38] ss:$20 sps:$4 sm:$0xff]  }
 0x2a8   : > { %v4923_v21 = vpop.f32.mrf.mxu0 }
 0x2a9   : > { %5209 = vmatmul.mubr.bf16.vlgmr.msra.gmra.mxu1 %v9852_v55  ;;  %v4964_v23 = vpop.f32.mrf.mxu1  ;;  %v4924_v24 = vadd.f32 %v4923_v21, %v10049_v61  ;;  %5242 = vmatpush2.bf16.msra.mxu0 %v8032_v16  ;;  %v8089_v16 = vld [vmem:[%s9676_s8 + $0xcd8] ss:$20 sps:$4 sm:$0xff]  }
 0x2aa   : > { %5259 = vmatpush1.bf16.msra.mxu1 %v8035_v17  ;;  %v4925_v26 = vpop.f32.mrf.mxu0  ;;  %5243 = vmatprep.subr.bf16.mxu0 %v8040_v18  ;;  %v8094_v17 = vld [vmem:[%s9676_s8 + $0xc14] ss:$20 sps:$4 sm:$0xff]   ;;  %v8100_v21 = vld [vmem:[%s9676_s8 + $0xbec] ss:$20 sps:$4 sm:$0xff]  }
 0x2ab   : > { %v4966_v29 = vpop.f32.mrf.mxu1  ;;  %5260 = vmatprep.subr.bf16.mxu1 %v8043_v19  ;;  %v4926_v33 = vadd.f32 %v4925_v26, %v10054_v3  ;;  %v10123_v34 = vadd.f32 %v4964_v23, %v4924_v24  ;;  %5290 = vmatprep.mubr.bf16.mxu1 %v9882_v5  ;;  %v8097_v18 = vld [vmem:[%s9676_s8 + $0xcb4] ss:$20 sps:$4 sm:$0xff]   ;;  %v8092_v19 = vld [vmem:[%s9676_s8 + $0xc10] ss:$20 sps:$4 sm:$0xff]   ;;  %v8103_v23 = vld [vmem:[%s9676_s8 + $0xc8c] ss:$20 sps:$4 sm:$0xff]  }
 0x2ac   : > { %v4927_v61 = vpop.f32.mrf.mxu0  ;;  %v8098_v24 = vld [vmem:[%s9676_s8 + $0xbe8] ss:$20 sps:$4 sm:$0xff]   ;;  %v8106_v26 = vld [vmem:[%s9676_s8 + $0xbc4] ss:$20 sps:$4 sm:$0xff]  }
 0x2ad   : > { %v4968_v35 = vpop.f32.mrf.mxu1  ;;  %v10126_v37 = vadd.f32 %v4966_v29, %v4926_v33  ;;  %5244 = vmatpush2.bf16.msra.mxu0 %v8038_v20  ;;  %v8095_v20 = vld [vmem:[%s9676_s8 + $0xcb0] ss:$20 sps:$4 sm:$0xff]  }
 0x2ae   : > { %5261 = vmatpush1.bf16.msra.mxu1 %v8041_v25  ;;  %v4928_v40 = vpop.f32.mrf.mxu0  ;;  %5245 = vmatprep.subr.bf16.mxu0 %v8046_v30  ;;  %v8101_v25 = vld [vmem:[%s9676_s8 + $0xc88] ss:$20 sps:$4 sm:$0xff]   ;;  %v8109_v29 = vld [vmem:[%s9676_s8 + $0xee4] ss:$20 sps:$4 sm:$0xff]   ;;  %v8104_v30 = vld [vmem:[%s9676_s8 + $0xbc0] ss:$20 sps:$4 sm:$0xff]  }
 0x2af   : > { %5262 = vmatprep.subr.bf16.mxu1 %v8049_v31  ;;  %v4969_v3 = vpop.f32.mrf.mxu1  ;;  %v8107_v31 = vld [vmem:[%s9676_s8 + $0xee0] ss:$20 sps:$4 sm:$0xff]   ;;  %v8112_v33 = vld [vmem:[%s9676_s8 + $0xb9c] ss:$20 sps:$4 sm:$0xff]   ;;  %v8110_v35 = vld [vmem:[%s9676_s8 + $0xb98] ss:$20 sps:$4 sm:$0xff]  }
 0x2b0   : > { %v8115_v61 = vld [vmem:[%s9676_s8 + $0xebc] ss:$20 sps:$4 sm:$0xff]   ;;  %v8121_v40 = vld [vmem:[%s9676_s8 + $0xe94] ss:$20 sps:$4 sm:$0xff]  }
 0x2b1   : > { %5246 = vmatpush2.bf16.msra.mxu0 %v8044_v38  ;;  %v8113_v38 = vld [vmem:[%s9676_s8 + $0xeb8] ss:$20 sps:$4 sm:$0xff]   ;;  %v8116_v3 = vld [vmem:[%s9676_s8 + $0xb70] ss:$20 sps:$4 sm:$0xff]  }
 0x2b2   : > { %5263 = vmatpush1.bf16.msra.mxu1 %v8047_v39  ;;  %5247 = vmatprep.subr.bf16.mxu0 %v8052_v32  ;;  %v8118_v39 = vld [vmem:[%s9676_s8 + $0xb74] ss:$20 sps:$4 sm:$0xff]   ;;  %v8119_v32 = vld [vmem:[%s9676_s8 + $0xe90] ss:$20 sps:$4 sm:$0xff]  }
 0x2b3   : > { %5264 = vmatprep.subr.bf16.mxu1 %v8055_v42  ;;  %v8124_v42 = vld [vmem:[%s9676_s8 + $0xb4c] ss:$20 sps:$4 sm:$0xff]  }
 0x2b5   : > { %5248 = vmatpush2.bf16.msra.mxu0 %v8050_v43  ;;  %v8127_v43 = vld [vmem:[%s9676_s8 + $0xe6c] ss:$20 sps:$4 sm:$0xff]  }
 0x2b6   : > { %5265 = vmatpush1.bf16.msra.mxu1 %v8053_v46  ;;  %5299 = vmatprep.subr.bf16.mxu0 %v8061_v36  ;;  %v8122_v46 = vld [vmem:[%s9676_s8 + $0xb48] ss:$20 sps:$4 sm:$0xff]   ;;  %v8130_v36 = vld [vmem:[%s9676_s8 + $0xe44] ss:$20 sps:$4 sm:$0xff]  }
 0x2b7   : > { %5266 = vmatprep.subr.bf16.mxu1 %v8058_v47  ;;  %v8125_v47 = vld [vmem:[%s9676_s8 + $0xe68] ss:$20 sps:$4 sm:$0xff]  }
 0x2b8   : > { %5250 = vmatmul.mubr.bf16.vlgmr.msra.gmra.mxu0 %v9860_v60 }
 0x2b9   : > { %5300 = vmatpush1.bf16.msra.mxu0 %v8059_v52  ;;  %5331 = vmatprep.mubr.bf16.mxu0 %v9888_v7  ;;  %v8128_v52 = vld [vmem:[%s9676_s8 + $0xe40] ss:$20 sps:$4 sm:$0xff]  }
 0x2ba   : > { %5267 = vmatpush1.bf16.msra.mxu1 %v8056_v50  ;;  %5301 = vmatprep.subr.bf16.mxu0 %v8067_v54  ;;  %v8133_v50 = vld [vmem:[%s9676_s8 + $0xf84] ss:$20 sps:$4 sm:$0xff]   ;;  %v8136_v54 = vld [vmem:[%s9676_s8 + $0xe1c] ss:$20 sps:$4 sm:$0xff]  }
 0x2bb   : > { %5268 = vmatprep.subr.bf16.mxu1 %v8064_v53  ;;  %v8131_v53 = vld [vmem:[%s9676_s8 + $0xf80] ss:$20 sps:$4 sm:$0xff]  }
 0x2bd   : > { %5302 = vmatpush1.bf16.msra.mxu0 %v8065_v57  ;;  %v8134_v57 = vld [vmem:[%s9676_s8 + $0xe18] ss:$20 sps:$4 sm:$0xff]  }
 0x2be   : > { %5269 = vmatpush1.bf16.msra.mxu1 %v8062_v56  ;;  %5303 = vmatprep.subr.bf16.mxu0 %v8073_v59  ;;  %v8139_v56 = vld [vmem:[%s9676_s8 + $0xf5c] ss:$20 sps:$4 sm:$0xff]  }
 0x2bf   : > { %5270 = vmatprep.subr.bf16.mxu1 %v8070_v58  ;;  %v8137_v58 = vld [vmem:[%s9676_s8 + $0xf58] ss:$20 sps:$4 sm:$0xff]  }
 0x2c1   : > { %5304 = vmatpush1.bf16.msra.mxu0 %v8071_v0  ;;  %v8142_v0 = vld [vmem:[%s9676_s8 + $0xdf4] ss:$20 sps:$4 sm:$0xff]  }
 0x2c2   : > { %5271 = vmatpush1.bf16.msra.mxu1 %v8068_v62  ;;  %5305 = vmatprep.subr.bf16.mxu0 %v8079_v2 }
 0x2c3   : > { %5272 = vmatprep.subr.bf16.mxu1 %v8076_v1  ;;  %v8145_v1 = vld [vmem:[%s9676_s8 + $0xf34] ss:$20 sps:$4 sm:$0xff]  }
 0x2c5   : > { %5306 = vmatpush1.bf16.msra.mxu0 %v8077_v6 }
 0x2c6   : > { %5273 = vmatpush1.bf16.msra.mxu1 %v8074_v4  ;;  %5307 = vmatprep.subr.bf16.mxu0 %v8085_v10 }
 0x2c7   : > { %5274 = vmatprep.subr.bf16.mxu1 %v8082_v8 }
 0x2c9   : > { %5308 = vmatpush1.bf16.msra.mxu0 %v8083_v12  ;;  %v8143_v12 = vld [vmem:[%s9676_s8 + $0xf30] ss:$20 sps:$4 sm:$0xff]  }
 0x2ca   : > { %5275 = vmatpush2.bf16.msra.mxu1 %v8080_v11  ;;  %5309 = vmatprep.subr.bf16.mxu0 %v8091_v63  ;;  %v8140_v11 = vld [vmem:[%s9676_s8 + $0xdf0] ss:$20 sps:$4 sm:$0xff]  }
 0x2cb   : > { %5276 = vmatprep.subr.bf16.mxu1 %v8088_v13 }
 0x2cd   : > { %5310 = vmatpush1.bf16.msra.mxu0 %v8089_v16  ;;  %v8151_v16 = vld [vmem:[%s9676_s8 + $0xf0c] ss:$20 sps:$4 sm:$0xff]  }
 0x2ce   : > { %5277 = vmatpush2.bf16.msra.mxu1 %v8086_v15  ;;  %5311 = vmatprep.subr.bf16.mxu0 %v8097_v18  ;;  %v8148_v15 = vld [vmem:[%s9676_s8 + $0xdcc] ss:$20 sps:$4 sm:$0xff]   ;;  %v8146_v18 = vld [vmem:[%s9676_s8 + $0xdc8] ss:$20 sps:$4 sm:$0xff]  }
 0x2cf   : > { %5278 = vmatprep.subr.bf16.mxu1 %v8094_v17 }
 0x2d1   : > { %5312 = vmatpush1.bf16.msra.mxu0 %v8095_v20  ;;  %v8152_v20 = vld [vmem:[%s9676_s8 + $0x268] ss:$20 sps:$4 sm:$0xff]  }
 0x2d2   : > { %5279 = vmatpush2.bf16.msra.mxu1 %v8092_v19  ;;  %5313 = vmatprep.subr.bf16.mxu0 %v8103_v23  ;;  %v8149_v19 = vld [vmem:[%s9676_s8 + $0xf08] ss:$20 sps:$4 sm:$0xff]  }
 0x2d3   : > { %5280 = vmatprep.subr.bf16.mxu1 %v8100_v21  ;;  %v8153_v21 = vld [vmem:[%s9676_s8 + $0x4e8] ss:$20 sps:$4 sm:$0xff]  }
 0x2d4   : > { %v8154_v23 = vld [vmem:[%s9676_s8 + $0x128] ss:$20 sps:$4 sm:$0xff]  }
 0x2d5   : > { %5314 = vmatpush1.bf16.msra.mxu0 %v8101_v25  ;;  %v8156_v25 = vld [vmem:[%s9676_s8 + $0x240] ss:$20 sps:$4 sm:$0xff]  }
 0x2d6   : > { %5281 = vmatpush2.bf16.msra.mxu1 %v8098_v24  ;;  %5315 = vmatprep.subr.bf16.mxu0 %v8109_v29  ;;  %v8155_v24 = vld [vmem:[%s9676_s8 + $0x3a8] ss:$20 sps:$4 sm:$0xff]  }
 0x2d7   : > { %5282 = vmatprep.subr.bf16.mxu1 %v8106_v26  ;;  %v8157_v26 = vld [vmem:[%s9676_s8 + $0x4c0] ss:$20 sps:$4 sm:$0xff]  }
 0x2d9   : > { %5316 = vmatpush2.bf16.msra.mxu0 %v8107_v31  ;;  %v8158_v31 = vld [vmem:[%s9676_s8 + $0x100] ss:$20 sps:$4 sm:$0xff]  }
 0x2da   : > { %5283 = vmatpush2.bf16.msra.mxu1 %v8104_v30  ;;  %5317 = vmatprep.subr.bf16.mxu0 %v8115_v61 }
 0x2db   : > { %5284 = vmatprep.subr.bf16.mxu1 %v8112_v33  ;;  %v8159_v33 = vld [vmem:[%s9676_s8 + $0x380] ss:$20 sps:$4 sm:$0xff]  }
 0x2dd   : > { %5318 = vmatpush2.bf16.msra.mxu0 %v8113_v38  ;;  %v8161_v38 = vld [vmem:[%s9676_s8 + $0x498] ss:$20 sps:$4 sm:$0xff]  }
 0x2de   : > { %5285 = vmatpush2.bf16.msra.mxu1 %v8110_v35  ;;  %5319 = vmatprep.subr.bf16.mxu0 %v8121_v40  ;;  %v8160_v35 = vld [vmem:[%s9676_s8 + $0x218] ss:$20 sps:$4 sm:$0xff]  }
 0x2df   : > { %5286 = vmatprep.subr.bf16.mxu1 %v8118_v39 }
 0x2e1   : > { %5320 = vmatpush2.bf16.msra.mxu0 %v8119_v32  ;;  %v8163_v32 = vld [vmem:[%s9676_s8 + $0x358] ss:$20 sps:$4 sm:$0xff]  }
 0x2e2   : > { %5287 = vmatpush2.bf16.msra.mxu1 %v8116_v3  ;;  %5321 = vmatprep.subr.bf16.mxu0 %v8127_v43  ;;  %v8162_v3 = vld [vmem:[%s9676_s8 + $0xd8] ss:$20 sps:$4 sm:$0xff]   ;;  %v8164_v43 = vld [vmem:[%s9676_s8 + $0x1f0] ss:$20 sps:$4 sm:$0xff]  }
 0x2e3   : > { %5288 = vmatprep.subr.bf16.mxu1 %v8124_v42 }
 0x2e5   : > { %5322 = vmatpush2.bf16.msra.mxu0 %v8125_v47  ;;  %v8168_v47 = vld [vmem:[%s9676_s8 + $0x1c8] ss:$20 sps:$4 sm:$0xff]  }
 0x2e6   : > { %5289 = vmatpush2.bf16.msra.mxu1 %v8122_v46  ;;  %5323 = vmatprep.subr.bf16.mxu0 %v8130_v36  ;;  %v8165_v46 = vld [vmem:[%s9676_s8 + $0x470] ss:$20 sps:$4 sm:$0xff]   ;;  %v8169_v36 = vld [vmem:[%s9676_s8 + $0x448] ss:$20 sps:$4 sm:$0xff]  }
 0x2e7   : > { %5348 = vmatprep.subr.bf16.mxu1 %v8133_v50  ;;  %v8170_v50 = vld [vmem:[%s9676_s8 + $0x88] ss:$20 sps:$4 sm:$0xff]  }
 0x2e8   : > { %v5005_v59 = vpop.f32.mrf.mxu0 }
 0x2e9   : > { %5291 = vmatmul.mubr.bf16.vlgmr.msra.gmra.mxu1 %v9944_v9  ;;  %v5046_v62 = vpop.f32.mrf.mxu1  ;;  %v5006_v2 = vadd.f32 %v5005_v59, %v10123_v34  ;;  %5324 = vmatpush2.bf16.msra.mxu0 %v8128_v52  ;;  %v8171_v52 = vld [vmem:[%s9676_s8 + $0x308] ss:$20 sps:$4 sm:$0xff]   ;;  %v8177_v59 = vld [vmem:[%s9676_s8 + $0x3f8] ss:$20 sps:$4 sm:$0xff]  }
 0x2ea   : > { %5349 = vmatpush1.bf16.msra.mxu1 %v8131_v53  ;;  %v5007_v4 = vpop.f32.mrf.mxu0  ;;  %5325 = vmatprep.subr.bf16.mxu0 %v8136_v54  ;;  %v8172_v53 = vld [vmem:[%s9676_s8 + $0x1a0] ss:$20 sps:$4 sm:$0xff]  }
 0x2eb   : > { %v5048_v6 = vpop.f32.mrf.mxu1  ;;  %5350 = vmatprep.subr.bf16.mxu1 %v8139_v56  ;;  %v5008_v8 = vadd.f32 %v5007_v4, %v10126_v37  ;;  %v5047_v10 = vadd.f32 %v5046_v62, %v5006_v2  ;;  %5372 = vmatprep.mubr.bf16.mxu1 %v8398_v22  ;;  %v8173_v54 = vld [vmem:[%s9676_s8 + $0x420] ss:$20 sps:$4 sm:$0xff]   ;;  %v8178_v62 = vld [vmem:[%s9676_s8 + $0x38] ss:$20 sps:$4 sm:$0xff]   ;;  %v8181_v2 = vld [vmem:[%s9676_s8 + $0x3d0] ss:$20 sps:$4 sm:$0xff]  }
 0x2ec   : > { %v5009_v13 = vpop.f32.mrf.mxu0  ;;  %v8174_v56 = vld [vmem:[%s9676_s8 + $0x60] ss:$20 sps:$4 sm:$0xff]   ;;  %v8182_v4 = vld [vmem:[%s9676_s8 + $0x10] ss:$20 sps:$4 sm:$0xff]  }
 0x2ed   : > { %v5050_v34 = vpop.f32.mrf.mxu1  ;;  %v5049_v63 = vadd.f32 %v5048_v6, %v5008_v8  ;;  %5326 = vmatpush2.bf16.msra.mxu0 %v8134_v57  ;;  %v8175_v57 = vld [vmem:[%s9676_s8 + $0x2e0] ss:$20 sps:$4 sm:$0xff]   ;;  %v8183_v6 = vld [vmem:[%s9676_s8 + $0x290] ss:$20 sps:$4 sm:$0xff]   ;;  %v8184_v8 = vld [vmem:[%s9676_s8 + $0x768] ss:$20 sps:$4 sm:$0xff]  }
 0x2ee   : > { %5351 = vmatpush1.bf16.msra.mxu1 %v8137_v58  ;;  %v5010_v37 = vpop.f32.mrf.mxu0  ;;  %5327 = vmatprep.subr.bf16.mxu0 %v8142_v0  ;;  %v8176_v58 = vld [vmem:[%s9676_s8 + $0x178] ss:$20 sps:$4 sm:$0xff]   ;;  %v8188_v13 = vld [vmem:[%s9676_s8 + $0x740] ss:$20 sps:$4 sm:$0xff]  }
 0x2ef   : > { %5352 = vmatprep.subr.bf16.mxu1 %v8145_v1  ;;  %v5051_v17 = vpop.f32.mrf.mxu1  ;;  %v8179_v0 = vld [vmem:[%s9676_s8 + $0x2b8] ss:$20 sps:$4 sm:$0xff]   ;;  %v8180_v1 = vld [vmem:[%s9676_s8 + $0x150] ss:$20 sps:$4 sm:$0xff]   ;;  %v8189_v34 = vld [vmem:[%s9676_s8 + $0x9c0] ss:$20 sps:$4 sm:$0xff]  }
 0x2f0   : > { %v8193_v37 = vld [vmem:[%s9676_s8 + $0x998] ss:$20 sps:$4 sm:$0xff]   ;;  %v8196_v17 = vld [vmem:[%s9676_s8 + $0x6f0] ss:$20 sps:$4 sm:$0xff]  }
 0x2f1   : > { %5328 = vmatpush2.bf16.msra.mxu0 %v8140_v11  ;;  %v8186_v11 = vld [vmem:[%s9676_s8 + $0x628] ss:$20 sps:$4 sm:$0xff]  }
 0x2f2   : > { %5353 = vmatpush1.bf16.msra.mxu1 %v8143_v12  ;;  %5329 = vmatprep.subr.bf16.mxu0 %v8148_v15  ;;  %v8187_v12 = vld [vmem:[%s9676_s8 + $0x8a8] ss:$20 sps:$4 sm:$0xff]   ;;  %v8191_v15 = vld [vmem:[%s9676_s8 + $0x880] ss:$20 sps:$4 sm:$0xff]  }
 0x2f3   : > { %5354 = vmatprep.subr.bf16.mxu1 %v8151_v16  ;;  %v8192_v16 = vld [vmem:[%s9676_s8 + $0x718] ss:$20 sps:$4 sm:$0xff]  }
 0x2f5   : > { %5330 = vmatpush2.bf16.msra.mxu0 %v8146_v18  ;;  %v8197_v18 = vld [vmem:[%s9676_s8 + $0x970] ss:$20 sps:$4 sm:$0xff]  }
 0x2f6   : > { %5355 = vmatpush1.bf16.msra.mxu1 %v8149_v19  ;;  %7371 = vmatprep.subr.bf16.mxu0 %v8152_v20  ;;  %v8198_v19 = vld [vmem:[%s9676_s8 + $0x5b0] ss:$20 sps:$4 sm:$0xff]   ;;  %v8201_v20 = vld [vmem:[%s9676_s8 + $0x948] ss:$20 sps:$4 sm:$0xff]  }
 0x2f7   : > { %7393 = vmatprep.subr.bf16.mxu1 %v8153_v21  ;;  %v8202_v21 = vld [vmem:[%s9676_s8 + $0x588] ss:$20 sps:$4 sm:$0xff]  }
 0x2f8   : > { %v5087_v29 = vpop.f32.mrf.mxu0  ;;  %5332 = vmatmul.mubr.bf16.vlgmr.msra.gmra.mxu0 %v9952_v14 }
 0x2f9   : > { %7283 = vmatmul.mubr.msk.bf16.vlgmr.msra.gmra.mxu1 %vm4803_vm0, %v9978_v28  ;;  %v10219_v30 = vadd.f32 %v5087_v29, %v5047_v10  ;;  %7372 = vmatpush3.bf16.msra.mxu0 %v8154_v23  ;;  %v8185_v10 = vld [vmem:[%s9676_s8 + $0x9e8] ss:$20 sps:$4 sm:$0xff]   ;;  %v8206_v29 = vld [vmem:[%s9676_s8 + $0x560] ss:$20 sps:$4 sm:$0xff]  }
 0x2fa   : > { %7394 = vmatpush3.bf16.msra.mxu1 %v8155_v24  ;;  %v5089_v61 = vpop.f32.mrf.mxu0  ;;  %7373 = vmatprep.subr.bf16.mxu0 %v8156_v25  ;;  %v8203_v23 = vld [vmem:[%s9676_s8 + $0x808] ss:$20 sps:$4 sm:$0xff]   ;;  %v8204_v24 = vld [vmem:[%s9676_s8 + $0x6a0] ss:$20 sps:$4 sm:$0xff]  }
 0x2fb   : > { %7395 = vmatprep.subr.bf16.mxu1 %v8157_v26  ;;  %v10225_v39 = vadd.f32 %v5089_v61, %v5049_v63  ;;  %5413 = vmatprep.mubr.bf16.mxu0 %v9700_v45  ;;  %v8166_v45 = vld [vmem:[%s9676_s8 + $0xb0] ss:$20 sps:$4 sm:$0xff]   ;;  %v8190_v63 = vld [vmem:[%s9676_s8 + $0x600] ss:$20 sps:$4 sm:$0xff]   ;;  %v8208_v61 = vld [vmem:[%s9676_s8 + $0x678] ss:$20 sps:$4 sm:$0xff]  }
 0x2fc   : > { %5453 = vmatprep.mubr.bf16.mxu1 %v9706_v48  ;;  %v5091_v40 = vpop.f32.mrf.mxu0  ;;  %v8167_v48 = vld [vmem:[%s9676_s8 + $0x330] ss:$20 sps:$4 sm:$0xff]   ;;  %v8205_v25 = vld [vmem:[%s9676_s8 + $0x920] ss:$20 sps:$4 sm:$0xff]  }
 0x2fd   : > { %7374 = vmatpush3.bf16.msra.mxu0 %v8158_v31  ;;  %v8207_v31 = vld [vmem:[%s9676_s8 + $0x7e0] ss:$20 sps:$4 sm:$0xff]   ;;  %v8210_v40 = vld [vmem:[%s9676_s8 + $0x538] ss:$20 sps:$4 sm:$0xff]  }
 0x2fe   : > { %7396 = vmatpush3.bf16.msra.mxu1 %v8159_v33  ;;  %v5092_v42 = vpop.f32.mrf.mxu0  ;;  %7375 = vmatprep.subr.bf16.mxu0 %v8160_v35  ;;  %v8209_v35 = vld [vmem:[%s9676_s8 + $0x8f8] ss:$20 sps:$4 sm:$0xff]  }
 0x2ff   : > { %7397 = vmatprep.subr.bf16.mxu1 %v8161_v38  ;;  %v8212_v42 = vld [vmem:[%s9676_s8 + $0x650] ss:$20 sps:$4 sm:$0xff]  }
 0x301   : > { %7376 = vmatpush3.bf16.msra.mxu0 %v8162_v3  ;;  %v8211_v3 = vld [vmem:[%s9676_s8 + $0x7b8] ss:$20 sps:$4 sm:$0xff]  }
 0x302   : > { %7398 = vmatpush3.bf16.msra.mxu1 %v8163_v32  ;;  %7377 = vmatprep.subr.bf16.mxu0 %v8164_v43  ;;  %v8213_v43 = vld [vmem:[%s9676_s8 + $0x8d0] ss:$20 sps:$4 sm:$0xff]  }
 0x303   : > { %7399 = vmatprep.subr.bf16.mxu1 %v8165_v46  ;;  %v2086_v46 = vsub.s32 2, %v9669_v27 }
 0x305   : > { %7378 = vmatpush3.bf16.msra.mxu0 %v8166_v45  ;;  %v2090_v45 = vsub.s32 3, %v9669_v27 }
 0x306   : > { %7400 = vmatpush3.bf16.msra.mxu1 %v8167_v48  ;;  %7379 = vmatprep.subr.bf16.mxu0 %v8168_v47  ;;  %v8214_v48 = vld [vmem:[%s9676_s8 + $0x510] ss:$20 sps:$4 sm:$0xff]  }
 0x307   : > { %7401 = vmatprep.subr.bf16.mxu1 %v8169_v36  ;;  %v8215_v47 = vld [vmem:[%s9676_s8 + $0x790] ss:$20 sps:$4 sm:$0xff]   ;;  %v8216_v36 = vld [vmem:[%s9676_s8 + $0xc68] ss:$20 sps:$4 sm:$0xff]  }
 0x309   : > { %7380 = vmatpush3.bf16.msra.mxu0 %v8170_v50  ;;  %v8217_v50 = vld [vmem:[%s9676_s8 + $0xee8] ss:$20 sps:$4 sm:$0xff]  }
 0x30a   : > { %7402 = vmatpush3.bf16.msra.mxu1 %v8171_v52  ;;  %7381 = vmatprep.subr.bf16.mxu0 %v8172_v53  ;;  %v10292_v52 = vld [vmem:[%s10031_s14] sm:$0x1f] }
 0x30b   : > { %7403 = vmatprep.subr.bf16.mxu1 %v8173_v54  ;;  %v2087_v53 = vrot.slane %v10292_v52, %v2086_v46  ;;  %v2091_v54 = vrot.slane %v10292_v52, %v2090_v45  ;;  %v8260_v46 = vld [vmem:[%s10178_s23 + $0x40] ss:$8 sps:$4 sm:$0xff]   ;;  %v8263_v45 = vld [vmem:[%s9676_s8 + $0xf10] ss:$20 sps:$4 sm:$0xff]  }
 0x30d   : > { %7382 = vmatpush3.bf16.msra.mxu0 %v8174_v56  ;;  %v8218_v56 = vld [vmem:[%s9676_s8 + $0xb28] ss:$20 sps:$4 sm:$0xff]  }
 0x30e   : > { %7404 = vmatpush3.bf16.msra.mxu1 %v8175_v57  ;;  %7383 = vmatprep.subr.bf16.mxu0 %v8176_v58  ;;  %v8219_v57 = vld [vmem:[%s9676_s8 + $0xda8] ss:$20 sps:$4 sm:$0xff]   ;;  %v8220_v58 = vld [vmem:[%s9676_s8 + $0xc40] ss:$20 sps:$4 sm:$0xff]  }
 0x30f   : > { %7405 = vmatprep.subr.bf16.mxu1 %v8177_v59  ;;  %v8221_v59 = vld [vmem:[%s9676_s8 + $0xec0] ss:$20 sps:$4 sm:$0xff]  }
 0x311   : > { %7384 = vmatpush3.bf16.msra.mxu0 %v8178_v62 }
 0x312   : > { %7406 = vmatpush3.bf16.msra.mxu1 %v8179_v0  ;;  %7385 = vmatprep.subr.bf16.mxu0 %v8180_v1 }
 0x313   : > { %7407 = vmatprep.subr.bf16.mxu1 %v8181_v2 }
 0x315   : > { %7386 = vmatpush3.bf16.msra.mxu0 %v8182_v4  ;;  %v8222_v4 = vld [vmem:[%s9676_s8 + $0xb00] ss:$20 sps:$4 sm:$0xff]  }
 0x316   : > { %7408 = vmatpush3.bf16.msra.mxu1 %v8183_v6  ;;  %7415 = vmatprep.subr.bf16.mxu0 %v8184_v8  ;;  %v8223_v6 = vld [vmem:[%s9676_s8 + $0xd80] ss:$20 sps:$4 sm:$0xff]  }
 0x317   : > { %7437 = vmatprep.subr.bf16.mxu1 %v8185_v10  ;;  %v8224_v10 = vld [vmem:[%s9676_s8 + $0xc18] ss:$20 sps:$4 sm:$0xff]  }
 0x318   : > { %5414 = vmatmul.mubr.bf16.vlgmr.msra.gmra.mxu0 %v9769_v41  ;;  %v8194_v41 = vld [vmem:[%s9676_s8 + $0x5d8] ss:$20 sps:$4 sm:$0xff]  }
 0x319   : > { %5454 = vmatmul.mubr.bf16.vlgmr.msra.gmra.mxu1 %v9780_v49  ;;  %7416 = vmatpush3.bf16.msra.mxu0 %v8186_v11  ;;  %v8195_v49 = vld [vmem:[%s9676_s8 + $0x858] ss:$20 sps:$4 sm:$0xff]  }
 0x31a   : > { %7438 = vmatpush3.bf16.msra.mxu1 %v8187_v12  ;;  %7417 = vmatprep.subr.bf16.mxu0 %v8188_v13  ;;  %v8225_v11 = vld [vmem:[%s9676_s8 + $0xe98] ss:$20 sps:$4 sm:$0xff]  }
 0x31b   : > { %7439 = vmatprep.subr.bf16.mxu1 %v8189_v34  ;;  %5493 = vmatprep.mubr.bf16.mxu0 %v9774_v44  ;;  %v8199_v44 = vld [vmem:[%s9676_s8 + $0x830] ss:$20 sps:$4 sm:$0xff]   ;;  %v8226_v12 = vld [vmem:[%s9676_s8 + $0xad8] ss:$20 sps:$4 sm:$0xff]  }
 0x31c   : > { %5533 = vmatprep.mubr.bf16.mxu1 %v9786_v51  ;;  %v8200_v51 = vld [vmem:[%s9676_s8 + $0x6c8] ss:$20 sps:$4 sm:$0xff]   ;;  %v8227_v13 = vld [vmem:[%s9676_s8 + $0xd58] ss:$20 sps:$4 sm:$0xff]  }
 0x31d   : > { %7418 = vmatpush3.bf16.msra.mxu0 %v8190_v63  ;;  %v8228_v63 = vld [vmem:[%s9676_s8 + $0xbf0] ss:$20 sps:$4 sm:$0xff]  }
 0x31e   : > { %7440 = vmatpush3.bf16.msra.mxu1 %v8191_v15  ;;  %7419 = vmatprep.subr.bf16.mxu0 %v8192_v16  ;;  %v8229_v15 = vld [vmem:[%s9676_s8 + $0xe70] ss:$20 sps:$4 sm:$0xff]   ;;  %v8232_v16 = vld [vmem:[%s9676_s8 + $0xbc8] ss:$20 sps:$4 sm:$0xff]  }
 0x31f   : > { %7441 = vmatprep.subr.bf16.mxu1 %v8193_v37  ;;  %v8233_v37 = vld [vmem:[%s9676_s8 + $0xe48] ss:$20 sps:$4 sm:$0xff]  }
 0x321   : > { %7420 = vmatpush3.bf16.msra.mxu0 %v8194_v41  ;;  %v8234_v41 = vld [vmem:[%s9676_s8 + $0xa88] ss:$20 sps:$4 sm:$0xff]  }
 0x322   : > { %7442 = vmatpush3.bf16.msra.mxu1 %v8195_v49  ;;  %7421 = vmatprep.subr.bf16.mxu0 %v8196_v17  ;;  %v8235_v49 = vld [vmem:[%s9676_s8 + $0xd08] ss:$20 sps:$4 sm:$0xff]   ;;  %v8236_v17 = vld [vmem:[%s9676_s8 + $0xba0] ss:$20 sps:$4 sm:$0xff]  }
 0x323   : > { %7443 = vmatprep.subr.bf16.mxu1 %v8197_v18  ;;  %v8237_v18 = vld [vmem:[%s9676_s8 + $0xe20] ss:$20 sps:$4 sm:$0xff]  }
 0x325   : > { %7422 = vmatpush3.bf16.msra.mxu0 %v8198_v19  ;;  %v8238_v19 = vld [vmem:[%s9676_s8 + $0xa60] ss:$20 sps:$4 sm:$0xff]  }
 0x326   : > { %7444 = vmatpush3.bf16.msra.mxu1 %v8199_v44  ;;  %7423 = vmatprep.subr.bf16.mxu0 %v8200_v51  ;;  %v8239_v44 = vld [vmem:[%s9676_s8 + $0xce0] ss:$20 sps:$4 sm:$0xff]   ;;  %v8240_v51 = vld [vmem:[%s9676_s8 + $0xb78] ss:$20 sps:$4 sm:$0xff]  }
 0x327   : > { %7445 = vmatprep.subr.bf16.mxu1 %v8201_v20  ;;  %v8241_v20 = vld [vmem:[%s9676_s8 + $0xdf8] ss:$20 sps:$4 sm:$0xff]  }
 0x329   : > { %v5128_v26 = vpop.f32.mrf.mxu1  ;;  %7424 = vmatpush3.bf16.msra.mxu0 %v8202_v21  ;;  %v8242_v21 = vld [vmem:[%s9676_s8 + $0xa38] ss:$20 sps:$4 sm:$0xff]  }
 0x32a   : > { %7446 = vmatpush3.bf16.msra.mxu1 %v8203_v23  ;;  %7425 = vmatprep.subr.bf16.mxu0 %v8204_v24  ;;  %v5129_v62 = vadd.f32 %v5128_v26, %v2087_v53  ;;  %v8243_v23 = vld [vmem:[%s9676_s8 + $0xcb8] ss:$20 sps:$4 sm:$0xff]   ;;  %v8244_v24 = vld [vmem:[%s9676_s8 + $0xb50] ss:$20 sps:$4 sm:$0xff]  }
 0x32b   : > { %7447 = vmatprep.subr.bf16.mxu1 %v8205_v25  ;;  %v5130_v33 = vpop.f32.mrf.mxu1  ;;  %v8245_v25 = vld [vmem:[%s9676_s8 + $0xdd0] ss:$20 sps:$4 sm:$0xff]  }
 0x32c   : > { %v5131_v1 = vadd.f32 %v5130_v33, %v2091_v54  ;;  %v8246_v26 = vld [vmem:[%s9676_s8 + $0xa10] ss:$20 sps:$4 sm:$0xff]   ;;  %v5662_v33 = vmax.f32 %v10225_v39, 0.0  ;;  %v8252_v39 = vld [vmem:[%s10178_s23 + $0x60] ss:$8 sps:$4 sm:$0xff]  }
 0x32d   : > { %v5132_v38 = vpop.f32.mrf.mxu1  ;;  %7426 = vmatpush3.bf16.msra.mxu0 %v8206_v29  ;;  %v8247_v29 = vld [vmem:[%s9676_s8 + $0xc90] ss:$20 sps:$4 sm:$0xff]  }
 0x32e   : > { %7448 = vmatpush3.bf16.msra.mxu1 %v8207_v31  ;;  %7427 = vmatprep.subr.bf16.mxu0 %v8208_v61  ;;  %v8250_v31 = vld [vmem:[%s10178_s23 + $0x74] ss:$8 sps:$4 sm:$0xff]   ;;  %v8248_v61 = vld [vmem:[%s10178_s23 + $0x70] ss:$8 sps:$4 sm:$0xff]   ;;  %v8399_v38 = vmov 0.0  }
 0x32f   : > { %7449 = vmatprep.subr.bf16.mxu1 %v8209_v35  ;;  %v5133_v32 = vpop.f32.mrf.mxu1  ;;  %v8251_v35 = vld [vmem:[%s9676_s8 + $0xf88] ss:$20 sps:$4 sm:$0xff]   ;;  %v8269_v53 = vld [vmem:[%s10178_s23 + $0x24] ss:$8 sps:$4 sm:$0xff]  }
 0x330   : > { %v8255_v32 = vld [vmem:[%s9676_s8 + $0xf60] ss:$20 sps:$4 sm:$0xff]   ;;  %v8296_v54 = vld [vmem:[%s10178_s23 + $0x164] ss:$8 sps:$4 sm:$0xff]  }
 0x331   : > { %7428 = vmatpush3.bf16.msra.mxu0 %v8210_v40  ;;  %v8254_v40 = vld [vmem:[%s10178_s23 + $0x64] ss:$8 sps:$4 sm:$0xff]  }
 0x332   : > { %7450 = vmatpush3.bf16.msra.mxu1 %v8211_v3  ;;  %7429 = vmatprep.subr.bf16.mxu0 %v8212_v42  ;;  %v5667_v3 = vpack.c.bf16 %v5662_v33, %v5662_v33  ;;  %v8258_v42 = vld [vmem:[%s10178_s23 + $0x54] ss:$8 sps:$4 sm:$0xff]   ;;  %v8299_v33 = vld [vmem:[%s10178_s23 + $0xa4] ss:$8 sps:$4 sm:$0xff]  }
 0x333   : > { %7451 = vmatprep.subr.bf16.mxu1 %v8213_v43  ;;  %v8262_v43 = vld [vmem:[%s10178_s23 + $0x44] ss:$8 sps:$4 sm:$0xff]  }
 0x335   : > { %7430 = vmatpush3.bf16.msra.mxu0 %v8214_v48  ;;  %v8266_v48 = vld [vmem:[%s10178_s23 + $0x34] ss:$8 sps:$4 sm:$0xff]  }
 0x336   : > { %7452 = vmatpush3.bf16.msra.mxu1 %v8215_v47  ;;  %7459 = vmatprep.subr.bf16.mxu0 %v8216_v36  ;;  %v8290_v47 = vld [vmem:[%s10178_s23 + $0x174] ss:$8 sps:$4 sm:$0xff]   ;;  %v8264_v36 = vld [vmem:[%s10178_s23 + $0x30] ss:$8 sps:$4 sm:$0xff]  }
 0x337   : > { %7481 = vmatprep.subr.bf16.mxu1 %v8217_v50  ;;  %v8288_v50 = vld [vmem:[%s10178_s23 + $0x170] ss:$8 sps:$4 sm:$0xff]  }
 0x338   : > { %v5169_v0 = vpop.f32.mrf.mxu0  ;;  %5494 = vmatmul.mubr.bf16.vlgmr.msra.gmra.mxu0 %v9852_v55 }
 0x339   : > { %5534 = vmatmul.mubr.bf16.vlgmr.msra.gmra.mxu1 %v9860_v60  ;;  %v10302_v2 = vadd.f32 %v5169_v0, %v5129_v62  ;;  %7460 = vmatpush3.bf16.msra.mxu0 %v8218_v56  ;;  %v8272_v0 = vld [vmem:[%s10178_s23 + $0x14] ss:$8 sps:$4 sm:$0xff]  }
 0x33a   : > { %7482 = vmatpush3.bf16.msra.mxu1 %v8219_v57  ;;  %v5171_v8 = vpop.f32.mrf.mxu0  ;;  %7461 = vmatprep.subr.bf16.mxu0 %v8220_v58  ;;  %v8267_v58 = vld [vmem:[%s10178_s23 + $0x20] ss:$8 sps:$4 sm:$0xff]  }
 0x33b   : > { %7483 = vmatprep.subr.bf16.mxu1 %v8221_v59  ;;  %v10308_v55 = vadd.f32 %v5171_v8, %v5131_v1  ;;  %5573 = vmatprep.mubr.bf16.mxu0 %v9882_v5  ;;  %v8230_v5 = vld [vmem:[%s9676_s8 + $0xab0] ss:$20 sps:$4 sm:$0xff]   ;;  %v8294_v59 = vld [vmem:[%s10178_s23 + $0x160] ss:$8 sps:$4 sm:$0xff]   ;;  %v8302_v1 = vld [vmem:[%s10178_s23 + $0x154] ss:$8 sps:$4 sm:$0xff]  }
 0x33c   : > { %5613 = vmatprep.mubr.bf16.mxu1 %v9888_v7  ;;  %v5173_v60 = vpop.f32.mrf.mxu0  ;;  %v8231_v7 = vld [vmem:[%s9676_s8 + $0xd30] ss:$20 sps:$4 sm:$0xff]  }
 0x33d   : > { %7462 = vmatpush3.bf16.msra.mxu0 %v8222_v4  ;;  %v8273_v60 = vld [vmem:[%s10178_s23] ss:$8 sps:$4 sm:$0xff]  }
 0x33e   : > { %7484 = vmatpush3.bf16.msra.mxu1 %v8223_v6  ;;  %v5174_v34 = vpop.f32.mrf.mxu0  ;;  %7463 = vmatprep.subr.bf16.mxu0 %v8224_v10  ;;  %v8300_v6 = vld [vmem:[%s10178_s23 + $0x150] ss:$8 sps:$4 sm:$0xff]   ;;  %v8275_v10 = vld [vmem:[%s10178_s23 + $0x4] ss:$8 sps:$4 sm:$0xff]  }
 0x33f   : > { %7485 = vmatprep.subr.bf16.mxu1 %v8225_v11  ;;  %v8308_v11 = vld [vmem:[%s10178_s23 + $0x144] ss:$8 sps:$4 sm:$0xff]   ;;  %v8276_v34 = vld [vmem:[%s10178_s23 + $0xf0] ss:$8 sps:$4 sm:$0xff]  }
 0x341   : > { %7464 = vmatpush3.bf16.msra.mxu0 %v8226_v12  ;;  %v8278_v12 = vld [vmem:[%s10178_s23 + $0xf4] ss:$8 sps:$4 sm:$0xff]  }
 0x342   : > { %7486 = vmatpush3.bf16.msra.mxu1 %v8227_v13  ;;  %7465 = vmatprep.subr.bf16.mxu0 %v8228_v63  ;;  %v8314_v13 = vld [vmem:[%s10178_s23 + $0x134] ss:$8 sps:$4 sm:$0xff]   ;;  %v8312_v63 = vld [vmem:[%s10178_s23 + $0x130] ss:$8 sps:$4 sm:$0xff]  }
 0x343   : > { %7487 = vmatprep.subr.bf16.mxu1 %v8229_v15  ;;  %v8281_v15 = vld [vmem:[%s10178_s23 + $0xe4] ss:$8 sps:$4 sm:$0xff]  }
 0x345   : > { %7466 = vmatpush3.bf16.msra.mxu0 %v8230_v5  ;;  %v8317_v5 = vld [vmem:[%s10178_s23 + $0x124] ss:$8 sps:$4 sm:$0xff]  }
 0x346   : > { %7488 = vmatpush3.bf16.msra.mxu1 %v8231_v7  ;;  %7467 = vmatprep.subr.bf16.mxu0 %v8232_v16  ;;  %v8279_v16 = vld [vmem:[%s10178_s23 + $0xe0] ss:$8 sps:$4 sm:$0xff]  }
 0x347   : > { %7489 = vmatprep.subr.bf16.mxu1 %v8233_v37  ;;  %v8315_v37 = vld [vmem:[%s10178_s23 + $0x120] ss:$8 sps:$4 sm:$0xff]  }
 0x349   : > { %7468 = vmatpush3.bf16.msra.mxu0 %v8234_v41 }
 0x34a   : > { %7490 = vmatpush3.bf16.msra.mxu1 %v8235_v49  ;;  %7469 = vmatprep.subr.bf16.mxu0 %v8236_v17  ;;  %v8284_v49 = vld [vmem:[%s10178_s23 + $0xd4] ss:$8 sps:$4 sm:$0xff]  }
 0x34b   : > { %7491 = vmatprep.subr.bf16.mxu1 %v8237_v18  ;;  %v8320_v17 = vld [vmem:[%s10178_s23 + $0x114] ss:$8 sps:$4 sm:$0xff]  }
 0x34d   : > { %7470 = vmatpush3.bf16.msra.mxu0 %v8238_v19  ;;  %v8282_v19 = vld [vmem:[%s10178_s23 + $0xd0] ss:$8 sps:$4 sm:$0xff]  }
 0x34e   : > { %7492 = vmatpush3.bf16.msra.mxu1 %v8239_v44  ;;  %7471 = vmatprep.subr.bf16.mxu0 %v8240_v51  ;;  %v8318_v44 = vld [vmem:[%s10178_s23 + $0x110] ss:$8 sps:$4 sm:$0xff]  }
 0x34f   : > { %7493 = vmatprep.subr.bf16.mxu1 %v8241_v20  ;;  %v8287_v20 = vld [vmem:[%s10178_s23 + $0xc4] ss:$8 sps:$4 sm:$0xff]  }
 0x351   : > { %7472 = vmatpush3.bf16.msra.mxu0 %v8242_v21  ;;  %v8323_v21 = vld [vmem:[%s10178_s23 + $0x104] ss:$8 sps:$4 sm:$0xff]  }
 0x352   : > { %7494 = vmatpush3.bf16.msra.mxu1 %v8243_v23  ;;  %7473 = vmatprep.subr.bf16.mxu0 %v8244_v24  ;;  %v8285_v23 = vld [vmem:[%s10178_s23 + $0xc0] ss:$8 sps:$4 sm:$0xff]  }
 0x353   : > { %7495 = vmatprep.subr.bf16.mxu1 %v8245_v25  ;;  %v8321_v24 = vld [vmem:[%s10178_s23 + $0x100] ss:$8 sps:$4 sm:$0xff]   ;;  %v8293_v25 = vld [vmem:[%s10178_s23 + $0xb4] ss:$8 sps:$4 sm:$0xff]  }
 0x355   : > { %7474 = vmatpush3.bf16.msra.mxu0 %v8246_v26  ;;  %v8326_v26 = vld [vmem:[%s10178_s23 + $0x1f4] ss:$8 sps:$4 sm:$0xff]  }
 0x356   : > { %7496 = vmatpush3.bf16.msra.mxu1 %v8247_v29  ;;  %7508 = vmatprep.subr.bf16.mxu0 %v8399_v38  ;;  %v8291_v29 = vld [vmem:[%s10178_s23 + $0xb0] ss:$8 sps:$4 sm:$0xff]  }
 0x357   : > { %6151 = vmatprep.subr.bf16.mxu1 %v8250_v31  ;;  %v8324_v31 = vld [vmem:[%s10178_s23 + $0x1f0] ss:$8 sps:$4 sm:$0xff]  }
 0x358   : > { %5574 = vmatmul.mubr.bf16.vlgmr.msra.gmra.mxu0 %v9944_v9  ;;  %v8256_v9 = vld [vmem:[%s10178_s23 + $0x50] ss:$8 sps:$4 sm:$0xff]  }
 0x359   : > { %5614 = vmatmul.mubr.bf16.vlgmr.msra.gmra.mxu1 %v9952_v14  ;;  %7509 = vmatpush3.bf16.msra.mxu0 %v8251_v35  ;;  %v8259_v14 = vld [vmem:[%s9676_s8 + $0xf38] ss:$20 sps:$4 sm:$0xff]   ;;  %v8297_v35 = vld [vmem:[%s10178_s23 + $0xa0] ss:$8 sps:$4 sm:$0xff]  }
 0x35a   : > { %6152 = vmatpush1.bf16.msra.mxu1 %v8248_v61  ;;  %6183 = vmatprep.mubr.bf16.mxu1 %v5667_v3  ;;  %v8329_v61 = vld [vmem:[%s10178_s23 + $0x1e4] ss:$8 sps:$4 sm:$0xff]   ;;  %v8332_v3 = vld [vmem:[%s10178_s23 + $0x1d4] ss:$8 sps:$4 sm:$0xff]  }
 0x35b   : > { %7510 = vmatprep.subr.bf16.mxu0 %v8399_v38  ;;  %6153 = vmatprep.subr.bf16.mxu1 %v8254_v40  ;;  %v8305_v40 = vld [vmem:[%s10178_s23 + $0x94] ss:$8 sps:$4 sm:$0xff]  }
 0x35c   : > { %7516 = vmatprep.mubr.msk.bf16.mxu0 %vm8400_vm1, %v8399_v38 }
 0x35d   : > { %7511 = vmatpush3.bf16.msra.mxu0 %v8255_v32  ;;  %v8330_v32 = vld [vmem:[%s10178_s23 + $0x1d0] ss:$8 sps:$4 sm:$0xff]  }
 0x35e   : > { %6154 = vmatpush1.bf16.msra.mxu1 %v8252_v39  ;;  %7512 = vmatprep.subr.bf16.mxu0 %v8399_v38  ;;  %v8303_v39 = vld [vmem:[%s10178_s23 + $0x90] ss:$8 sps:$4 sm:$0xff]  }
 0x35f   : > { %6155 = vmatprep.subr.bf16.mxu1 %v8258_v42  ;;  %v8311_v42 = vld [vmem:[%s10178_s23 + $0x84] ss:$8 sps:$4 sm:$0xff]  }
 0x361   : > { %7513 = vmatpush3.bf16.msra.mxu0 %v8259_v14  ;;  %v8309_v14 = vld [vmem:[%s10178_s23 + $0x80] ss:$8 sps:$4 sm:$0xff]  }
 0x362   : > { %6156 = vmatpush1.bf16.msra.mxu1 %v8256_v9  ;;  %7514 = vmatprep.subr.bf16.mxu0 %v8399_v38  ;;  %v8327_v38 = vld [vmem:[%s10178_s23 + $0x1e0] ss:$8 sps:$4 sm:$0xff]   ;;  %v8335_v9 = vld [vmem:[%s10178_s23 + $0x1c4] ss:$8 sps:$4 sm:$0xff]  }
 0x363   : > { %6157 = vmatprep.subr.bf16.mxu1 %v8262_v43  ;;  %v8333_v43 = vld [vmem:[%s10178_s23 + $0x1c0] ss:$8 sps:$4 sm:$0xff]  }
 0x365   : > { %7515 = vmatpush3.bf16.msra.mxu0 %v8263_v45  ;;  %v8338_v45 = vld [vmem:[%s10178_s23 + $0x1b4] ss:$8 sps:$4 sm:$0xff]  }
 0x366   : > { %6158 = vmatpush1.bf16.msra.mxu1 %v8260_v46  ;;  %6192 = vmatprep.subr.bf16.mxu0 %v8290_v47  ;;  %v5661_v46 = vmax.f32 %v10219_v30, 0.0  ;;  %v8336_v47 = vld [vmem:[%s10178_s23 + $0x1b0] ss:$8 sps:$4 sm:$0xff]   ;;  %v8339_v30 = vld [vmem:[%s10178_s23 + $0x1a0] ss:$8 sps:$4 sm:$0xff]  }
 0x367   : > { %6159 = vmatprep.subr.bf16.mxu1 %v8266_v48  ;;  %v8350_v48 = vld [vmem:[%s10178_s23 + $0x274] ss:$8 sps:$4 sm:$0xff]  }
 0x368   : > { %7517 = vmatmul.mubr.msk.bf16.vlgmr.msra.gmra.mxu0 %vm4803_vm0, %v9978_v28 }
 0x369   : > { %v5210_v56 = vpop.f32.mrf.mxu1  ;;  %6193 = vmatpush1.bf16.msra.mxu0 %v8288_v50  ;;  %v5666_v50 = vpack.c.bf16 %v5661_v46, %v5661_v46 }
 0x36a   : > { %v10358_v57 = vadd.f32 %v5210_v56, %v10302_v2  ;;  %6160 = vmatpush1.bf16.msra.mxu1 %v8264_v36  ;;  %6194 = vmatprep.subr.bf16.mxu0 %v8296_v54  ;;  %v8270_v2 = vld [vmem:[%s10178_s23 + $0x10] ss:$8 sps:$4 sm:$0xff]   ;;  %v8353_v54 = vld [vmem:[%s10178_s23 + $0x264] ss:$8 sps:$4 sm:$0xff]   ;;  %v8351_v56 = vld [vmem:[%s10178_s23 + $0x260] ss:$8 sps:$4 sm:$0xff]  }
 0x36b   : > { %v5212_v62 = vpop.f32.mrf.mxu1  ;;  %6161 = vmatprep.subr.bf16.mxu1 %v8269_v53  ;;  %v8348_v36 = vld [vmem:[%s10178_s23 + $0x270] ss:$8 sps:$4 sm:$0xff]   ;;  %v8341_v53 = vld [vmem:[%s10178_s23 + $0x1a4] ss:$8 sps:$4 sm:$0xff]  }
 0x36c   : > { %v10365_v4 = vadd.f32 %v5212_v62, %v10308_v55  ;;  %v8306_v55 = vld [vmem:[%s10178_s23 + $0x140] ss:$8 sps:$4 sm:$0xff]   ;;  %v8342_v62 = vld [vmem:[%s10178_s23 + $0x190] ss:$8 sps:$4 sm:$0xff]  }
 0x36d   : > { %v5214_v28 = vpop.f32.mrf.mxu1  ;;  %6195 = vmatpush1.bf16.msra.mxu0 %v8294_v59  ;;  %v8356_v59 = vld [vmem:[%s10178_s23 + $0x254] ss:$8 sps:$4 sm:$0xff]  }
 0x36e   : > { %6162 = vmatpush1.bf16.msra.mxu1 %v8267_v58  ;;  %6196 = vmatprep.subr.bf16.mxu0 %v8302_v1  ;;  %v8344_v58 = vld [vmem:[%s10178_s23 + $0x194] ss:$8 sps:$4 sm:$0xff]   ;;  %v8347_v1 = vld [vmem:[%s10178_s23 + $0x184] ss:$8 sps:$4 sm:$0xff]  }
 0x36f   : > { %6163 = vmatprep.subr.bf16.mxu1 %v8272_v0  ;;  %v5215_v8 = vpop.f32.mrf.mxu1  ;;  %v8354_v0 = vld [vmem:[%s10178_s23 + $0x250] ss:$8 sps:$4 sm:$0xff]   ;;  %v8359_v28 = vld [vmem:[%s10178_s23 + $0x244] ss:$8 sps:$4 sm:$0xff]  }
 0x370   : > { %v8360_v8 = vld [vmem:[%s10178_s23 + $0x230] ss:$8 sps:$4 sm:$0xff]  }
 0x371   : > { %6197 = vmatpush1.bf16.msra.mxu0 %v8300_v6  ;;  %v8357_v6 = vld [vmem:[%s10178_s23 + $0x240] ss:$8 sps:$4 sm:$0xff]  }
 0x372   : > { %6164 = vmatpush1.bf16.msra.mxu1 %v8270_v2  ;;  %6198 = vmatprep.subr.bf16.mxu0 %v8308_v11  ;;  %v8345_v2 = vld [vmem:[%s10178_s23 + $0x180] ss:$8 sps:$4 sm:$0xff]  }
 0x373   : > { %6165 = vmatprep.subr.bf16.mxu1 %v8275_v10  ;;  %v8365_v10 = vld [vmem:[%s10178_s23 + $0x224] ss:$8 sps:$4 sm:$0xff]  }
 0x375   : > { %6199 = vmatpush1.bf16.msra.mxu0 %v8306_v55 }
 0x376   : > { %6166 = vmatpush1.bf16.msra.mxu1 %v8273_v60  ;;  %6200 = vmatprep.subr.bf16.mxu0 %v8314_v13  ;;  %v8363_v60 = vld [vmem:[%s10178_s23 + $0x220] ss:$8 sps:$4 sm:$0xff]  }
 0x377   : > { %6167 = vmatprep.subr.bf16.mxu1 %v8278_v12  ;;  %v8368_v12 = vld [vmem:[%s10178_s23 + $0x214] ss:$8 sps:$4 sm:$0xff]  }
 0x378   : > { %v10379_v7 = vpop.f32.mrf.mxu0 }
 0x379   : > { %6201 = vmatpush1.bf16.msra.mxu0 %v8312_v63 }
 0x37a   : > { %6168 = vmatpush2.bf16.msra.mxu1 %v8276_v34  ;;  %v10383_v41 = vpop.f32.mrf.mxu0  ;;  %6202 = vmatprep.subr.bf16.mxu0 %v8317_v5  ;;  %v8366_v34 = vld [vmem:[%s10178_s23 + $0x210] ss:$8 sps:$4 sm:$0xff]   ;;  %v8369_v5 = vld [vmem:[%s10178_s23 + $0x200] ss:$8 sps:$4 sm:$0xff]  }
 0x37b   : > { %6169 = vmatprep.subr.bf16.mxu1 %v8281_v15  ;;  %v8371_v15 = vld [vmem:[%s10178_s23 + $0x204] ss:$8 sps:$4 sm:$0xff]  }
 0x37c   : > { %v5255_v18 = vpop.f32.mrf.mxu0 }
 0x37d   : > { %6203 = vmatpush1.bf16.msra.mxu0 %v8315_v37  ;;  %v5254_v37 = vadd.f32 %v10383_v41, %v10365_v4  ;;  %v2094_v4 = vsub.s32 4, %v9669_v27 }
 0x37e   : > { %6170 = vmatpush2.bf16.msra.mxu1 %v8279_v16  ;;  %v5256_v51 = vpop.f32.mrf.mxu0  ;;  %6204 = vmatprep.subr.bf16.mxu0 %v8320_v17  ;;  %v5252_v16 = vadd.f32 %v10379_v7, %v10358_v57 }
 0x37f   : > { %6171 = vmatprep.subr.bf16.mxu1 %v8284_v49 }
 0x381   : > { %6205 = vmatpush1.bf16.msra.mxu0 %v8318_v44 }
 0x382   : > { %6172 = vmatpush2.bf16.msra.mxu1 %v8282_v19  ;;  %6206 = vmatprep.subr.bf16.mxu0 %v8323_v21 }
 0x383   : > { %6173 = vmatprep.subr.bf16.mxu1 %v8287_v20 }
 0x385   : > { %6207 = vmatpush1.bf16.msra.mxu0 %v8321_v24 }
 0x386   : > { %6174 = vmatpush2.bf16.msra.mxu1 %v8285_v23  ;;  %6208 = vmatprep.subr.bf16.mxu0 %v8326_v26 }
 0x387   : > { %6175 = vmatprep.subr.bf16.mxu1 %v8293_v25 }
 0x389   : > { %6209 = vmatpush2.bf16.msra.mxu0 %v8324_v31 }
 0x38a   : > { %6176 = vmatpush2.bf16.msra.mxu1 %v8291_v29  ;;  %6210 = vmatprep.subr.bf16.mxu0 %v8329_v61 }
 0x38b   : > { %6177 = vmatprep.subr.bf16.mxu1 %v8299_v33 }
 0x38d   : > { %6211 = vmatpush2.bf16.msra.mxu0 %v8327_v38  ;;  %v2095_v38 = vrot.slane %v10292_v52, %v2094_v4 }
 0x38e   : > { %6178 = vmatpush2.bf16.msra.mxu1 %v8297_v35  ;;  %6212 = vmatprep.subr.bf16.mxu0 %v8332_v3 }
 0x38f   : > { %6179 = vmatprep.subr.bf16.mxu1 %v8305_v40 }
 0x391   : > { %6213 = vmatpush2.bf16.msra.mxu0 %v8330_v32 }
 0x392   : > { %6180 = vmatpush2.bf16.msra.mxu1 %v8303_v39  ;;  %6214 = vmatprep.subr.bf16.mxu0 %v8335_v9 }
 0x393   : > { %6181 = vmatprep.subr.bf16.mxu1 %v8311_v42 }
 0x395   : > { %6215 = vmatpush2.bf16.msra.mxu0 %v8333_v43 }
 0x396   : > { %6182 = vmatpush2.bf16.msra.mxu1 %v8309_v14  ;;  %6216 = vmatprep.subr.bf16.mxu0 %v8338_v45 }
 0x397   : > { %6233 = vmatprep.subr.bf16.mxu1 %v8350_v48 }
 0x399   : > { %6184 = vmatmul.mubr.bf16.vlgmr.msra.gmra.mxu1 %v5666_v50  ;;  %6217 = vmatpush2.bf16.msra.mxu0 %v8336_v47 }
 0x39a   : > { %6234 = vmatpush1.bf16.msra.mxu1 %v8348_v36  ;;  %6218 = vmatprep.subr.bf16.mxu0 %v8341_v53 }
 0x39b   : > { %6235 = vmatprep.subr.bf16.mxu1 %v8353_v54  ;;  %6265 = vmatprep.mubr.bf16.mxu1 %v8398_v22  ;;  %v8362_v22 = vld [vmem:[%s10178_s23 + $0x234] ss:$8 sps:$4 sm:$0xff]  }
 0x39d   : > { %6219 = vmatpush2.bf16.msra.mxu0 %v8339_v30 }
 0x39e   : > { %6236 = vmatpush1.bf16.msra.mxu1 %v8351_v56  ;;  %6220 = vmatprep.subr.bf16.mxu0 %v8344_v58 }
 0x39f   : > { %6237 = vmatprep.subr.bf16.mxu1 %v8356_v59 }
 0x3a1   : > { %6221 = vmatpush2.bf16.msra.mxu0 %v8342_v62 }
 0x3a2   : > { %6238 = vmatpush1.bf16.msra.mxu1 %v8354_v0  ;;  %6222 = vmatprep.subr.bf16.mxu0 %v8347_v1 }
 0x3a3   : > { %6239 = vmatprep.subr.bf16.mxu1 %v8359_v28 }
 0x3a5   : > { %6223 = vmatpush2.bf16.msra.mxu0 %v8345_v2 }
 0x3a6   : > { %6240 = vmatpush1.bf16.msra.mxu1 %v8357_v6 }
 0x3a7   : > { %6241 = vmatprep.subr.bf16.mxu1 %v8362_v22 }
 0x3a9   : > { %v5292_v11 = vpop.f32.mrf.mxu1 }
 0x3aa   : > { %6242 = vmatpush1.bf16.msra.mxu1 %v8360_v8  ;;  %v5293_v49 = vadd.f32 %v5292_v11, %v5252_v16 }
 0x3ab   : > { %v5294_v55 = vpop.f32.mrf.mxu1  ;;  %6243 = vmatprep.subr.bf16.mxu1 %v8365_v10 }
 0x3ac   : > { %v5295_v19 = vadd.f32 %v5294_v55, %v5254_v37 }
 0x3ad   : > { %v5296_v13 = vpop.f32.mrf.mxu1 }
 0x3ae   : > { %6244 = vmatpush1.bf16.msra.mxu1 %v8363_v60 }
 0x3af   : > { %v5297_v63 = vpop.f32.mrf.mxu1  ;;  %6245 = vmatprep.subr.bf16.mxu1 %v8368_v12 }
 0x3b2   : > { %6246 = vmatpush1.bf16.msra.mxu1 %v8366_v34 }
 0x3b3   : > { %6247 = vmatprep.subr.bf16.mxu1 %v8371_v15 }
 0x3b6   : > { %6248 = vmatpush1.bf16.msra.mxu1 %v8369_v5 }
 0x3b8   : > { %v5333_v17 = vpop.f32.mrf.mxu0 }
 0x3b9   : > { %v5374_v18 = vpop.f32.mrf.mxu1  ;;  %v5334_v44 = vadd.f32 %v5333_v17, %v5293_v49 }
 0x3ba   : > { %v5335_v51 = vpop.f32.mrf.mxu0 }
 0x3bb   : > { %v5376_v20 = vpop.f32.mrf.mxu1  ;;  %v5336_v21 = vadd.f32 %v5335_v51, %v5295_v19  ;;  %v5375_v23 = vadd.f32 %v5374_v18, %v5334_v44 }
 0x3bc   : > { %v5337_v24 = vpop.f32.mrf.mxu0 }
 0x3bd   : > { %v5378_v25 = vpop.f32.mrf.mxu1  ;;  %v5377_v26 = vadd.f32 %v5376_v20, %v5336_v21  ;;  %v5663_v29 = vmax.f32 %v5375_v23, 0.0 }
 0x3be   : > { %v5338_v31 = vpop.f32.mrf.mxu0 }
 0x3bf   : > { %v5379_v33 = vpop.f32.mrf.mxu1  ;;  %v5664_v57 = vmax.f32 %v5377_v26, 0.0  ;;  %v5668_v61 = vpack.c.bf16 %v5663_v29, %v5663_v29 }
 0x3c1   : > { %v5669_v7 = vpack.c.bf16 %v5664_v57, %v5664_v57 }
 0x3c3   : > { %6224 = vmatprep.mubr.bf16.mxu0 %v5669_v7 }
 0x3c4   : > { %6225 = vmatmul.mubr.bf16.vlgmr.msra.gmra.mxu0 %v5668_v61 }
 0x3d8   : > { %v7387_v41 = vpop.f32.mrf.mxu0 }
 0x3d9   : > { %v7409_v35 = vpop.f32.mrf.mxu1 }
 0x3da   : > { %v7388_v40 = vpop.f32.mrf.mxu0 }
 0x3db   : > { %v7410_v3 = vpop.f32.mrf.mxu1  ;;  %v7389_v39 = vadd.f32 %v7388_v40, %v7387_v41 }
 0x3dc   : > { %v7411_v32 = vadd.f32 %v7410_v3, %v7409_v35  ;;  %v7390_v42 = vpop.f32.mrf.mxu0 }
 0x3dd   : > { %v7412_v9 = vpop.f32.mrf.mxu1  ;;  %v5416_v14 = vadd.f32 %v7389_v39, %v2095_v38 }
 0x3de   : > { %v7391_v43 = vpop.f32.mrf.mxu0 }
 0x3df   : > { %v7413_v46 = vpop.f32.mrf.mxu1  ;;  %v5456_v45 = vadd.f32 %v7411_v32, %v5416_v14 }
 0x3f8   : > { %v7431_v48 = vpop.f32.mrf.mxu0 }
 0x3f9   : > { %v7453_v47 = vpop.f32.mrf.mxu1 }
 0x3fa   : > { %v7432_v36 = vpop.f32.mrf.mxu0 }
 0x3fb   : > { %v7454_v50 = vpop.f32.mrf.mxu1  ;;  %v7433_v58 = vadd.f32 %v7432_v36, %v7431_v48 }
 0x3fc   : > { %v7434_v53 = vpop.f32.mrf.mxu0  ;;  %v7455_v2 = vadd.f32 %v7454_v50, %v7453_v47 }
 0x3fd   : > { %v7456_v27 = vpop.f32.mrf.mxu1  ;;  %v5496_v28 = vadd.f32 %v7433_v58, %v5456_v45 }
 0x3fe   : > { %v7435_v54 = vpop.f32.mrf.mxu0 }
 0x3ff   : > { %v7457_v30 = vpop.f32.mrf.mxu1  ;;  %v5536_v10 = vadd.f32 %v7455_v2, %v5496_v28 }
 0x418   : > { %v7475_v56 = vpop.f32.mrf.mxu0 }
 0x419   : > { %v7497_v52 = vpop.f32.mrf.mxu1 }
 0x41a   : > { %v7476_v59 = vpop.f32.mrf.mxu0 }
 0x41b   : > { %v7498_v62 = vpop.f32.mrf.mxu1  ;;  %v7477_v8 = vadd.f32 %v7476_v59, %v7475_v56 }
 0x41c   : > { %v7478_v0 = vpop.f32.mrf.mxu0  ;;  %v7499_v60 = vadd.f32 %v7498_v62, %v7497_v52 }
 0x41d   : > { %v7500_v1 = vpop.f32.mrf.mxu1  ;;  %v5576_v11 = vadd.f32 %v7477_v8, %v5536_v10 }
 0x41e   : > { %v7479_v6 = vpop.f32.mrf.mxu0 }
 0x41f   : > { %v7501_v22 = vpop.f32.mrf.mxu1  ;;  %v5616_v55 = vadd.f32 %v7499_v60, %v5576_v11 }
 0x428   : > { %v5655_v12 = vpop.f32.mrf.mxu0 }
 0x429   : > { %v5656_v13 = vadd.f32 %v5655_v12, %v5616_v55 }
 0x42a   : > { %v7518_v34 = vpop.f32.mrf.mxu0 }
 0x42b   : > { %v5665_v63 = vmax.f32 %v5656_v13, 0.0 }
 0x42c   : > { %v5658_v15 = vpop.f32.mrf.mxu0 }
 0x42d   : > { %v5670_v5 = vpack.c.bf16 %v5665_v63, %v5665_v63 }
 0x42e   : > { %v7519_v16 = vpop.f32.mrf.mxu0 }
 0x42f   : > { %6266 = vmatmul.mubr.bf16.vlgmr.msra.gmra.mxu1 %v5670_v5 }
 0x459   : > { %v6185_v37 = vpop.f32.mrf.mxu1 }
 0x45b   : > { %v6187_v49 = vpop.f32.mrf.mxu1 }
 0x45d   : > { %v6189_v17 = vpop.f32.mrf.mxu1 }
 0x45f   : > { %v6190_v18 = vpop.f32.mrf.mxu1 }
 0x484   : > { %v6226_v19 = vpop.f32.mrf.mxu0 }
 0x485   : > { %v6227_v44 = vadd.f32 %v6226_v19, %v6185_v37 }
 0x486   : > { %v6228_v51 = vpop.f32.mrf.mxu0 }
 0x487   : > { %v6229_v20 = vadd.f32 %v6228_v51, %v6187_v49 }
 0x488   : > { %v6230_v21 = vpop.f32.mrf.mxu0 }
 0x48a   : > { %v6231_v23 = vpop.f32.mrf.mxu0 }
 0x4ef   : > { %v6267_v24 = vpop.f32.mrf.mxu1 }
 0x4f0   : > { %v6268_v26 = vadd.f32 %v6267_v24, %v6227_v44 }
 0x4f1   : > { %v6269_v25 = vpop.f32.mrf.mxu1 }
 0x4f2   : > { %v6270_v29 = vadd.f32 %v6269_v25, %v6229_v20 }
 0x4f3   : > { %v6271_v31 = vpop.f32.mrf.mxu1 }
 0x4f4   : > { %v6276_v33 = vcombine.low %v6268_v26, %v6270_v29 }
 0x4f5   : > { %v6272_v57 = vpop.f32.mrf.mxu1 }
 0x4f6   : > { %7365 = vst.sshfl [vmem:[%s1470_s27] sm:$0x33 pattern:$0x76325410] %v6276_v33 }
 0x4f7 PF: > { %p11_p11 = scmp.ge.s32.totalorder %s8445_s19, 7   ;;  %s10461_s15 = smov %s8391_s16 }
 0x4f8   : > { %s10462_s16 = smov %s8454_s22  ;;  %s10463_s17 = smov %s8445_s19 }
 0x4f9   :  { %13 = sbr.rel (!%p11_p11) target bundleno = 2 (0x2), region = 109 }

</bundles_post_ra>
